<compile_context>
chip_gen: v7x
topology: tpu7x:2x2x1
jax: 0.10.0
libtpu: 0.0.40
codegen_flags: <defaults>
</compile_context>

<pallas_src>
import jax
import jax.numpy as jnp
from jax import lax
from jax.experimental import pallas as pl
from jax.experimental.pallas import tpu as pltpu

EPS = 1e-5
LAMBD = 5.1e-3  # stand-in for config_param.Parameters.LAMBD (Barlow Twins default)

# Preferred tile (lane/sublane aligned, multiple of 256 for the v6e/v7x MXU).  The
# helpers clamp it to the actual dim, so the toy demo still exercises multi-tile
# grids (grid (2,2) in the projector's 512-wide layers and in the loss).
# At real BarlowTwins sizes (K=N=D=8192, per-device batch ~256-512) derive tiles from
# the per-generation scoped-VMEM budget instead:
#   v5e : tn=tk ~ 256-512 (MXU is 4x128x128); stay inside the 16 MiB scoped default
#         unless vmem_limit_bytes is raised explicitly.
#   v6e : tn ~ 1024, tk ~ 512, vmem_limit_bytes ~ 100 MiB (128 MiB physical); add
#         pipeline_mode=pl.Buffered(3) on the weight spec if DMA is still exposed.
#   v7x : tn=tk ~ 512 and keep total scoped VMEM <= ~48-56 MiB (only 64 MiB VMEM/TC);
#         do NOT copy the v6e tile set.
#   loss: TILE_D 512-1024 at D=8192 to avoid ~4K-step grids of pure step overhead.
PREF_TILE = 256
VMEM_LIMIT = 32 * 1024 * 1024  # safe on v5e/v6e/v7x at demo scale; sweep up on v6e


def _pick_tile(dim, preferred):
    """Largest tile <= preferred that evenly divides dim (halving fallback)."""
    t = min(preferred, dim)
    while dim % t:
        t //= 2
    return t


# ------------------- conv3x3 stem (im2col matmul + two-pass BN2d + ReLU + GAP) -----

def _conv_stats_kernel(x_ref, w_ref, sum_ref, sq_ref):
    # x: (1, tm, Kp) bf16 im2col rows     w: (Kp, F) bf16
    # sum/sq: (1, 1, F) f32 per-branch channel sums, resident across row tiles.
    mt = pl.program_id(1)

    @pl.when(mt == 0)
    def _():
        sum_ref[...] = jnp.zeros_like(sum_ref)
        sq_ref[...] = jnp.zeros_like(sq_ref)

    h = jnp.dot(x_ref[0], w_ref[...], preferred_element_type=jnp.float32)  # (tm, F)
    sum_ref[0] += jnp.sum(h, axis=0, keepdims=True)
    sq_ref[0] += jnp.sum(h * h, axis=0, keepdims=True)


def _make_conv_apply_kernel(count):
    inv_count = 1.0 / float(count)

    def kernel(x_ref, w_ref, sum_ref, sq_ref, g_ref, b_ref, o_ref):
        # x: (1, ns, HW, Kp) bf16   sums: (1, 1, F) f32   g/b: (1, F)   o: (1, ns, F)
        _, ns, hw, kp = x_ref.shape
        f = w_ref.shape[-1]
        x2 = x_ref[...].reshape(ns * hw, kp)
        h = jnp.dot(x2, w_ref[...], preferred_element_type=jnp.float32)   # (ns*hw, F)
        mean = sum_ref[0] * inv_count                                     # (1, F)
        var = jnp.maximum(sq_ref[0] * inv_count - mean * mean, 0.0)
        scale = g_ref[...] * lax.rsqrt(var + EPS)
        shift = b_ref[...] - mean * scale
        y = jnp.maximum(h * scale + shift, 0.0)                           # BN + ReLU
        # Global average pooling over the HW positions, fused.
        o_ref[0] = jnp.mean(y.reshape(ns, hw, f), axis=1).astype(o_ref.dtype)

    return kernel


def conv_stem_im2col(x_stacked):
    """(2, N, C, H, W) f32 -> lane-dense padded im2col slab (2, N, H*W, Kp) bf16."""
    x = x_stacked.astype(jnp.bfloat16)                  # cast BEFORE transpose / pad
    x = jnp.transpose(x, (0, 1, 3, 4, 2))               # NCHW -> NHWC
    b2, n, h, w, c = x.shape
    xp = jnp.pad(x, ((0, 0), (0, 0), (1, 1), (1, 1), (0, 0)))
    cols = [xp[:, :, di:di + h, dj:dj + w, :] for di in range(3) for dj in range(3)]
    slab = jnp.concatenate(cols, axis=-1).reshape(b2, n, h * w, 9 * c)
    kp = max(128, ((9 * c + 127) // 128) * 128)
    # TODO(synk): at ImageNet scale build the 3x3 windows in-kernel from a lane-dense
    # space-to-depth layout instead of materializing the 9x im2col slab in HBM.
    return jnp.pad(slab, ((0, 0), (0, 0), (0, 0), (0, kp - 9 * c)))


def conv_bn_relu_gap(slab, w9, gamma, beta, *, tm=PREF_TILE):
    """slab: (2, N, H*W, Kp).  Returns pooled features (2, N, F) bf16."""
    b2, n, hw, kp = slab.shape
    f = w9.shape[-1]
    w_flat = w9.reshape(-1, f)
    w_pad = jnp.pad(w_flat, ((0, kp - w_flat.shape[0]), (0, 0))).astype(jnp.bfloat16)

    m = n * hw                         # rows per branch
    slab2 = slab.reshape(b2, m, kp)
    tm = _pick_tile(m, tm)

    # Pass A: conv matmul + per-branch per-channel sum / sumsq (two-pass BN stats).
    sums, sqs = pl.pallas_call(
        _conv_stats_kernel,
        out_shape=(jax.ShapeDtypeStruct((b2, 1, f), jnp.float32),
                   jax.ShapeDtypeStruct((b2, 1, f), jnp.float32)),
        grid=(b2, m // tm),
        in_specs=[
            pl.BlockSpec((1, tm, kp), lambda br, mt: (br, mt, 0)),
            pl.BlockSpec((kp, f), lambda br, mt: (0, 0)),
        ],
        out_specs=(pl.BlockSpec((1, 1, f), lambda br, mt: (br, 0, 0)),
                   pl.BlockSpec((1, 1, f), lambda br, mt: (br, 0, 0))),
        compiler_params=pltpu.CompilerParams(
            dimension_semantics=("parallel", "arbitrary"),
            vmem_limit_bytes=VMEM_LIMIT),
    )(slab2, w_pad)

    # Pass B: recompute the conv tile, apply BN + ReLU + GAP (per-branch statistics).
    g = gamma.reshape(1, f).astype(jnp.float32)
    b = beta.reshape(1, f).astype(jnp.float32)
    ns = n if n < 8 else 8             # sample tile (demo: full batch per branch)
    assert n % ns == 0
    return pl.pallas_call(
        _make_conv_apply_kernel(m),
        out_shape=jax.ShapeDtypeStruct((b2, n, f), jnp.bfloat16),
        grid=(b2, n // ns),
        in_specs=[
            pl.BlockSpec((1, ns, hw, kp), lambda br, nt: (br, nt, 0, 0)),
            pl.BlockSpec((kp, f), lambda br, nt: (0, 0)),
            pl.BlockSpec((1, 1, f), lambda br, nt: (br, 0, 0)),
            pl.BlockSpec((1, 1, f), lambda br, nt: (br, 0, 0)),
            pl.BlockSpec((1, f), lambda br, nt: (0, 0)),
            pl.BlockSpec((1, f), lambda br, nt: (0, 0)),
        ],
        out_specs=pl.BlockSpec((1, ns, f), lambda br, nt: (br, nt, 0)),
        compiler_params=pltpu.CompilerParams(
            dimension_semantics=("parallel", "parallel"),
            vmem_limit_bytes=VMEM_LIMIT),
    )(slab, w_pad, sums, sqs, g, b)


# ------------------- tiled Linear (+ per-branch BN1d [+ ReLU]) ---------------------

def _make_linear_bn_kernel(relu, tk, m_per_branch):
    def kernel(x_ref, w_ref, g_ref, b_ref, o_ref, acc_ref):
        k = pl.program_id(1)

        @pl.when(k == 0)
        def _():
            acc_ref[...] = jnp.zeros_like(acc_ref)

        # x is resident at full K (fetched once); slice the K panel in-kernel and do a
        # SINGLE fused (2M, tk) @ (tk, tn) MXU matmul for both branches.
        koff = pl.multiple_of(k * tk, tk)
        xk = x_ref[:, pl.ds(koff, tk)]
        acc_ref[...] += jnp.dot(xk, w_ref[...], preferred_element_type=jnp.float32)

        @pl.when(k == pl.num_programs(1) - 1)
        def _():
            m = m_per_branch
            hm = acc_ref[...]                                # (2M, tn) f32
            ys = []
            for br in range(2):                              # per-branch BN1d stats
                hb = hm[br * m:(br + 1) * m]
                mean = jnp.mean(hb, axis=0, keepdims=True)
                var = jnp.mean((hb - mean) ** 2, axis=0, keepdims=True)
                y = (hb - mean) * lax.rsqrt(var + EPS) * g_ref[...] + b_ref[...]
                if relu:
                    y = jnp.maximum(y, 0.0)
                ys.append(y)
            o_ref[...] = jnp.concatenate(ys, axis=0).astype(o_ref.dtype)

    return kernel


def linear_bn(x, w, gamma, beta, *, relu, out_dtype=jnp.bfloat16,
              tn=PREF_TILE, tk=PREF_TILE):
    """x: (2*M, K) branch-major rows.  (x @ w) -> per-branch BN1d (affine) [+ ReLU].
    Matches nn.Linear(bias=False) -> nn.BatchNorm1d -> [nn.ReLU] applied per view."""
    rows, kdim = x.shape
    assert rows % 2 == 0
    m = rows // 2
    kw, nout = w.shape
    assert kw == kdim
    assert nout % 128 == 0 and kdim % 128 == 0, "channel dims must be 128-multiples"
    tn, tk = _pick_tile(nout, tn), _pick_tile(kdim, tk)
    g = gamma.reshape(1, nout).astype(jnp.float32)
    b = beta.reshape(1, nout).astype(jnp.float32)
    return pl.pallas_call(
        _make_linear_bn_kernel(relu, tk, m),
        out_shape=jax.ShapeDtypeStruct((rows, nout), out_dtype),
        grid=(nout // tn, kdim // tk),                  # reduction (K) axis last
        in_specs=[
            # Activations: full-K block, constant index_map -> fetched ONCE, resident.
            pl.BlockSpec((rows, kdim), lambda j, k: (0, 0)),
            pl.BlockSpec((tk, tn), lambda j, k: (k, j)),
            pl.BlockSpec((1, tn), lambda j, k: (0, j)),
            pl.BlockSpec((1, tn), lambda j, k: (0, j)),
        ],
        out_specs=pl.BlockSpec((rows, tn), lambda j, k: (0, j)),
        scratch_shapes=[pltpu.VMEM((rows, tn), jnp.float32)],
        compiler_params=pltpu.CompilerParams(
            dimension_semantics=("parallel", "arbitrary"),
            vmem_limit_bytes=VMEM_LIMIT),
    )(x.astype(jnp.bfloat16), w.astype(jnp.bfloat16), g, b)


# ------------------- tiled Barlow Twins cross-correlation loss ---------------------

def _barlow_loss_kernel(z1t_ref, z2_ref, o_ref, acc_ref):
    # z1t tile: (td, M) f32 (pre-transposed, no per-step transpose)   z2: (M, td) f32
    # o: (D/td, 2) SMEM per-row-panel [on_diag, off_diag] partials.
    i, j = pl.program_id(0), pl.program_id(1)

    @pl.when(j == 0)
    def _():
        acc_ref[0] = jnp.float32(0.0)      # on-diagonal partial for row panel i
        acc_ref[1] = jnp.float32(0.0)      # off-diagonal partial for row panel i

    c = jnp.dot(z1t_ref[...], z2_ref[...], preferred_element_type=jnp.float32)
    acc_ref[1] += jnp.sum(c * c)           # all entries; diagonal corrected below

    @pl.when(i == j)                        # only diagonal panels build a mask
    def _():
        td = c.shape[0]
        eye = (lax.broadcasted_iota(jnp.int32, (td, td), 0) ==
               lax.broadcasted_iota(jnp.int32, (td, td), 1))
        diag = jnp.where(eye, c, 0.0)
        acc_ref[0] += jnp.sum(jnp.where(eye, (c - 1.0) ** 2, 0.0))
        acc_ref[1] -= jnp.sum(diag * diag)

    @pl.when(j == pl.num_programs(1) - 1)
    def _():
        o_ref[i, 0] = acc_ref[0]
        o_ref[i, 1] = acc_ref[1]


def barlow_loss(z1n, z2n, td=PREF_TILE):
    """on_diag + LAMBD * off_diag of c = z1n.T @ z2n (z already batch-normalized).
    Matches the given module: no division of c by the batch size."""
    m, d = z1n.shape
    td = _pick_tile(d, td)
    z1t = z1n.astype(jnp.float32).T          # one-time transpose, done in JAX
    z2 = z2n.astype(jnp.float32)
    n_i = d // td
    parts = pl.pallas_call(
        _barlow_loss_kernel,
        out_shape=jax.ShapeDtypeStruct((n_i, 2), jnp.float32),
        grid=(n_i, d // td),
        in_specs=[
            pl.BlockSpec((td, m), lambda i, j: (i, 0)),
            pl.BlockSpec((m, td), lambda i, j: (0, j)),
        ],
        out_specs=pl.BlockSpec(memory_space=pltpu.SMEM),
        scratch_shapes=[pltpu.SMEM((2,), jnp.float32)],
        # TODO(synk): on v7x mark the i axis "parallel" (per-row-panel output blocks)
        # so both TensorCores split the D x D sweep; kept serial here for portability.
        compiler_params=pltpu.CompilerParams(
            dimension_semantics=("arbitrary", "arbitrary")),
    )(z1t, z2)
    return jnp.sum(parts[:, 0]) + LAMBD * jnp.sum(parts[:, 1])


# ------------------------------- forward glue (JAX) --------------------------------

def backbone_forward(params, y_stacked):
    # TODO(synk): the full torchvision ResNet-18/34/50 tower is not reimplemented; the
    # backbone is one conv3x3 + BatchNorm2d + ReLU + global-average-pool stem standing
    # in for backbone(...) with backbone.fc = Identity() -> (N, FEAT).
    slab = conv_stem_im2col(y_stacked)
    return conv_bn_relu_gap(slab, params["conv_w"],
                            params["bn2d_gamma"], params["bn2d_beta"])   # (2, N, F)


def projector_forward(params, feats):
    b2, n, f = feats.shape
    x = feats.reshape(b2 * n, f)       # branch-major row stacking (rows 0..n-1 = y1)
    h = linear_bn(x, params["w1"], params["g1"], params["b1"], relu=True)
    h = linear_bn(h, params["w2"], params["g2"], params["b2"], relu=True)
    # Final bias-free Linear fused with the non-affine BatchNorm1d (self.bn) the loss
    # applies to z (gamma=1, beta=0 == affine=False); z only ever appears as bn(z).
    d = params["w3"].shape[1]
    zn = linear_bn(h, params["w3"], jnp.ones((d,), jnp.float32),
                   jnp.zeros((d,), jnp.float32), relu=False,
                   out_dtype=jnp.float32)                 # keep bn(z) in f32 for loss
    return zn.reshape(b2, n, d)


def barlow_twins_forward(params, y1, y2):
    y = jnp.stack([y1, y2], axis=0)    # both views in one stacked pass per kernel
    zn = projector_forward(params, backbone_forward(params, y))
    return barlow_loss(zn[0], zn[1])


# ------------------------------------- main ----------------------------------------

if __name__ == "__main__":
    N, C, H, W = 2, 4, 16, 16
    FEAT = 256   # lane-dense stand-in for ResNet-18's 512-d feature
    PROJ = 512   # lane-dense stand-in for the 8192-d projector hidden/output dims

    key = jax.random.PRNGKey(0)
    k = jax.random.split(key, 8)

    def init(kk, shape, fan_in):
        return jax.random.normal(kk, shape, jnp.float32) / jnp.sqrt(jnp.float32(fan_in))

    params = {
        # conv3x3 weight laid out (kh*kw, Cin, Cout); from a PyTorch (Cout, Cin, 3, 3)
        # weight this is w.permute(2, 3, 1, 0).reshape(9, Cin, Cout).
        "conv_w": init(k[0], (9, C, FEAT), 9 * C),
        "bn2d_gamma": jnp.ones((FEAT,), jnp.float32),
        "bn2d_beta": jnp.zeros((FEAT,), jnp.float32),
        # projector sizes = [FEAT, PROJ, PROJ, PROJ] (analog of [512, 8192, 8192, 8192])
        "w1": init(k[1], (FEAT, PROJ), FEAT),
        "g1": jnp.ones((PROJ,), jnp.float32),
        "b1": jnp.zeros((PROJ,), jnp.float32),
        "w2": init(k[2], (PROJ, PROJ), PROJ),
        "g2": jnp.ones((PROJ,), jnp.float32),
        "b2": jnp.zeros((PROJ,), jnp.float32),
        "w3": init(k[3], (PROJ, PROJ), PROJ),
    }

    y1 = jax.random.normal(k[4], (N, C, H, W), jnp.float32)
    y2 = jax.random.normal(k[5], (N, C, H, W), jnp.float32)

    loss = jax.jit(barlow_twins_forward)(params, y1, y2)
    jax.block_until_ready(loss)
    assert loss.shape == () and bool(jnp.isfinite(loss))
    print("KERNEL_OK")
</pallas_src>

<mosaic_0001>
module attributes {stable_mosaic.version = 11 : i64} {
  func.func @_conv_stats_kernel(%arg0: i32, %arg1: i32, %arg2: memref<1x256x128xbf16, #tpu.memory_space<vmem>>, %arg3: memref<128x256xbf16, #tpu.memory_space<vmem>>, %arg4: memref<1x1x256xf32, #tpu.memory_space<vmem>>, %arg5: memref<1x1x256xf32, #tpu.memory_space<vmem>>) attributes {dimension_semantics = [#tpu.dimension_semantics<parallel>, #tpu.dimension_semantics<arbitrary>], iteration_bounds = array<i64: 2, 2>, scalar_prefetch = 0 : i64, scratch_operands = 0 : i64, tpu.core_type = #tpu.core_type<tc>, window_params = [{transform_indices = @transform_0, window_bounds = array<i64: 1, 256, 128>}, {pipeline_mode = #tpu.pipeline_mode<synchronous>, transform_indices = @transform_1, window_bounds = array<i64: 128, 256>}, {transform_indices = @transform_2, window_bounds = array<i64: 1, 1, 256>}, {transform_indices = @transform_3, window_bounds = array<i64: 1, 1, 256>}]} {
    %c0_i32 = arith.constant 0 : i32
    %0 = arith.cmpi eq, %arg1, %c0_i32 : i32
    %1 = arith.extui %0 : i1 to i32
    %c0_i32_0 = arith.constant 0 : i32
    %2 = arith.cmpi ne, %1, %c0_i32_0 : i32
    scf.if %2 {
      %cst_19 = arith.constant 0.000000e+00 : f32
      %24 = vector.broadcast %cst_19 : f32 to vector<1x1x256xf32>
      %c0_20 = arith.constant 0 : index
      %c0_21 = arith.constant 0 : index
      %c0_22 = arith.constant 0 : index
      %25 = vector.load %arg4[%c0_20, %c0_21, %c0_22] : memref<1x1x256xf32, #tpu.memory_space<vmem>>, vector<1x1x256xf32>
      tpu.vector_store %arg4[%c0_20, %c0_21, %c0_22], %24 {strides = array<i32>} : memref<1x1x256xf32, #tpu.memory_space<vmem>>, vector<1x1x256xf32>,
      %cst_23 = arith.constant 0.000000e+00 : f32
      %26 = vector.broadcast %cst_23 : f32 to vector<1x1x256xf32>
      %c0_24 = arith.constant 0 : index
      %c0_25 = arith.constant 0 : index
      %c0_26 = arith.constant 0 : index
      %27 = vector.load %arg5[%c0_24, %c0_25, %c0_26] : memref<1x1x256xf32, #tpu.memory_space<vmem>>, vector<1x1x256xf32>
      tpu.vector_store %arg5[%c0_24, %c0_25, %c0_26], %26 {strides = array<i32>} : memref<1x1x256xf32, #tpu.memory_space<vmem>>, vector<1x1x256xf32>,
    } else {
    }
    %c0 = arith.constant 0 : index
    %c0_1 = arith.constant 0 : index
    %c0_2 = arith.constant 0 : index
    %3 = vector.load %arg2[%c0, %c0_1, %c0_2] : memref<1x256x128xbf16, #tpu.memory_space<vmem>>, vector<1x256x128xbf16>
    %4 = vector.shape_cast %3 : vector<1x256x128xbf16> to vector<256x128xbf16>
    %c0_3 = arith.constant 0 : index
    %c0_4 = arith.constant 0 : index
    %5 = vector.load %arg3[%c0_3, %c0_4] : memref<128x256xbf16, #tpu.memory_space<vmem>>, vector<128x256xbf16>
    %cst = arith.constant dense<0.000000e+00> : vector<256x256xf32>
    %6 = tpu.matmul %4, %5, %cst {dimension_numbers = #tpu.dot_dimension_numbers<[1], [0], [0], [1], [0, 0, 1, 1], [], []>} : vector<256x128xbf16>, vector<128x256xbf16>, vector<256x256xf32> -> vector<256x256xf32>
    %c0_5 = arith.constant 0 : index
    %c0_6 = arith.constant 0 : index
    %c0_7 = arith.constant 0 : index
    %7 = vector.load %arg4[%c0_5, %c0_6, %c0_7] : memref<1x1x256xf32, #tpu.memory_space<vmem>>, vector<1x1x256xf32>
    %8 = vector.shape_cast %7 : vector<1x1x256xf32> to vector<1x256xf32>
    %cst_8 = arith.constant dense<0.000000e+00> : vector<256xf32>
    %9 = vector.multi_reduction <add>, %6, %cst_8 [0] : vector<256x256xf32> to vector<256xf32>
    %10 = vector.shape_cast %9 : vector<256xf32> to vector<1x256xf32>
    %11 = arith.addf %8, %10 : vector<1x256xf32>
    %c0_9 = arith.constant 0 : index
    %c0_10 = arith.constant 0 : index
    %c0_11 = arith.constant 0 : index
    %12 = vector.load %arg4[%c0_9, %c0_10, %c0_11] : memref<1x1x256xf32, #tpu.memory_space<vmem>>, vector<1x1x256xf32>
    %13 = vector.shape_cast %12 : vector<1x1x256xf32> to vector<1x256xf32>
    %14 = vector.shape_cast %11 : vector<1x256xf32> to vector<1x1x256xf32>
    tpu.vector_store %arg4[%c0_9, %c0_10, %c0_11], %14 {strides = array<i32>} : memref<1x1x256xf32, #tpu.memory_space<vmem>>, vector<1x1x256xf32>,
    %c0_12 = arith.constant 0 : index
    %c0_13 = arith.constant 0 : index
    %c0_14 = arith.constant 0 : index
    %15 = vector.load %arg5[%c0_12, %c0_13, %c0_14] : memref<1x1x256xf32, #tpu.memory_space<vmem>>, vector<1x1x256xf32>
    %16 = vector.shape_cast %15 : vector<1x1x256xf32> to vector<1x256xf32>
    %17 = arith.mulf %6, %6 : vector<256x256xf32>
    %cst_15 = arith.constant dense<0.000000e+00> : vector<256xf32>
    %18 = vector.multi_reduction <add>, %17, %cst_15 [0] : vector<256x256xf32> to vector<256xf32>
    %19 = vector.shape_cast %18 : vector<256xf32> to vector<1x256xf32>
    %20 = arith.addf %16, %19 : vector<1x256xf32>
    %c0_16 = arith.constant 0 : index
    %c0_17 = arith.constant 0 : index
    %c0_18 = arith.constant 0 : index
    %21 = vector.load %arg5[%c0_16, %c0_17, %c0_18] : memref<1x1x256xf32, #tpu.memory_space<vmem>>, vector<1x1x256xf32>
    %22 = vector.shape_cast %21 : vector<1x1x256xf32> to vector<1x256xf32>
    %23 = vector.shape_cast %20 : vector<1x256xf32> to vector<1x1x256xf32>
    tpu.vector_store %arg5[%c0_16, %c0_17, %c0_18], %23 {strides = array<i32>} : memref<1x1x256xf32, #tpu.memory_space<vmem>>, vector<1x1x256xf32>,
    return
  }
  func.func @transform_0(%arg0: i32, %arg1: i32) -> (i32, i32, i32) {
    %c0_i32 = arith.constant 0 : i32
    %c0_i32_0 = arith.constant 0 : i32
    return %arg0, %arg1, %c0_i32 : i32, i32, i32
  }
  func.func @transform_1(%arg0: i32, %arg1: i32) -> (i32, i32) {
    %c0_i32 = arith.constant 0 : i32
    %c0_i32_0 = arith.constant 0 : i32
    %c0_i32_1 = arith.constant 0 : i32
    return %c0_i32, %c0_i32_0 : i32, i32
  }
  func.func @transform_2(%arg0: i32, %arg1: i32) -> (i32, i32, i32) {
    %c0_i32 = arith.constant 0 : i32
    %c0_i32_0 = arith.constant 0 : i32
    %c0_i32_1 = arith.constant 0 : i32
    return %arg0, %c0_i32, %c0_i32_0 : i32, i32, i32
  }
  func.func @transform_3(%arg0: i32, %arg1: i32) -> (i32, i32, i32) {
    %c0_i32 = arith.constant 0 : i32
    %c0_i32_0 = arith.constant 0 : i32
    %c0_i32_1 = arith.constant 0 : i32
    return %arg0, %c0_i32, %c0_i32_0 : i32, i32, i32
  }
}

module attributes {stable_mosaic.version = 11 : i64} {
  func.func @kernel(%arg0: i32, %arg1: i32, %arg2: memref<1x2x256x128xbf16, #tpu.memory_space<vmem>>, %arg3: memref<128x256xbf16, #tpu.memory_space<vmem>>, %arg4: memref<1x1x256xf32, #tpu.memory_space<vmem>>, %arg5: memref<1x1x256xf32, #tpu.memory_space<vmem>>, %arg6: memref<1x256xf32, #tpu.memory_space<vmem>>, %arg7: memref<1x256xf32, #tpu.memory_space<vmem>>, %arg8: memref<1x2x256xbf16, #tpu.memory_space<vmem>>) attributes {dimension_semantics = [#tpu.dimension_semantics<parallel>, #tpu.dimension_semantics<parallel>], iteration_bounds = array<i64: 2, 1>, scalar_prefetch = 0 : i64, scratch_operands = 0 : i64, tpu.core_type = #tpu.core_type<tc>, window_params = [{transform_indices = @transform_0, window_bounds = array<i64: 1, 2, 256, 128>}, {pipeline_mode = #tpu.pipeline_mode<synchronous>, transform_indices = @transform_1, window_bounds = array<i64: 128, 256>}, {transform_indices = @transform_2, window_bounds = array<i64: 1, 1, 256>}, {transform_indices = @transform_3, window_bounds = array<i64: 1, 1, 256>}, {pipeline_mode = #tpu.pipeline_mode<synchronous>, transform_indices = @transform_4, window_bounds = array<i64: 1, 256>}, {pipeline_mode = #tpu.pipeline_mode<synchronous>, transform_indices = @transform_5, window_bounds = array<i64: 1, 256>}, {transform_indices = @transform_6, window_bounds = array<i64: 1, 2, 256>}]} {
    %c0 = arith.constant 0 : index
    %c0_0 = arith.constant 0 : index
    %c0_1 = arith.constant 0 : index
    %c0_2 = arith.constant 0 : index
    %0 = vector.load %arg2[%c0, %c0_0, %c0_1, %c0_2] : memref<1x2x256x128xbf16, #tpu.memory_space<vmem>>, vector<1x2x256x128xbf16>
    %1 = vector.shape_cast %0 : vector<1x2x256x128xbf16> to vector<512x128xbf16>
    %c0_3 = arith.constant 0 : index
    %c0_4 = arith.constant 0 : index
    %2 = vector.load %arg3[%c0_3, %c0_4] : memref<128x256xbf16, #tpu.memory_space<vmem>>, vector<128x256xbf16>
    %cst = arith.constant dense<0.000000e+00> : vector<512x256xf32>
    %3 = tpu.matmul %1, %2, %cst {dimension_numbers = #tpu.dot_dimension_numbers<[1], [0], [0], [1], [0, 0, 1, 1], [], []>} : vector<512x128xbf16>, vector<128x256xbf16>, vector<512x256xf32> -> vector<512x256xf32>
    %c0_5 = arith.constant 0 : index
    %c0_6 = arith.constant 0 : index
    %c0_7 = arith.constant 0 : index
    %4 = vector.load %arg4[%c0_5, %c0_6, %c0_7] : memref<1x1x256xf32, #tpu.memory_space<vmem>>, vector<1x1x256xf32>
    %5 = vector.shape_cast %4 : vector<1x1x256xf32> to vector<1x256xf32>
    %cst_8 = arith.constant 0.001953125 : f32
    %6 = vector.broadcast %cst_8 : f32 to vector<1x256xf32>
    %7 = arith.mulf %5, %6 : vector<1x256xf32>
    %c0_9 = arith.constant 0 : index
    %c0_10 = arith.constant 0 : index
    %c0_11 = arith.constant 0 : index
    %8 = vector.load %arg5[%c0_9, %c0_10, %c0_11] : memref<1x1x256xf32, #tpu.memory_space<vmem>>, vector<1x1x256xf32>
    %9 = vector.shape_cast %8 : vector<1x1x256xf32> to vector<1x256xf32>
    %cst_12 = arith.constant 0.001953125 : f32
    %10 = vector.broadcast %cst_12 : f32 to vector<1x256xf32>
    %11 = arith.mulf %9, %10 : vector<1x256xf32>
    %12 = arith.mulf %7, %7 : vector<1x256xf32>
    %13 = arith.subf %11, %12 : vector<1x256xf32>
    %cst_13 = arith.constant 0.000000e+00 : f32
    %14 = vector.broadcast %cst_13 : f32 to vector<1x256xf32>
    %15 = arith.maximumf %13, %14 : vector<1x256xf32>
    %c0_14 = arith.constant 0 : index
    %c0_15 = arith.constant 0 : index
    %16 = vector.load %arg6[%c0_14, %c0_15] : memref<1x256xf32, #tpu.memory_space<vmem>>, vector<1x256xf32>
    %cst_16 = arith.constant 9.99999974E-6 : f32
    %17 = vector.broadcast %cst_16 : f32 to vector<1x256xf32>
    %18 = arith.addf %15, %17 : vector<1x256xf32>
    %19 = math.rsqrt %18 : vector<1x256xf32>
    %20 = arith.mulf %16, %19 : vector<1x256xf32>
    %c0_17 = arith.constant 0 : index
    %c0_18 = arith.constant 0 : index
    %21 = vector.load %arg7[%c0_17, %c0_18] : memref<1x256xf32, #tpu.memory_space<vmem>>, vector<1x256xf32>
    %22 = arith.mulf %7, %20 : vector<1x256xf32>
    %23 = arith.subf %21, %22 : vector<1x256xf32>
    %24 = vector.broadcast %20 : vector<1x256xf32> to vector<512x256xf32>
    %25 = arith.mulf %3, %24 : vector<512x256xf32>
    %26 = vector.broadcast %23 : vector<1x256xf32> to vector<512x256xf32>
    %27 = arith.addf %25, %26 : vector<512x256xf32>
    %cst_19 = arith.constant 0.000000e+00 : f32
    %28 = vector.broadcast %cst_19 : f32 to vector<512x256xf32>
    %29 = arith.maximumf %27, %28 : vector<512x256xf32>
    %30 = vector.shape_cast %29 : vector<512x256xf32> to vector<2x256x256xf32>
    %cst_20 = arith.constant dense<0.000000e+00> : vector<2x256xf32>
    %31 = vector.multi_reduction <add>, %30, %cst_20 [1] : vector<2x256x256xf32> to vector<2x256xf32>
    %cst_21 = arith.constant 2.560000e+02 : f32
    %32 = vector.broadcast %cst_21 : f32 to vector<2x256xf32>
    %33 = arith.divf %31, %32 : vector<2x256xf32>
    %34 = arith.truncf %33 : vector<2x256xf32> to vector<2x256xbf16>
    %c0_22 = arith.constant 0 : index
    %c0_23 = arith.constant 0 : index
    %c0_24 = arith.constant 0 : index
    %35 = vector.load %arg8[%c0_22, %c0_23, %c0_24] : memref<1x2x256xbf16, #tpu.memory_space<vmem>>, vector<1x2x256xbf16>
    %36 = vector.shape_cast %35 : vector<1x2x256xbf16> to vector<2x256xbf16>
    %37 = vector.shape_cast %34 : vector<2x256xbf16> to vector<1x2x256xbf16>
    tpu.vector_store %arg8[%c0_22, %c0_23, %c0_24], %37 {strides = array<i32>} : memref<1x2x256xbf16, #tpu.memory_space<vmem>>, vector<1x2x256xbf16>,
    return
  }
  func.func @transform_0(%arg0: i32, %arg1: i32) -> (i32, i32, i32, i32) {
    %c0_i32 = arith.constant 0 : i32
    %c0_i32_0 = arith.constant 0 : i32
    %c0_i32_1 = arith.constant 0 : i32
    return %arg0, %arg1, %c0_i32, %c0_i32_0 : i32, i32, i32, i32
  }
  func.func @transform_1(%arg0: i32, %arg1: i32) -> (i32, i32) {
    %c0_i32 = arith.constant 0 : i32
    %c0_i32_0 = arith.constant 0 : i32
    %c0_i32_1 = arith.constant 0 : i32
    return %c0_i32, %c0_i32_0 : i32, i32
  }
  func.func @transform_2(%arg0: i32, %arg1: i32) -> (i32, i32, i32) {
    %c0_i32 = arith.constant 0 : i32
    %c0_i32_0 = arith.constant 0 : i32
    %c0_i32_1 = arith.constant 0 : i32
    return %arg0, %c0_i32, %c0_i32_0 : i32, i32, i32
  }
  func.func @transform_3(%arg0: i32, %arg1: i32) -> (i32, i32, i32) {
    %c0_i32 = arith.constant 0 : i32
    %c0_i32_0 = arith.constant 0 : i32
    %c0_i32_1 = arith.constant 0 : i32
    return %arg0, %c0_i32, %c0_i32_0 : i32, i32, i32
  }
  func.func @transform_4(%arg0: i32, %arg1: i32) -> (i32, i32) {
    %c0_i32 = arith.constant 0 : i32
    %c0_i32_0 = arith.constant 0 : i32
    %c0_i32_1 = arith.constant 0 : i32
    return %c0_i32, %c0_i32_0 : i32, i32
  }
  func.func @transform_5(%arg0: i32, %arg1: i32) -> (i32, i32) {
    %c0_i32 = arith.constant 0 : i32
    %c0_i32_0 = arith.constant 0 : i32
    %c0_i32_1 = arith.constant 0 : i32
    return %c0_i32, %c0_i32_0 : i32, i32
  }
  func.func @transform_6(%arg0: i32, %arg1: i32) -> (i32, i32, i32) {
    %c0_i32 = arith.constant 0 : i32
    %c0_i32_0 = arith.constant 0 : i32
    return %arg0, %arg1, %c0_i32 : i32, i32, i32
  }
}

module attributes {stable_mosaic.version = 11 : i64} {
  func.func @kernel(%arg0: i32, %arg1: i32, %arg2: memref<4x256xbf16, #tpu.memory_space<vmem>>, %arg3: memref<256x256xbf16, #tpu.memory_space<vmem>>, %arg4: memref<1x256xf32, #tpu.memory_space<vmem>>, %arg5: memref<1x256xf32, #tpu.memory_space<vmem>>, %arg6: memref<4x256xbf16, #tpu.memory_space<vmem>>, %arg7: memref<4x256xf32, #tpu.memory_space<vmem>>) attributes {dimension_semantics = [#tpu.dimension_semantics<parallel>, #tpu.dimension_semantics<arbitrary>], iteration_bounds = array<i64: 2, 1>, scalar_prefetch = 0 : i64, scratch_operands = 1 : i64, tpu.core_type = #tpu.core_type<tc>, window_params = [{pipeline_mode = #tpu.pipeline_mode<synchronous>, transform_indices = @transform_0, window_bounds = array<i64: 4, 256>}, {transform_indices = @transform_1, window_bounds = array<i64: 256, 256>}, {transform_indices = @transform_2, window_bounds = array<i64: 1, 256>}, {transform_indices = @transform_3, window_bounds = array<i64: 1, 256>}, {transform_indices = @transform_4, window_bounds = array<i64: 4, 256>}]} {
    %c0_i32 = arith.constant 0 : i32
    %0 = arith.cmpi eq, %arg1, %c0_i32 : i32
    %1 = arith.extui %0 : i1 to i32
    %c0_i32_0 = arith.constant 0 : i32
    %2 = arith.cmpi ne, %1, %c0_i32_0 : i32
    scf.if %2 {
      %cst_9 = arith.constant 0.000000e+00 : f32
      %15 = vector.broadcast %cst_9 : f32 to vector<4x256xf32>
      %c0_10 = arith.constant 0 : index
      %c0_11 = arith.constant 0 : index
      %16 = vector.load %arg7[%c0_10, %c0_11] : memref<4x256xf32, #tpu.memory_space<vmem>>, vector<4x256xf32>
      tpu.vector_store %arg7[%c0_10, %c0_11], %15 {strides = array<i32>} : memref<4x256xf32, #tpu.memory_space<vmem>>, vector<4x256xf32>,
    } else {
    }
    %c256_i32 = arith.constant 256 : i32
    %3 = arith.muli %arg1, %c256_i32 : i32
    %4 = tpu.assume_multiple %3, 256 : i32
    %c0 = arith.constant 0 : index
    %5 = arith.index_cast %4 : i32 to index
    %6 = vector.load %arg2[%c0, %5] : memref<4x256xbf16, #tpu.memory_space<vmem>>, vector<4x256xbf16>
    %c0_1 = arith.constant 0 : index
    %c0_2 = arith.constant 0 : index
    %7 = vector.load %arg7[%c0_1, %c0_2] : memref<4x256xf32, #tpu.memory_space<vmem>>, vector<4x256xf32>
    %c0_3 = arith.constant 0 : index
    %c0_4 = arith.constant 0 : index
    %8 = vector.load %arg3[%c0_3, %c0_4] : memref<256x256xbf16, #tpu.memory_space<vmem>>, vector<256x256xbf16>
    %cst = arith.constant dense<0.000000e+00> : vector<4x256xf32>
    %9 = tpu.matmul %6, %8, %cst {dimension_numbers = #tpu.dot_dimension_numbers<[1], [0], [0], [1], [0, 0, 1, 1], [], []>} : vector<4x256xbf16>, vector<256x256xbf16>, vector<4x256xf32> -> vector<4x256xf32>
    %10 = arith.addf %7, %9 : vector<4x256xf32>
    %c0_5 = arith.constant 0 : index
    %c0_6 = arith.constant 0 : index
    %11 = vector.load %arg7[%c0_5, %c0_6] : memref<4x256xf32, #tpu.memory_space<vmem>>, vector<4x256xf32>
    tpu.vector_store %arg7[%c0_5, %c0_6], %10 {strides = array<i32>} : memref<4x256xf32, #tpu.memory_space<vmem>>, vector<4x256xf32>,
    %c0_i32_7 = arith.constant 0 : i32
    %12 = arith.cmpi eq, %arg1, %c0_i32_7 : i32
    %13 = arith.extui %12 : i1 to i32
    %c0_i32_8 = arith.constant 0 : i32
    %14 = arith.cmpi ne, %13, %c0_i32_8 : i32
    scf.if %14 {
      %c0_9 = arith.constant 0 : index
      %c0_10 = arith.constant 0 : index
      %15 = vector.load %arg7[%c0_9, %c0_10] : memref<4x256xf32, #tpu.memory_space<vmem>>, vector<4x256xf32>
      %16 = vector.extract_strided_slice %15 {offsets = [0, 0], sizes = [2, 256], strides = [1, 1]} : vector<4x256xf32> to vector<2x256xf32>
      %cst_11 = arith.constant dense<0.000000e+00> : vector<256xf32>
      %17 = vector.multi_reduction <add>, %16, %cst_11 [0] : vector<2x256xf32> to vector<256xf32>
      %18 = vector.shape_cast %17 : vector<256xf32> to vector<1x256xf32>
      %cst_12 = arith.constant 2.000000e+00 : f32
      %19 = vector.broadcast %cst_12 : f32 to vector<1x256xf32>
      %20 = arith.divf %18, %19 : vector<1x256xf32>
      %21 = vector.broadcast %20 : vector<1x256xf32> to vector<2x256xf32>
      %22 = arith.subf %16, %21 : vector<2x256xf32>
      %23 = arith.mulf %22, %22 : vector<2x256xf32>
      %cst_13 = arith.constant dense<0.000000e+00> : vector<256xf32>
      %24 = vector.multi_reduction <add>, %23, %cst_13 [0] : vector<2x256xf32> to vector<256xf32>
      %25 = vector.shape_cast %24 : vector<256xf32> to vector<1x256xf32>
      %cst_14 = arith.constant 2.000000e+00 : f32
      %26 = vector.broadcast %cst_14 : f32 to vector<1x256xf32>
      %27 = arith.divf %25, %26 : vector<1x256xf32>
      %28 = vector.broadcast %20 : vector<1x256xf32> to vector<2x256xf32>
      %29 = arith.subf %16, %28 : vector<2x256xf32>
      %cst_15 = arith.constant 9.99999974E-6 : f32
      %30 = vector.broadcast %cst_15 : f32 to vector<1x256xf32>
      %31 = arith.addf %27, %30 : vector<1x256xf32>
      %32 = math.rsqrt %31 : vector<1x256xf32>
      %33 = vector.broadcast %32 : vector<1x256xf32> to vector<2x256xf32>
      %34 = arith.mulf %29, %33 : vector<2x256xf32>
      %c0_16 = arith.constant 0 : index
      %c0_17 = arith.constant 0 : index
      %35 = vector.load %arg4[%c0_16, %c0_17] : memref<1x256xf32, #tpu.memory_space<vmem>>, vector<1x256xf32>
      %36 = vector.broadcast %35 : vector<1x256xf32> to vector<2x256xf32>
      %37 = arith.mulf %34, %36 : vector<2x256xf32>
      %c0_18 = arith.constant 0 : index
      %c0_19 = arith.constant 0 : index
      %38 = vector.load %arg5[%c0_18, %c0_19] : memref<1x256xf32, #tpu.memory_space<vmem>>, vector<1x256xf32>
      %39 = vector.broadcast %38 : vector<1x256xf32> to vector<2x256xf32>
      %40 = arith.addf %37, %39 : vector<2x256xf32>
      %cst_20 = arith.constant 0.000000e+00 : f32
      %41 = vector.broadcast %cst_20 : f32 to vector<2x256xf32>
      %42 = arith.maximumf %40, %41 : vector<2x256xf32>
      %43 = vector.extract_strided_slice %15 {offsets = [2, 0], sizes = [2, 256], strides = [1, 1]} : vector<4x256xf32> to vector<2x256xf32>
      %cst_21 = arith.constant dense<0.000000e+00> : vector<256xf32>
      %44 = vector.multi_reduction <add>, %43, %cst_21 [0] : vector<2x256xf32> to vector<256xf32>
      %45 = vector.shape_cast %44 : vector<256xf32> to vector<1x256xf32>
      %cst_22 = arith.constant 2.000000e+00 : f32
      %46 = vector.broadcast %cst_22 : f32 to vector<1x256xf32>
      %47 = arith.divf %45, %46 : vector<1x256xf32>
      %48 = vector.broadcast %47 : vector<1x256xf32> to vector<2x256xf32>
      %49 = arith.subf %43, %48 : vector<2x256xf32>
      %50 = arith.mulf %49, %49 : vector<2x256xf32>
      %cst_23 = arith.constant dense<0.000000e+00> : vector<256xf32>
      %51 = vector.multi_reduction <add>, %50, %cst_23 [0] : vector<2x256xf32> to vector<256xf32>
      %52 = vector.shape_cast %51 : vector<256xf32> to vector<1x256xf32>
      %cst_24 = arith.constant 2.000000e+00 : f32
      %53 = vector.broadcast %cst_24 : f32 to vector<1x256xf32>
      %54 = arith.divf %52, %53 : vector<1x256xf32>
      %55 = vector.broadcast %47 : vector<1x256xf32> to vector<2x256xf32>
      %56 = arith.subf %43, %55 : vector<2x256xf32>
      %cst_25 = arith.constant 9.99999974E-6 : f32
      %57 = vector.broadcast %cst_25 : f32 to vector<1x256xf32>
      %58 = arith.addf %54, %57 : vector<1x256xf32>
      %59 = math.rsqrt %58 : vector<1x256xf32>
      %60 = vector.broadcast %59 : vector<1x256xf32> to vector<2x256xf32>
      %61 = arith.mulf %56, %60 : vector<2x256xf32>
      %c0_26 = arith.constant 0 : index
      %c0_27 = arith.constant 0 : index
      %62 = vector.load %arg4[%c0_26, %c0_27] : memref<1x256xf32, #tpu.memory_space<vmem>>, vector<1x256xf32>
      %63 = vector.broadcast %62 : vector<1x256xf32> to vector<2x256xf32>
      %64 = arith.mulf %61, %63 : vector<2x256xf32>
      %c0_28 = arith.constant 0 : index
      %c0_29 = arith.constant 0 : index
      %65 = vector.load %arg5[%c0_28, %c0_29] : memref<1x256xf32, #tpu.memory_space<vmem>>, vector<1x256xf32>
      %66 = vector.broadcast %65 : vector<1x256xf32> to vector<2x256xf32>
      %67 = arith.addf %64, %66 : vector<2x256xf32>
      %cst_30 = arith.constant 0.000000e+00 : f32
      %68 = vector.broadcast %cst_30 : f32 to vector<2x256xf32>
      %69 = arith.maximumf %67, %68 : vector<2x256xf32>
      %70 = tpu.concatenate %42, %69 in 0 : vector<2x256xf32>, vector<2x256xf32> -> vector<4x256xf32>
      %71 = arith.truncf %70 : vector<4x256xf32> to vector<4x256xbf16>
      %c0_31 = arith.constant 0 : index
      %c0_32 = arith.constant 0 : index
      %72 = vector.load %arg6[%c0_31, %c0_32] : memref<4x256xbf16, #tpu.memory_space<vmem>>, vector<4x256xbf16>
      tpu.vector_store %arg6[%c0_31, %c0_32], %71 {strides = array<i32>} : memref<4x256xbf16, #tpu.memory_space<vmem>>, vector<4x256xbf16>,
    } else {
    }
    return
  }
  func.func @transform_0(%arg0: i32, %arg1: i32) -> (i32, i32) {
    %c0_i32 = arith.constant 0 : i32
    %c0_i32_0 = arith.constant 0 : i32
    %c0_i32_1 = arith.constant 0 : i32
    return %c0_i32, %c0_i32_0 : i32, i32
  }
  func.func @transform_1(%arg0: i32, %arg1: i32) -> (i32, i32) {
    %c0_i32 = arith.constant 0 : i32
    return %arg1, %arg0 : i32, i32
  }
  func.func @transform_2(%arg0: i32, %arg1: i32) -> (i32, i32) {
    %c0_i32 = arith.constant 0 : i32
    %c0_i32_0 = arith.constant 0 : i32
    return %c0_i32, %arg0 : i32, i32
  }
  func.func @transform_3(%arg0: i32, %arg1: i32) -> (i32, i32) {
    %c0_i32 = arith.constant 0 : i32
    %c0_i32_0 = arith.constant 0 : i32
    return %c0_i32, %arg0 : i32, i32
  }
  func.func @transform_4(%arg0: i32, %arg1: i32) -> (i32, i32) {
    %c0_i32 = arith.constant 0 : i32
    %c0_i32_0 = arith.constant 0 : i32
    return %c0_i32, %arg0 : i32, i32
  }
}

module attributes {stable_mosaic.version = 11 : i64} {
  func.func @kernel(%arg0: i32, %arg1: i32, %arg2: memref<4x512xbf16, #tpu.memory_space<vmem>>, %arg3: memref<256x256xbf16, #tpu.memory_space<vmem>>, %arg4: memref<1x256xf32, #tpu.memory_space<vmem>>, %arg5: memref<1x256xf32, #tpu.memory_space<vmem>>, %arg6: memref<4x256xbf16, #tpu.memory_space<vmem>>, %arg7: memref<4x256xf32, #tpu.memory_space<vmem>>) attributes {dimension_semantics = [#tpu.dimension_semantics<parallel>, #tpu.dimension_semantics<arbitrary>], iteration_bounds = array<i64: 2, 2>, scalar_prefetch = 0 : i64, scratch_operands = 1 : i64, tpu.core_type = #tpu.core_type<tc>, window_params = [{pipeline_mode = #tpu.pipeline_mode<synchronous>, transform_indices = @transform_0, window_bounds = array<i64: 4, 512>}, {transform_indices = @transform_1, window_bounds = array<i64: 256, 256>}, {transform_indices = @transform_2, window_bounds = array<i64: 1, 256>}, {transform_indices = @transform_3, window_bounds = array<i64: 1, 256>}, {transform_indices = @transform_4, window_bounds = array<i64: 4, 256>}]} {
    %c0_i32 = arith.constant 0 : i32
    %0 = arith.cmpi eq, %arg1, %c0_i32 : i32
    %1 = arith.extui %0 : i1 to i32
    %c0_i32_0 = arith.constant 0 : i32
    %2 = arith.cmpi ne, %1, %c0_i32_0 : i32
    scf.if %2 {
      %cst_8 = arith.constant 0.000000e+00 : f32
      %15 = vector.broadcast %cst_8 : f32 to vector<4x256xf32>
      %c0_9 = arith.constant 0 : index
      %c0_10 = arith.constant 0 : index
      %16 = vector.load %arg7[%c0_9, %c0_10] : memref<4x256xf32, #tpu.memory_space<vmem>>, vector<4x256xf32>
      tpu.vector_store %arg7[%c0_9, %c0_10], %15 {strides = array<i32>} : memref<4x256xf32, #tpu.memory_space<vmem>>, vector<4x256xf32>,
    } else {
    }
    %c256_i32 = arith.constant 256 : i32
    %3 = arith.muli %arg1, %c256_i32 : i32
    %4 = tpu.assume_multiple %3, 256 : i32
    %c0 = arith.constant 0 : index
    %5 = arith.index_cast %4 : i32 to index
    %6 = vector.load %arg2[%c0, %5] : memref<4x512xbf16, #tpu.memory_space<vmem>>, vector<4x256xbf16>
    %c0_1 = arith.constant 0 : index
    %c0_2 = arith.constant 0 : index
    %7 = vector.load %arg7[%c0_1, %c0_2] : memref<4x256xf32, #tpu.memory_space<vmem>>, vector<4x256xf32>
    %c0_3 = arith.constant 0 : index
    %c0_4 = arith.constant 0 : index
    %8 = vector.load %arg3[%c0_3, %c0_4] : memref<256x256xbf16, #tpu.memory_space<vmem>>, vector<256x256xbf16>
    %cst = arith.constant dense<0.000000e+00> : vector<4x256xf32>
    %9 = tpu.matmul %6, %8, %cst {dimension_numbers = #tpu.dot_dimension_numbers<[1], [0], [0], [1], [0, 0, 1, 1], [], []>} : vector<4x256xbf16>, vector<256x256xbf16>, vector<4x256xf32> -> vector<4x256xf32>
    %10 = arith.addf %7, %9 : vector<4x256xf32>
    %c0_5 = arith.constant 0 : index
    %c0_6 = arith.constant 0 : index
    %11 = vector.load %arg7[%c0_5, %c0_6] : memref<4x256xf32, #tpu.memory_space<vmem>>, vector<4x256xf32>
    tpu.vector_store %arg7[%c0_5, %c0_6], %10 {strides = array<i32>} : memref<4x256xf32, #tpu.memory_space<vmem>>, vector<4x256xf32>,
    %c1_i32 = arith.constant 1 : i32
    %12 = arith.cmpi eq, %arg1, %c1_i32 : i32
    %13 = arith.extui %12 : i1 to i32
    %c0_i32_7 = arith.constant 0 : i32
    %14 = arith.cmpi ne, %13, %c0_i32_7 : i32
    scf.if %14 {
      %c0_8 = arith.constant 0 : index
      %c0_9 = arith.constant 0 : index
      %15 = vector.load %arg7[%c0_8, %c0_9] : memref<4x256xf32, #tpu.memory_space<vmem>>, vector<4x256xf32>
      %16 = vector.extract_strided_slice %15 {offsets = [0, 0], sizes = [2, 256], strides = [1, 1]} : vector<4x256xf32> to vector<2x256xf32>
      %cst_10 = arith.constant dense<0.000000e+00> : vector<256xf32>
      %17 = vector.multi_reduction <add>, %16, %cst_10 [0] : vector<2x256xf32> to vector<256xf32>
      %18 = vector.shape_cast %17 : vector<256xf32> to vector<1x256xf32>
      %cst_11 = arith.constant 2.000000e+00 : f32
      %19 = vector.broadcast %cst_11 : f32 to vector<1x256xf32>
      %20 = arith.divf %18, %19 : vector<1x256xf32>
      %21 = vector.broadcast %20 : vector<1x256xf32> to vector<2x256xf32>
      %22 = arith.subf %16, %21 : vector<2x256xf32>
      %23 = arith.mulf %22, %22 : vector<2x256xf32>
      %cst_12 = arith.constant dense<0.000000e+00> : vector<256xf32>
      %24 = vector.multi_reduction <add>, %23, %cst_12 [0] : vector<2x256xf32> to vector<256xf32>
      %25 = vector.shape_cast %24 : vector<256xf32> to vector<1x256xf32>
      %cst_13 = arith.constant 2.000000e+00 : f32
      %26 = vector.broadcast %cst_13 : f32 to vector<1x256xf32>
      %27 = arith.divf %25, %26 : vector<1x256xf32>
      %28 = vector.broadcast %20 : vector<1x256xf32> to vector<2x256xf32>
      %29 = arith.subf %16, %28 : vector<2x256xf32>
      %cst_14 = arith.constant 9.99999974E-6 : f32
      %30 = vector.broadcast %cst_14 : f32 to vector<1x256xf32>
      %31 = arith.addf %27, %30 : vector<1x256xf32>
      %32 = math.rsqrt %31 : vector<1x256xf32>
      %33 = vector.broadcast %32 : vector<1x256xf32> to vector<2x256xf32>
      %34 = arith.mulf %29, %33 : vector<2x256xf32>
      %c0_15 = arith.constant 0 : index
      %c0_16 = arith.constant 0 : index
      %35 = vector.load %arg4[%c0_15, %c0_16] : memref<1x256xf32, #tpu.memory_space<vmem>>, vector<1x256xf32>
      %36 = vector.broadcast %35 : vector<1x256xf32> to vector<2x256xf32>
      %37 = arith.mulf %34, %36 : vector<2x256xf32>
      %c0_17 = arith.constant 0 : index
      %c0_18 = arith.constant 0 : index
      %38 = vector.load %arg5[%c0_17, %c0_18] : memref<1x256xf32, #tpu.memory_space<vmem>>, vector<1x256xf32>
      %39 = vector.broadcast %38 : vector<1x256xf32> to vector<2x256xf32>
      %40 = arith.addf %37, %39 : vector<2x256xf32>
      %cst_19 = arith.constant 0.000000e+00 : f32
      %41 = vector.broadcast %cst_19 : f32 to vector<2x256xf32>
      %42 = arith.maximumf %40, %41 : vector<2x256xf32>
      %43 = vector.extract_strided_slice %15 {offsets = [2, 0], sizes = [2, 256], strides = [1, 1]} : vector<4x256xf32> to vector<2x256xf32>
      %cst_20 = arith.constant dense<0.000000e+00> : vector<256xf32>
      %44 = vector.multi_reduction <add>, %43, %cst_20 [0] : vector<2x256xf32> to vector<256xf32>
      %45 = vector.shape_cast %44 : vector<256xf32> to vector<1x256xf32>
      %cst_21 = arith.constant 2.000000e+00 : f32
      %46 = vector.broadcast %cst_21 : f32 to vector<1x256xf32>
      %47 = arith.divf %45, %46 : vector<1x256xf32>
      %48 = vector.broadcast %47 : vector<1x256xf32> to vector<2x256xf32>
      %49 = arith.subf %43, %48 : vector<2x256xf32>
      %50 = arith.mulf %49, %49 : vector<2x256xf32>
      %cst_22 = arith.constant dense<0.000000e+00> : vector<256xf32>
      %51 = vector.multi_reduction <add>, %50, %cst_22 [0] : vector<2x256xf32> to vector<256xf32>
      %52 = vector.shape_cast %51 : vector<256xf32> to vector<1x256xf32>
      %cst_23 = arith.constant 2.000000e+00 : f32
      %53 = vector.broadcast %cst_23 : f32 to vector<1x256xf32>
      %54 = arith.divf %52, %53 : vector<1x256xf32>
      %55 = vector.broadcast %47 : vector<1x256xf32> to vector<2x256xf32>
      %56 = arith.subf %43, %55 : vector<2x256xf32>
      %cst_24 = arith.constant 9.99999974E-6 : f32
      %57 = vector.broadcast %cst_24 : f32 to vector<1x256xf32>
      %58 = arith.addf %54, %57 : vector<1x256xf32>
      %59 = math.rsqrt %58 : vector<1x256xf32>
      %60 = vector.broadcast %59 : vector<1x256xf32> to vector<2x256xf32>
      %61 = arith.mulf %56, %60 : vector<2x256xf32>
      %c0_25 = arith.constant 0 : index
      %c0_26 = arith.constant 0 : index
      %62 = vector.load %arg4[%c0_25, %c0_26] : memref<1x256xf32, #tpu.memory_space<vmem>>, vector<1x256xf32>
      %63 = vector.broadcast %62 : vector<1x256xf32> to vector<2x256xf32>
      %64 = arith.mulf %61, %63 : vector<2x256xf32>
      %c0_27 = arith.constant 0 : index
      %c0_28 = arith.constant 0 : index
      %65 = vector.load %arg5[%c0_27, %c0_28] : memref<1x256xf32, #tpu.memory_space<vmem>>, vector<1x256xf32>
      %66 = vector.broadcast %65 : vector<1x256xf32> to vector<2x256xf32>
      %67 = arith.addf %64, %66 : vector<2x256xf32>
      %cst_29 = arith.constant 0.000000e+00 : f32
      %68 = vector.broadcast %cst_29 : f32 to vector<2x256xf32>
      %69 = arith.maximumf %67, %68 : vector<2x256xf32>
      %70 = tpu.concatenate %42, %69 in 0 : vector<2x256xf32>, vector<2x256xf32> -> vector<4x256xf32>
      %71 = arith.truncf %70 : vector<4x256xf32> to vector<4x256xbf16>
      %c0_30 = arith.constant 0 : index
      %c0_31 = arith.constant 0 : index
      %72 = vector.load %arg6[%c0_30, %c0_31] : memref<4x256xbf16, #tpu.memory_space<vmem>>, vector<4x256xbf16>
      tpu.vector_store %arg6[%c0_30, %c0_31], %71 {strides = array<i32>} : memref<4x256xbf16, #tpu.memory_space<vmem>>, vector<4x256xbf16>,
    } else {
    }
    return
  }
  func.func @transform_0(%arg0: i32, %arg1: i32) -> (i32, i32) {
    %c0_i32 = arith.constant 0 : i32
    %c0_i32_0 = arith.constant 0 : i32
    %c0_i32_1 = arith.constant 0 : i32
    return %c0_i32, %c0_i32_0 : i32, i32
  }
  func.func @transform_1(%arg0: i32, %arg1: i32) -> (i32, i32) {
    %c0_i32 = arith.constant 0 : i32
    return %arg1, %arg0 : i32, i32
  }
  func.func @transform_2(%arg0: i32, %arg1: i32) -> (i32, i32) {
    %c0_i32 = arith.constant 0 : i32
    %c0_i32_0 = arith.constant 0 : i32
    return %c0_i32, %arg0 : i32, i32
  }
  func.func @transform_3(%arg0: i32, %arg1: i32) -> (i32, i32) {
    %c0_i32 = arith.constant 0 : i32
    %c0_i32_0 = arith.constant 0 : i32
    return %c0_i32, %arg0 : i32, i32
  }
  func.func @transform_4(%arg0: i32, %arg1: i32) -> (i32, i32) {
    %c0_i32 = arith.constant 0 : i32
    %c0_i32_0 = arith.constant 0 : i32
    return %c0_i32, %arg0 : i32, i32
  }
}

module attributes {stable_mosaic.version = 11 : i64} {
  func.func @kernel(%arg0: i32, %arg1: i32, %arg2: memref<4x512xbf16, #tpu.memory_space<vmem>>, %arg3: memref<256x256xbf16, #tpu.memory_space<vmem>>, %arg4: memref<1x256xf32, #tpu.memory_space<vmem>>, %arg5: memref<1x256xf32, #tpu.memory_space<vmem>>, %arg6: memref<4x256xf32, #tpu.memory_space<vmem>>, %arg7: memref<4x256xf32, #tpu.memory_space<vmem>>) attributes {dimension_semantics = [#tpu.dimension_semantics<parallel>, #tpu.dimension_semantics<arbitrary>], iteration_bounds = array<i64: 2, 2>, scalar_prefetch = 0 : i64, scratch_operands = 1 : i64, tpu.core_type = #tpu.core_type<tc>, window_params = [{pipeline_mode = #tpu.pipeline_mode<synchronous>, transform_indices = @transform_0, window_bounds = array<i64: 4, 512>}, {transform_indices = @transform_1, window_bounds = array<i64: 256, 256>}, {transform_indices = @transform_2, window_bounds = array<i64: 1, 256>}, {transform_indices = @transform_3, window_bounds = array<i64: 1, 256>}, {transform_indices = @transform_4, window_bounds = array<i64: 4, 256>}]} {
    %c0_i32 = arith.constant 0 : i32
    %0 = arith.cmpi eq, %arg1, %c0_i32 : i32
    %1 = arith.extui %0 : i1 to i32
    %c0_i32_0 = arith.constant 0 : i32
    %2 = arith.cmpi ne, %1, %c0_i32_0 : i32
    scf.if %2 {
      %cst_8 = arith.constant 0.000000e+00 : f32
      %15 = vector.broadcast %cst_8 : f32 to vector<4x256xf32>
      %c0_9 = arith.constant 0 : index
      %c0_10 = arith.constant 0 : index
      %16 = vector.load %arg7[%c0_9, %c0_10] : memref<4x256xf32, #tpu.memory_space<vmem>>, vector<4x256xf32>
      tpu.vector_store %arg7[%c0_9, %c0_10], %15 {strides = array<i32>} : memref<4x256xf32, #tpu.memory_space<vmem>>, vector<4x256xf32>,
    } else {
    }
    %c256_i32 = arith.constant 256 : i32
    %3 = arith.muli %arg1, %c256_i32 : i32
    %4 = tpu.assume_multiple %3, 256 : i32
    %c0 = arith.constant 0 : index
    %5 = arith.index_cast %4 : i32 to index
    %6 = vector.load %arg2[%c0, %5] : memref<4x512xbf16, #tpu.memory_space<vmem>>, vector<4x256xbf16>
    %c0_1 = arith.constant 0 : index
    %c0_2 = arith.constant 0 : index
    %7 = vector.load %arg7[%c0_1, %c0_2] : memref<4x256xf32, #tpu.memory_space<vmem>>, vector<4x256xf32>
    %c0_3 = arith.constant 0 : index
    %c0_4 = arith.constant 0 : index
    %8 = vector.load %arg3[%c0_3, %c0_4] : memref<256x256xbf16, #tpu.memory_space<vmem>>, vector<256x256xbf16>
    %cst = arith.constant dense<0.000000e+00> : vector<4x256xf32>
    %9 = tpu.matmul %6, %8, %cst {dimension_numbers = #tpu.dot_dimension_numbers<[1], [0], [0], [1], [0, 0, 1, 1], [], []>} : vector<4x256xbf16>, vector<256x256xbf16>, vector<4x256xf32> -> vector<4x256xf32>
    %10 = arith.addf %7, %9 : vector<4x256xf32>
    %c0_5 = arith.constant 0 : index
    %c0_6 = arith.constant 0 : index
    %11 = vector.load %arg7[%c0_5, %c0_6] : memref<4x256xf32, #tpu.memory_space<vmem>>, vector<4x256xf32>
    tpu.vector_store %arg7[%c0_5, %c0_6], %10 {strides = array<i32>} : memref<4x256xf32, #tpu.memory_space<vmem>>, vector<4x256xf32>,
    %c1_i32 = arith.constant 1 : i32
    %12 = arith.cmpi eq, %arg1, %c1_i32 : i32
    %13 = arith.extui %12 : i1 to i32
    %c0_i32_7 = arith.constant 0 : i32
    %14 = arith.cmpi ne, %13, %c0_i32_7 : i32
    scf.if %14 {
      %c0_8 = arith.constant 0 : index
      %c0_9 = arith.constant 0 : index
      %15 = vector.load %arg7[%c0_8, %c0_9] : memref<4x256xf32, #tpu.memory_space<vmem>>, vector<4x256xf32>
      %16 = vector.extract_strided_slice %15 {offsets = [0, 0], sizes = [2, 256], strides = [1, 1]} : vector<4x256xf32> to vector<2x256xf32>
      %cst_10 = arith.constant dense<0.000000e+00> : vector<256xf32>
      %17 = vector.multi_reduction <add>, %16, %cst_10 [0] : vector<2x256xf32> to vector<256xf32>
      %18 = vector.shape_cast %17 : vector<256xf32> to vector<1x256xf32>
      %cst_11 = arith.constant 2.000000e+00 : f32
      %19 = vector.broadcast %cst_11 : f32 to vector<1x256xf32>
      %20 = arith.divf %18, %19 : vector<1x256xf32>
      %21 = vector.broadcast %20 : vector<1x256xf32> to vector<2x256xf32>
      %22 = arith.subf %16, %21 : vector<2x256xf32>
      %23 = arith.mulf %22, %22 : vector<2x256xf32>
      %cst_12 = arith.constant dense<0.000000e+00> : vector<256xf32>
      %24 = vector.multi_reduction <add>, %23, %cst_12 [0] : vector<2x256xf32> to vector<256xf32>
      %25 = vector.shape_cast %24 : vector<256xf32> to vector<1x256xf32>
      %cst_13 = arith.constant 2.000000e+00 : f32
      %26 = vector.broadcast %cst_13 : f32 to vector<1x256xf32>
      %27 = arith.divf %25, %26 : vector<1x256xf32>
      %28 = vector.broadcast %20 : vector<1x256xf32> to vector<2x256xf32>
      %29 = arith.subf %16, %28 : vector<2x256xf32>
      %cst_14 = arith.constant 9.99999974E-6 : f32
      %30 = vector.broadcast %cst_14 : f32 to vector<1x256xf32>
      %31 = arith.addf %27, %30 : vector<1x256xf32>
      %32 = math.rsqrt %31 : vector<1x256xf32>
      %33 = vector.broadcast %32 : vector<1x256xf32> to vector<2x256xf32>
      %34 = arith.mulf %29, %33 : vector<2x256xf32>
      %c0_15 = arith.constant 0 : index
      %c0_16 = arith.constant 0 : index
      %35 = vector.load %arg4[%c0_15, %c0_16] : memref<1x256xf32, #tpu.memory_space<vmem>>, vector<1x256xf32>
      %36 = vector.broadcast %35 : vector<1x256xf32> to vector<2x256xf32>
      %37 = arith.mulf %34, %36 : vector<2x256xf32>
      %c0_17 = arith.constant 0 : index
      %c0_18 = arith.constant 0 : index
      %38 = vector.load %arg5[%c0_17, %c0_18] : memref<1x256xf32, #tpu.memory_space<vmem>>, vector<1x256xf32>
      %39 = vector.broadcast %38 : vector<1x256xf32> to vector<2x256xf32>
      %40 = arith.addf %37, %39 : vector<2x256xf32>
      %41 = vector.extract_strided_slice %15 {offsets = [2, 0], sizes = [2, 256], strides = [1, 1]} : vector<4x256xf32> to vector<2x256xf32>
      %cst_19 = arith.constant dense<0.000000e+00> : vector<256xf32>
      %42 = vector.multi_reduction <add>, %41, %cst_19 [0] : vector<2x256xf32> to vector<256xf32>
      %43 = vector.shape_cast %42 : vector<256xf32> to vector<1x256xf32>
      %cst_20 = arith.constant 2.000000e+00 : f32
      %44 = vector.broadcast %cst_20 : f32 to vector<1x256xf32>
      %45 = arith.divf %43, %44 : vector<1x256xf32>
      %46 = vector.broadcast %45 : vector<1x256xf32> to vector<2x256xf32>
      %47 = arith.subf %41, %46 : vector<2x256xf32>
      %48 = arith.mulf %47, %47 : vector<2x256xf32>
      %cst_21 = arith.constant dense<0.000000e+00> : vector<256xf32>
      %49 = vector.multi_reduction <add>, %48, %cst_21 [0] : vector<2x256xf32> to vector<256xf32>
      %50 = vector.shape_cast %49 : vector<256xf32> to vector<1x256xf32>
      %cst_22 = arith.constant 2.000000e+00 : f32
      %51 = vector.broadcast %cst_22 : f32 to vector<1x256xf32>
      %52 = arith.divf %50, %51 : vector<1x256xf32>
      %53 = vector.broadcast %45 : vector<1x256xf32> to vector<2x256xf32>
      %54 = arith.subf %41, %53 : vector<2x256xf32>
      %cst_23 = arith.constant 9.99999974E-6 : f32
      %55 = vector.broadcast %cst_23 : f32 to vector<1x256xf32>
      %56 = arith.addf %52, %55 : vector<1x256xf32>
      %57 = math.rsqrt %56 : vector<1x256xf32>
      %58 = vector.broadcast %57 : vector<1x256xf32> to vector<2x256xf32>
      %59 = arith.mulf %54, %58 : vector<2x256xf32>
      %c0_24 = arith.constant 0 : index
      %c0_25 = arith.constant 0 : index
      %60 = vector.load %arg4[%c0_24, %c0_25] : memref<1x256xf32, #tpu.memory_space<vmem>>, vector<1x256xf32>
      %61 = vector.broadcast %60 : vector<1x256xf32> to vector<2x256xf32>
      %62 = arith.mulf %59, %61 : vector<2x256xf32>
      %c0_26 = arith.constant 0 : index
      %c0_27 = arith.constant 0 : index
      %63 = vector.load %arg5[%c0_26, %c0_27] : memref<1x256xf32, #tpu.memory_space<vmem>>, vector<1x256xf32>
      %64 = vector.broadcast %63 : vector<1x256xf32> to vector<2x256xf32>
      %65 = arith.addf %62, %64 : vector<2x256xf32>
      %66 = tpu.concatenate %40, %65 in 0 : vector<2x256xf32>, vector<2x256xf32> -> vector<4x256xf32>
      %c0_28 = arith.constant 0 : index
      %c0_29 = arith.constant 0 : index
      %67 = vector.load %arg6[%c0_28, %c0_29] : memref<4x256xf32, #tpu.memory_space<vmem>>, vector<4x256xf32>
      tpu.vector_store %arg6[%c0_28, %c0_29], %66 {strides = array<i32>} : memref<4x256xf32, #tpu.memory_space<vmem>>, vector<4x256xf32>,
    } else {
    }
    return
  }
  func.func @transform_0(%arg0: i32, %arg1: i32) -> (i32, i32) {
    %c0_i32 = arith.constant 0 : i32
    %c0_i32_0 = arith.constant 0 : i32
    %c0_i32_1 = arith.constant 0 : i32
    return %c0_i32, %c0_i32_0 : i32, i32
  }
  func.func @transform_1(%arg0: i32, %arg1: i32) -> (i32, i32) {
    %c0_i32 = arith.constant 0 : i32
    return %arg1, %arg0 : i32, i32
  }
  func.func @transform_2(%arg0: i32, %arg1: i32) -> (i32, i32) {
    %c0_i32 = arith.constant 0 : i32
    %c0_i32_0 = arith.constant 0 : i32
    return %c0_i32, %arg0 : i32, i32
  }
  func.func @transform_3(%arg0: i32, %arg1: i32) -> (i32, i32) {
    %c0_i32 = arith.constant 0 : i32
    %c0_i32_0 = arith.constant 0 : i32
    return %c0_i32, %arg0 : i32, i32
  }
  func.func @transform_4(%arg0: i32, %arg1: i32) -> (i32, i32) {
    %c0_i32 = arith.constant 0 : i32
    %c0_i32_0 = arith.constant 0 : i32
    return %c0_i32, %arg0 : i32, i32
  }
}

module attributes {stable_mosaic.version = 11 : i64} {
  func.func @_barlow_loss_kernel(%arg0: i32, %arg1: i32, %arg2: memref<256x2xf32, #tpu.memory_space<vmem>>, %arg3: memref<2x256xf32, #tpu.memory_space<vmem>>, %arg4: memref<2x2xf32, #tpu.memory_space<smem>>, %arg5: memref<2xf32, #tpu.memory_space<smem>>) attributes {dimension_semantics = [#tpu.dimension_semantics<arbitrary>, #tpu.dimension_semantics<arbitrary>], iteration_bounds = array<i64: 2, 2>, scalar_prefetch = 0 : i64, scratch_operands = 1 : i64, tpu.core_type = #tpu.core_type<tc>, window_params = [{transform_indices = @transform_0, window_bounds = array<i64: 256, 2>}, {transform_indices = @transform_1, window_bounds = array<i64: 2, 256>}, {transform_indices = @transform_2, window_bounds = array<i64: 2, 2>}]} {
    %c0_i32 = arith.constant 0 : i32
    %0 = arith.cmpi eq, %arg1, %c0_i32 : i32
    %1 = arith.extui %0 : i1 to i32
    %c0_i32_0 = arith.constant 0 : i32
    %2 = arith.cmpi ne, %1, %c0_i32_0 : i32
    scf.if %2 {
      %cst_8 = arith.constant 0.000000e+00 : f32
      %c0_9 = arith.constant 0 : index
      %20 = memref.load %arg5[%c0_9] : memref<2xf32, #tpu.memory_space<smem>>
      memref.store %cst_8, %arg5[%c0_9] : memref<2xf32, #tpu.memory_space<smem>>
      %cst_10 = arith.constant 0.000000e+00 : f32
      %c1_11 = arith.constant 1 : index
      %21 = memref.load %arg5[%c1_11] : memref<2xf32, #tpu.memory_space<smem>>
      memref.store %cst_10, %arg5[%c1_11] : memref<2xf32, #tpu.memory_space<smem>>
    } else {
    }
    %c0 = arith.constant 0 : index
    %c0_1 = arith.constant 0 : index
    %3 = vector.load %arg2[%c0, %c0_1] : memref<256x2xf32, #tpu.memory_space<vmem>>, vector<256x2xf32>
    %c0_2 = arith.constant 0 : index
    %c0_3 = arith.constant 0 : index
    %4 = vector.load %arg3[%c0_2, %c0_3] : memref<2x256xf32, #tpu.memory_space<vmem>>, vector<2x256xf32>
    %cst = arith.constant dense<0.000000e+00> : vector<256x256xf32>
    %5 = tpu.matmul %3, %4, %cst {dimension_numbers = #tpu.dot_dimension_numbers<[1], [0], [0], [1], [0, 0, 1, 1], [], []>} : vector<256x2xf32>, vector<2x256xf32>, vector<256x256xf32> -> vector<256x256xf32>
    %c1 = arith.constant 1 : index
    %6 = memref.load %arg5[%c1] : memref<2xf32, #tpu.memory_space<smem>>
    %7 = arith.mulf %5, %5 : vector<256x256xf32>
    %8 = vector.shape_cast %7 : vector<256x256xf32> to vector<1x256x256xf32>
    %cst_4 = arith.constant dense<0.000000e+00> : vector<1xf32>
    %9 = vector.multi_reduction <add>, %8, %cst_4 [1, 2] : vector<1x256x256xf32> to vector<1xf32>
    %10 = vector.shape_cast %9 : vector<1xf32> to vector<1x1x1xf32>
    %11 = vector.extract %10[0, 0, 0] : f32 from vector<1x1x1xf32>
    %12 = arith.addf %6, %11 : f32
    %c1_5 = arith.constant 1 : index
    %13 = memref.load %arg5[%c1_5] : memref<2xf32, #tpu.memory_space<smem>>
    memref.store %12, %arg5[%c1_5] : memref<2xf32, #tpu.memory_space<smem>>
    %14 = arith.cmpi eq, %arg0, %arg1 : i32
    %15 = arith.extui %14 : i1 to i32
    %c0_i32_6 = arith.constant 0 : i32
    %16 = arith.cmpi ne, %15, %c0_i32_6 : i32
    scf.if %16 {
      %20 = tpu.iota {dimensions = array<i32: 0>} : vector<256x256xi32>
      %21 = tpu.iota {dimensions = array<i32: 1>} : vector<256x256xi32>
      %22 = arith.cmpi eq, %20, %21 : vector<256x256xi32>
      %cst_8 = arith.constant 0.000000e+00 : f32
      %23 = vector.broadcast %cst_8 : f32 to vector<256x256xf32>
      %24 = arith.select %22, %5, %23 : vector<256x256xi1>, vector<256x256xf32>
      %c0_9 = arith.constant 0 : index
      %25 = memref.load %arg5[%c0_9] : memref<2xf32, #tpu.memory_space<smem>>
      %cst_10 = arith.constant 1.000000e+00 : f32
      %26 = vector.broadcast %cst_10 : f32 to vector<256x256xf32>
      %27 = arith.subf %5, %26 : vector<256x256xf32>
      %28 = arith.mulf %27, %27 : vector<256x256xf32>
      %cst_11 = arith.constant 0.000000e+00 : f32
      %29 = vector.broadcast %cst_11 : f32 to vector<256x256xf32>
      %30 = arith.select %22, %28, %29 : vector<256x256xi1>, vector<256x256xf32>
      %31 = vector.shape_cast %30 : vector<256x256xf32> to vector<1x256x256xf32>
      %cst_12 = arith.constant dense<0.000000e+00> : vector<1xf32>
      %32 = vector.multi_reduction <add>, %31, %cst_12 [1, 2] : vector<1x256x256xf32> to vector<1xf32>
      %33 = vector.shape_cast %32 : vector<1xf32> to vector<1x1x1xf32>
      %34 = vector.extract %33[0, 0, 0] : f32 from vector<1x1x1xf32>
      %35 = arith.addf %25, %34 : f32
      %c0_13 = arith.constant 0 : index
      %36 = memref.load %arg5[%c0_13] : memref<2xf32, #tpu.memory_space<smem>>
      memref.store %35, %arg5[%c0_13] : memref<2xf32, #tpu.memory_space<smem>>
      %c1_14 = arith.constant 1 : index
      %37 = memref.load %arg5[%c1_14] : memref<2xf32, #tpu.memory_space<smem>>
      %38 = arith.mulf %24, %24 : vector<256x256xf32>
      %39 = vector.shape_cast %38 : vector<256x256xf32> to vector<1x256x256xf32>
      %cst_15 = arith.constant dense<0.000000e+00> : vector<1xf32>
      %40 = vector.multi_reduction <add>, %39, %cst_15 [1, 2] : vector<1x256x256xf32> to vector<1xf32>
      %41 = vector.shape_cast %40 : vector<1xf32> to vector<1x1x1xf32>
      %42 = vector.extract %41[0, 0, 0] : f32 from vector<1x1x1xf32>
      %43 = arith.subf %37, %42 : f32
      %c1_16 = arith.constant 1 : index
      %44 = memref.load %arg5[%c1_16] : memref<2xf32, #tpu.memory_space<smem>>
      memref.store %43, %arg5[%c1_16] : memref<2xf32, #tpu.memory_space<smem>>
    } else {
    }
    %c1_i32 = arith.constant 1 : i32
    %17 = arith.cmpi eq, %arg1, %c1_i32 : i32
    %18 = arith.extui %17 : i1 to i32
    %c0_i32_7 = arith.constant 0 : i32
    %19 = arith.cmpi ne, %18, %c0_i32_7 : i32
    scf.if %19 {
      %c0_8 = arith.constant 0 : index
      %20 = memref.load %arg5[%c0_8] : memref<2xf32, #tpu.memory_space<smem>>
      %21 = arith.index_cast %arg0 : i32 to index
      %c0_9 = arith.constant 0 : index
      %22 = memref.load %arg4[%21, %c0_9] : memref<2x2xf32, #tpu.memory_space<smem>>
      memref.store %20, %arg4[%21, %c0_9] : memref<2x2xf32, #tpu.memory_space<smem>>
      %c1_10 = arith.constant 1 : index
      %23 = memref.load %arg5[%c1_10] : memref<2xf32, #tpu.memory_space<smem>>
      %24 = arith.index_cast %arg0 : i32 to index
      %c1_11 = arith.constant 1 : index
      %25 = memref.load %arg4[%24, %c1_11] : memref<2x2xf32, #tpu.memory_space<smem>>
      memref.store %23, %arg4[%24, %c1_11] : memref<2x2xf32, #tpu.memory_space<smem>>
    } else {
    }
    return
  }
  func.func @transform_0(%arg0: i32, %arg1: i32) -> (i32, i32) {
    %c0_i32 = arith.constant 0 : i32
    %c0_i32_0 = arith.constant 0 : i32
    return %arg0, %c0_i32 : i32, i32
  }
  func.func @transform_1(%arg0: i32, %arg1: i32) -> (i32, i32) {
    %c0_i32 = arith.constant 0 : i32
    %c0_i32_0 = arith.constant 0 : i32
    return %c0_i32, %arg1 : i32, i32
  }
  func.func @transform_2(%arg0: i32, %arg1: i32) -> (i32, i32) {
    %c0_i32 = arith.constant 0 : i32
    %c0_i32_0 = arith.constant 0 : i32
    %c0_i32_1 = arith.constant 0 : i32
    return %c0_i32, %c0_i32_0 : i32, i32
  }
}

</mosaic_0001>

<bundles_post_ra>
// kernel: barlow_twins_forward.6
= control target key start
LH: loop header
LB: loop body
LE: loop exit
PB: predicated region body
PF: predicated region fallthrough
CT: control target
= control target key end

     0   :  { %s1202_s12 = smov 0   ;;  %s1204_s13 = smov 0   ;;  %s1508_s0 = inlined_call_operand.vmem [shape: bf16[2,512,128], index: 0, kind: input, shape index: {}]   ;;  %s1509_s1 = inlined_call_operand.vmem [shape: bf16[128,256], index: 1, kind: input, shape index: {}]   ;;  %s1510_s2 = inlined_call_operand.vmem [shape: f32[2,1,256], index: 2, kind: output, shape index: {0}]   ;;  %s1511_s3 = inlined_call_operand.vmem [shape: f32[2,1,256], index: 3, kind: output, shape index: {1}]  }
   0x1   :  { %s1206_s14 = smov 0   ;;  %s1208_s15 = smov 0  }
   0x2   :  { %s1210_s16 = smov 0  }
   0x3 LB: > { %s23_s17 = sadd.s32 1, %s1169_s14  ;;  %s26_s18 = sadd.s32 1, %s1173_s15  ;;  %s1177_s16 = sphi %s1210_s16, %s14_s16   ;;  %s1173_s15 = sphi %s1208_s15, %s1515_s15   ;;  %s1169_s14 = sphi %s1206_s14, %s1514_s14   ;;  %s1165_s13 = sphi %s1204_s13, %s1513_s13   ;;  %s1161_s12 = sphi %s1202_s12, %s1512_s12  }
   0x4   : > { %p24_p0 = scmp.ge.s32.totalorder %s23_s17, 2  ;;  %p999_p1 = scmp.ge.s32.totalorder %s1177_s16, 1 }
   0x5   : > { %p159_p2 = scmp.lt.s32.totalorder %s1177_s16, 5 }
   0x6   : > { %s1517_s17 = smov (%p24_p0, %s23_s17), 0  ;;  %s1519_s18 = smov (!%p24_p0, %s26_s18), %s1173_s15 }
   0x7   : > { %p160_p3 = pnand %p999_p1, %p159_p2  ;;  %p28_p4 = scmp.ge.s32.totalorder %s1519_s18, 2 }
   0x8   : > { %s1000_s19 = sshll.u32 (!%p160_p3), %s1161_s12, 5  ;;  %p191_p5 = scmp.lt.s32.totalorder (!%p160_p3), %s1165_s13, 1 }
   0x9   : > { %s1521_s18 = smov (%p28_p4, %s1519_s18), 0  ;;  %163 = sbr.rel (%p160_p3) target bundleno = 389 (0x185), region = 28 }
   0xa   : > { %p193_p6 = scmp.lt.s32.totalorder (!%p160_p3), %s1000_s19, 63  ;;  %p1005_p7 = scmp.ne.s32.totalorder (!%p160_p3), %s1161_s12, 0 }
  0x10   : > { %s1523_s13 = smov (!%p191_p5, %s1165_s13), 1  ;;  %s1525_s19 = smov (!%p193_p6, %s1000_s19), 63 }
  0x11   : > { %s1001_s20 = sshll.u32 %s1523_s13, 6  ;;  %s1003_s21 = sshll.u32 %s1523_s13, 1  ;;  %v213_v0 = vlaneseq (!%p1005_p7)  ;;  %v1179_v1 = vmov (!%p1005_p7), 0.0  }
  0x12   : > { %s196_s22 = sadd.s32 %s1001_s20, %s1525_s19  ;;  %s1235_s25 = scalar_lea.vmem %s1510_s2, %s1003_s21 }
  0x13   : > { %s1002_s26 = sshll.u32 %s196_s22, 2  ;;  %s1240_s29 = scalar_lea.vmem %s1511_s3, %s1003_s21  ;;  %vm215_vm0 = vcmp.lt.s32.totalorder (!%p1005_p7), %v213_v0, 256 }
  0x14   : > { %s1245_s5 = scalar_lea.vmem %s1508_s0, %s1002_s26  ;;  %212 = sbr.rel (%p1005_p7) target bundleno = 27 (0x1b), region = 32  ;;  %217 = vst.msk [vmem:[%s1235_s25] sm:$0x3] (!%p1005_p7), %vm215_vm0, %v1179_v1  ;;  %218 = vst.msk [vmem:[%s1240_s29] sm:$0x3] (!%p1005_p7), %vm215_vm0, %v1179_v1 }
  0x1b PF: > { %v1099_v2 = vld [vmem:[%s1509_s1 + $0x4] ss:$8 sps:$4 sm:$0xff]   ;;  %v1101_v3 = vld [vmem:[%s1509_s1] ss:$8 sps:$4 sm:$0xff]   ;;  %v1180_v4 = vmov 0   ;;  %v1125_v23 = vld [vmem:[%s1245_s5 + $0x10] sm:$0xff]  }
  0x1c   : > { %475 = vmatprep.mubr.bf16.mxu0 %v1180_v4  ;;  %555 = vmatprep.mubr.bf16.mxu1 %v1180_v4  ;;  %v1102_v5 = vld [vmem:[%s1509_s1 + $0x14] ss:$8 sps:$4 sm:$0xff]   ;;  %v1104_v6 = vld [vmem:[%s1509_s1 + $0x10] ss:$8 sps:$4 sm:$0xff]   ;;  %v1105_v7 = vld [vmem:[%s1509_s1 + $0x24] ss:$8 sps:$4 sm:$0xff]  }
  0x1d   : > { %443 = vmatprep.subr.bf16.mxu0 %v1099_v2  ;;  %1040 = vmatprep.subr.bf16.mxu1 %v1099_v2  ;;  %v1107_v8 = vld [vmem:[%s1509_s1 + $0x20] ss:$8 sps:$4 sm:$0xff]   ;;  %v1108_v9 = vld [vmem:[%s1509_s1 + $0x34] ss:$8 sps:$4 sm:$0xff]   ;;  %v1110_v10 = vld [vmem:[%s1509_s1 + $0x30] ss:$8 sps:$4 sm:$0xff]  }
  0x1e   : > { %444 = vmatpush1.bf16.msra.mxu0 %v1101_v3  ;;  %1048 = vmatpush1.bf16.msra.mxu1 %v1101_v3  ;;  %v1111_v11 = vld [vmem:[%s1509_s1 + $0x44] ss:$8 sps:$4 sm:$0xff]   ;;  %v1113_v12 = vld [vmem:[%s1509_s1 + $0x40] ss:$8 sps:$4 sm:$0xff]   ;;  %v1114_v13 = vld [vmem:[%s1509_s1 + $0x54] ss:$8 sps:$4 sm:$0xff]  }
  0x1f   : > { %445 = vmatprep.subr.bf16.mxu0 %v1102_v5  ;;  %1041 = vmatprep.subr.bf16.mxu1 %v1102_v5  ;;  %v1116_v14 = vld [vmem:[%s1509_s1 + $0x50] ss:$8 sps:$4 sm:$0xff]   ;;  %v1117_v15 = vld [vmem:[%s1509_s1 + $0x64] ss:$8 sps:$4 sm:$0xff]   ;;  %v1119_v16 = vld [vmem:[%s1509_s1 + $0x60] ss:$8 sps:$4 sm:$0xff]  }
  0x20   : > { %v1120_v17 = vld [vmem:[%s1509_s1 + $0x74] ss:$8 sps:$4 sm:$0xff]   ;;  %v1122_v18 = vld [vmem:[%s1509_s1 + $0x70] ss:$8 sps:$4 sm:$0xff]   ;;  %v1123_v19 = vld [vmem:[%s1245_s5] sm:$0xff]  }
  0x21   : > { %v1127_v20 = vld [vmem:[%s1245_s5 + $0x40] sm:$0xff]   ;;  %v1124_v21 = vld [vmem:[%s1245_s5 + $0x8] sm:$0xff]   ;;  %v1131_v24 = vld [vmem:[%s1245_s5 + $0x50] sm:$0xff]  }
  0x22   : > { %446 = vmatpush1.bf16.msra.mxu0 %v1104_v6  ;;  %1049 = vmatpush1.bf16.msra.mxu1 %v1104_v6  ;;  %v1129_v22 = vld [vmem:[%s1245_s5 + $0x48] sm:$0xff]   ;;  %v1126_v25 = vld [vmem:[%s1245_s5 + $0x18] sm:$0xff]   ;;  %v1128_v27 = vld [vmem:[%s1245_s5 + $0x20] sm:$0xff]  }
  0x23   : > { %447 = vmatprep.subr.bf16.mxu0 %v1105_v7  ;;  %1042 = vmatprep.subr.bf16.mxu1 %v1105_v7  ;;  %v1133_v26 = vld [vmem:[%s1245_s5 + $0x58] sm:$0xff]   ;;  %v1135_v28 = vld [vmem:[%s1245_s5 + $0x60] sm:$0xff]   ;;  %v1130_v29 = vld [vmem:[%s1245_s5 + $0x28] sm:$0xff]  }
  0x24   : > { %v1136_v30 = vld [vmem:[%s1245_s5 + $0x68] sm:$0xff]   ;;  %v1132_v31 = vld [vmem:[%s1245_s5 + $0x30] sm:$0xff]   ;;  %v1134_v33 = vld [vmem:[%s1245_s5 + $0x38] sm:$0xff]  }
  0x25   : > { %v1137_v32 = vld [vmem:[%s1245_s5 + $0x70] sm:$0xff]   ;;  %v1138_v34 = vld [vmem:[%s1245_s5 + $0x78] sm:$0xff]  }
  0x26   : > { %448 = vmatpush1.bf16.msra.mxu0 %v1107_v8  ;;  %1050 = vmatpush1.bf16.msra.mxu1 %v1107_v8 }
  0x27   : > { %449 = vmatprep.subr.bf16.mxu0 %v1108_v9  ;;  %1043 = vmatprep.subr.bf16.mxu1 %v1108_v9 }
  0x2a   : > { %450 = vmatpush1.bf16.msra.mxu0 %v1110_v10  ;;  %1051 = vmatpush1.bf16.msra.mxu1 %v1110_v10 }
  0x2b   : > { %451 = vmatprep.subr.bf16.mxu0 %v1111_v11  ;;  %1044 = vmatprep.subr.bf16.mxu1 %v1111_v11 }
  0x2e   : > { %452 = vmatpush1.bf16.msra.mxu0 %v1113_v12  ;;  %1052 = vmatpush1.bf16.msra.mxu1 %v1113_v12 }
  0x2f   : > { %453 = vmatprep.subr.bf16.mxu0 %v1114_v13  ;;  %1045 = vmatprep.subr.bf16.mxu1 %v1114_v13 }
  0x32   : > { %454 = vmatpush1.bf16.msra.mxu0 %v1116_v14  ;;  %1053 = vmatpush1.bf16.msra.mxu1 %v1116_v14 }
  0x33   : > { %455 = vmatprep.subr.bf16.mxu0 %v1117_v15  ;;  %1046 = vmatprep.subr.bf16.mxu1 %v1117_v15 }
  0x36   : > { %456 = vmatpush1.bf16.msra.mxu0 %v1119_v16  ;;  %1054 = vmatpush1.bf16.msra.mxu1 %v1119_v16 }
  0x37   : > { %457 = vmatprep.subr.bf16.mxu0 %v1120_v17  ;;  %1047 = vmatprep.subr.bf16.mxu1 %v1120_v17 }
  0x3a   : > { %458 = vmatpush1.bf16.msra.mxu0 %v1122_v18  ;;  %1055 = vmatpush1.bf16.msra.mxu1 %v1122_v18 }
  0x3d   : > { %476 = vmatmul.mubr.bf16.vlgmr.msra.gmra.mrb[0].mxu0 %v1123_v19  ;;  %556 = vmatmul.mubr.bf16.vlgmr.msra.gmra.mrb[0].mxu1 %v1127_v20 }
  0x3e   : > { %485 = vmatprep.mubr.bf16.mxu0 %v1180_v4  ;;  %565 = vmatprep.mubr.bf16.mxu1 %v1180_v4 }
  0x45   : > { %486 = vmatmul.mubr.bf16.gmra.mrb[4].mxu0 %v1124_v21  ;;  %566 = vmatmul.mubr.bf16.gmra.mrb[4].mxu1 %v1129_v22 }
  0x46   : > { %495 = vmatprep.mubr.bf16.mxu0 %v1180_v4  ;;  %575 = vmatprep.mubr.bf16.mxu1 %v1180_v4 }
  0x4d   : > { %496 = vmatmul.mubr.bf16.gmra.mrb[8].mxu0 %v1125_v23  ;;  %576 = vmatmul.mubr.bf16.gmra.mrb[8].mxu1 %v1131_v24 }
  0x4e   : > { %505 = vmatprep.mubr.bf16.mxu0 %v1180_v4  ;;  %585 = vmatprep.mubr.bf16.mxu1 %v1180_v4 }
  0x55   : > { %506 = vmatmul.mubr.bf16.gmra.mrb[12].mxu0 %v1126_v25  ;;  %586 = vmatmul.mubr.bf16.gmra.mrb[12].mxu1 %v1133_v26 }
  0x56   : > { %515 = vmatprep.mubr.bf16.mxu0 %v1180_v4  ;;  %595 = vmatprep.mubr.bf16.mxu1 %v1180_v4 }
  0x5d   : > { %516 = vmatmul.mubr.bf16.gmra.mrb[16].mxu0 %v1128_v27  ;;  %596 = vmatmul.mubr.bf16.gmra.mrb[16].mxu1 %v1135_v28 }
  0x5e   : > { %525 = vmatprep.mubr.bf16.mxu0 %v1180_v4  ;;  %605 = vmatprep.mubr.bf16.mxu1 %v1180_v4 }
  0x65   : > { %526 = vmatmul.mubr.bf16.gmra.mrb[20].mxu0 %v1130_v29  ;;  %606 = vmatmul.mubr.bf16.gmra.mrb[20].mxu1 %v1136_v30 }
  0x66   : > { %535 = vmatprep.mubr.bf16.mxu0 %v1180_v4  ;;  %615 = vmatprep.mubr.bf16.mxu1 %v1180_v4 }
  0x6d   : > { %536 = vmatmul.mubr.bf16.gmra.mrb[24].mxu0 %v1132_v31  ;;  %616 = vmatmul.mubr.bf16.gmra.mrb[24].mxu1 %v1137_v32 }
  0x6e   : > { %545 = vmatprep.mubr.bf16.mxu0 %v1180_v4  ;;  %625 = vmatprep.mubr.bf16.mxu1 %v1180_v4 }
  0x75   : > { %546 = vmatmul.mubr.bf16.gmra.mrb[28].mxu0 %v1134_v33  ;;  %626 = vmatmul.mubr.bf16.gmra.mrb[28].mxu1 %v1138_v34 }
 0x110   : > { %v477_v35 = vpop.f32.mrb[0].mxu0  ;;  %v1329_v36 = vpop.f32.mrb[0].mxu1 }
 0x111   : > { %v479_v37 = vpop.f32.mrb[1].mxu0  ;;  %v1331_v38 = vpop.f32.mrb[1].mxu1  ;;  %v736_v41 = vmul.f32 %v477_v35, %v477_v35 }
 0x112   : > { %v481_v39 = vpop.f32.mrb[2].mxu0  ;;  %v1333_v40 = vpop.f32.mrb[2].mxu1  ;;  %v737_v46 = vmul.f32 %v479_v37, %v479_v37 }
 0x113   : > { %v637_v42 = vadd.f32 %v481_v39, %v477_v35  ;;  %v738_v43 = vmul.f32 %v481_v39, %v481_v39  ;;  %v483_v44 = vpop.f32.mrb[3].mxu0  ;;  %v1335_v45 = vpop.f32.mrb[3].mxu1 }
 0x114   : > { %v674_v47 = vadd.f32 %v483_v44, %v479_v37  ;;  %v739_v48 = vmul.f32 %v483_v44, %v483_v44 }
 0x115   : > { %v800_v49 = vadd.f32 %v738_v43, %v736_v41 }
 0x116   : > { %v837_v50 = vadd.f32 %v739_v48, %v737_v46 }
 0x118   : > { %v487_v51 = vpop.f32.mrb[4].mxu0  ;;  %v1337_v52 = vpop.f32.mrb[4].mxu1 }
 0x119   : > { %v638_v53 = vadd.f32 %v637_v42, %v487_v51  ;;  %v740_v54 = vmul.f32 %v487_v51, %v487_v51  ;;  %v489_v55 = vpop.f32.mrb[5].mxu0  ;;  %v1339_v56 = vpop.f32.mrb[5].mxu1 }
 0x11a   : > { %v675_v57 = vadd.f32 %v674_v47, %v489_v55  ;;  %v741_v58 = vmul.f32 %v489_v55, %v489_v55  ;;  %v491_v59 = vpop.f32.mrb[6].mxu0  ;;  %v1341_v60 = vpop.f32.mrb[6].mxu1 }
 0x11b   : > { %v801_v61 = vadd.f32 %v800_v49, %v740_v54  ;;  %v639_v62 = vadd.f32 %v638_v53, %v491_v59  ;;  %v742_v63 = vmul.f32 %v491_v59, %v491_v59  ;;  %v493_v0 = vpop.f32.mrb[7].mxu0  ;;  %v1343_v1 = vpop.f32.mrb[7].mxu1 }
 0x11c   : > { %v838_v2 = vadd.f32 %v837_v50, %v741_v58  ;;  %v676_v3 = vadd.f32 %v675_v57, %v493_v0  ;;  %v743_v4 = vmul.f32 %v493_v0, %v493_v0 }
 0x11d   : > { %v802_v5 = vadd.f32 %v801_v61, %v742_v63 }
 0x11e   : > { %v839_v6 = vadd.f32 %v838_v2, %v743_v4 }
 0x120   : > { %v497_v7 = vpop.f32.mrb[8].mxu0  ;;  %v1345_v8 = vpop.f32.mrb[8].mxu1 }
 0x121   : > { %v640_v9 = vadd.f32 %v639_v62, %v497_v7  ;;  %v744_v10 = vmul.f32 %v497_v7, %v497_v7  ;;  %v499_v11 = vpop.f32.mrb[9].mxu0  ;;  %v1347_v12 = vpop.f32.mrb[9].mxu1 }
 0x122   : > { %v677_v13 = vadd.f32 %v676_v3, %v499_v11  ;;  %v745_v14 = vmul.f32 %v499_v11, %v499_v11  ;;  %v501_v15 = vpop.f32.mrb[10].mxu0  ;;  %v1349_v16 = vpop.f32.mrb[10].mxu1 }
 0x123   : > { %v803_v17 = vadd.f32 %v802_v5, %v744_v10  ;;  %v641_v18 = vadd.f32 %v640_v9, %v501_v15  ;;  %v746_v19 = vmul.f32 %v501_v15, %v501_v15  ;;  %v503_v20 = vpop.f32.mrb[11].mxu0  ;;  %v1351_v21 = vpop.f32.mrb[11].mxu1 }
 0x124   : > { %v840_v22 = vadd.f32 %v839_v6, %v745_v14  ;;  %v678_v23 = vadd.f32 %v677_v13, %v503_v20  ;;  %v747_v24 = vmul.f32 %v503_v20, %v503_v20 }
 0x125   : > { %v804_v25 = vadd.f32 %v803_v17, %v746_v19 }
 0x126   : > { %v841_v26 = vadd.f32 %v840_v22, %v747_v24 }
 0x128   : > { %v507_v27 = vpop.f32.mrb[12].mxu0  ;;  %v1353_v28 = vpop.f32.mrb[12].mxu1 }
 0x129   : > { %v642_v29 = vadd.f32 %v641_v18, %v507_v27  ;;  %v748_v30 = vmul.f32 %v507_v27, %v507_v27  ;;  %v509_v31 = vpop.f32.mrb[13].mxu0  ;;  %v1355_v32 = vpop.f32.mrb[13].mxu1 }
 0x12a   : > { %v679_v33 = vadd.f32 %v678_v23, %v509_v31  ;;  %v749_v34 = vmul.f32 %v509_v31, %v509_v31  ;;  %v511_v35 = vpop.f32.mrb[14].mxu0  ;;  %v1357_v37 = vpop.f32.mrb[14].mxu1 }
 0x12b   : > { %v805_v39 = vadd.f32 %v804_v25, %v748_v30  ;;  %v643_v41 = vadd.f32 %v642_v29, %v511_v35  ;;  %v750_v42 = vmul.f32 %v511_v35, %v511_v35  ;;  %v513_v43 = vpop.f32.mrb[15].mxu0  ;;  %v1359_v44 = vpop.f32.mrb[15].mxu1 }
 0x12c   : > { %v842_v46 = vadd.f32 %v841_v26, %v749_v34  ;;  %v680_v47 = vadd.f32 %v679_v33, %v513_v43  ;;  %v751_v48 = vmul.f32 %v513_v43, %v513_v43 }
 0x12d   : > { %v806_v49 = vadd.f32 %v805_v39, %v750_v42 }
 0x12e   : > { %v843_v50 = vadd.f32 %v842_v46, %v751_v48 }
 0x130   : > { %v517_v51 = vpop.f32.mrb[16].mxu0  ;;  %v1361_v53 = vpop.f32.mrb[16].mxu1 }
 0x131   : > { %v644_v54 = vadd.f32 %v643_v41, %v517_v51  ;;  %v752_v55 = vmul.f32 %v517_v51, %v517_v51  ;;  %v519_v57 = vpop.f32.mrb[17].mxu0  ;;  %v1363_v58 = vpop.f32.mrb[17].mxu1 }
 0x132   : > { %v681_v59 = vadd.f32 %v680_v47, %v519_v57  ;;  %v753_v61 = vmul.f32 %v519_v57, %v519_v57  ;;  %v521_v62 = vpop.f32.mrb[18].mxu0  ;;  %v1365_v63 = vpop.f32.mrb[18].mxu1 }
 0x133   : > { %v807_v0 = vadd.f32 %v806_v49, %v752_v55  ;;  %v645_v2 = vadd.f32 %v644_v54, %v521_v62  ;;  %v754_v3 = vmul.f32 %v521_v62, %v521_v62  ;;  %v523_v4 = vpop.f32.mrb[19].mxu0  ;;  %v1367_v5 = vpop.f32.mrb[19].mxu1 }
 0x134   : > { %v844_v6 = vadd.f32 %v843_v50, %v753_v61  ;;  %v682_v7 = vadd.f32 %v681_v59, %v523_v4  ;;  %v755_v9 = vmul.f32 %v523_v4, %v523_v4 }
 0x135   : > { %v808_v10 = vadd.f32 %v807_v0, %v754_v3 }
 0x136   : > { %v845_v11 = vadd.f32 %v844_v6, %v755_v9 }
 0x138   : > { %v527_v13 = vpop.f32.mrb[20].mxu0  ;;  %v1369_v14 = vpop.f32.mrb[20].mxu1 }
 0x139   : > { %v646_v15 = vadd.f32 %v645_v2, %v527_v13  ;;  %v756_v17 = vmul.f32 %v527_v13, %v527_v13  ;;  %v529_v18 = vpop.f32.mrb[21].mxu0  ;;  %v1371_v19 = vpop.f32.mrb[21].mxu1 }
 0x13a   : > { %v683_v20 = vadd.f32 %v682_v7, %v529_v18  ;;  %v757_v22 = vmul.f32 %v529_v18, %v529_v18  ;;  %v531_v23 = vpop.f32.mrb[22].mxu0  ;;  %v1373_v24 = vpop.f32.mrb[22].mxu1 }
 0x13b   : > { %v809_v25 = vadd.f32 %v808_v10, %v756_v17  ;;  %v647_v26 = vadd.f32 %v646_v15, %v531_v23  ;;  %v758_v27 = vmul.f32 %v531_v23, %v531_v23  ;;  %v533_v29 = vpop.f32.mrb[23].mxu0  ;;  %v1375_v30 = vpop.f32.mrb[23].mxu1 }
 0x13c   : > { %v846_v31 = vadd.f32 %v845_v11, %v757_v22  ;;  %v684_v33 = vadd.f32 %v683_v20, %v533_v29  ;;  %v759_v34 = vmul.f32 %v533_v29, %v533_v29 }
 0x13d   : > { %v810_v35 = vadd.f32 %v809_v25, %v758_v27 }
 0x13e   : > { %v847_v39 = vadd.f32 %v846_v31, %v759_v34 }
 0x140   : > { %v537_v41 = vpop.f32.mrb[24].mxu0  ;;  %v1377_v42 = vpop.f32.mrb[24].mxu1 }
 0x141   : > { %v648_v43 = vadd.f32 %v647_v26, %v537_v41  ;;  %v760_v46 = vmul.f32 %v537_v41, %v537_v41  ;;  %v539_v47 = vpop.f32.mrb[25].mxu0  ;;  %v1379_v48 = vpop.f32.mrb[25].mxu1 }
 0x142   : > { %v685_v49 = vadd.f32 %v684_v33, %v539_v47  ;;  %v761_v50 = vmul.f32 %v539_v47, %v539_v47  ;;  %v541_v51 = vpop.f32.mrb[26].mxu0  ;;  %v1381_v54 = vpop.f32.mrb[26].mxu1 }
 0x143   : > { %v811_v55 = vadd.f32 %v810_v35, %v760_v46  ;;  %v649_v57 = vadd.f32 %v648_v43, %v541_v51  ;;  %v762_v59 = vmul.f32 %v541_v51, %v541_v51  ;;  %v543_v61 = vpop.f32.mrb[27].mxu0  ;;  %v1383_v62 = vpop.f32.mrb[27].mxu1  ;;  %v768_v35 = vmul.f32 %v1329_v36, %v1329_v36 }
 0x144   : > { %v848_v0 = vadd.f32 %v847_v39, %v761_v50  ;;  %v686_v2 = vadd.f32 %v685_v49, %v543_v61  ;;  %v763_v3 = vmul.f32 %v543_v61, %v543_v61  ;;  %v769_v43 = vmul.f32 %v1331_v38, %v1331_v38 }
 0x145   : > { %v812_v4 = vadd.f32 %v811_v55, %v762_v59  ;;  %v770_v49 = vmul.f32 %v1333_v40, %v1333_v40  ;;  %v771_v55 = vmul.f32 %v1335_v45, %v1335_v45 }
 0x146   : > { %v849_v6 = vadd.f32 %v848_v0, %v763_v3 }
 0x148   : > { %v547_v7 = vpop.f32.mrb[28].mxu0  ;;  %v1385_v9 = vpop.f32.mrb[28].mxu1 }
 0x149   : > { %v650_v10 = vadd.f32 %v649_v57, %v547_v7  ;;  %v764_v11 = vmul.f32 %v547_v7, %v547_v7  ;;  %v549_v13 = vpop.f32.mrb[29].mxu0  ;;  %v1387_v15 = vpop.f32.mrb[29].mxu1 }
 0x14a   : > { %v687_v17 = vadd.f32 %v686_v2, %v549_v13  ;;  %v765_v18 = vmul.f32 %v549_v13, %v549_v13  ;;  %v551_v20 = vpop.f32.mrb[30].mxu0  ;;  %v1389_v22 = vpop.f32.mrb[30].mxu1 }
 0x14b   : > { %v813_v23 = vadd.f32 %v812_v4, %v764_v11  ;;  %v651_v25 = vadd.f32 %v650_v10, %v551_v20  ;;  %v766_v26 = vmul.f32 %v551_v20, %v551_v20  ;;  %v553_v27 = vpop.f32.mrb[31].mxu0  ;;  %v1391_v29 = vpop.f32.mrb[31].mxu1 }
 0x14c   : > { %v850_v31 = vadd.f32 %v849_v6, %v765_v18  ;;  %v688_v33 = vadd.f32 %v687_v17, %v553_v27  ;;  %v767_v34 = vmul.f32 %v553_v27, %v553_v27 }
 0x14d   : > { %v652_v39 = vadd.f32 %v651_v25, %v1329_v36  ;;  %v814_v41 = vadd.f32 %v813_v23, %v766_v26  ;;  %v772_v36 = vmul.f32 %v1337_v52, %v1337_v52 }
 0x14e   : > { %v689_v46 = vadd.f32 %v688_v33, %v1331_v38  ;;  %v851_v47 = vadd.f32 %v850_v31, %v767_v34  ;;  %v773_v38 = vmul.f32 %v1339_v56, %v1339_v56 }
 0x14f   : > { %v653_v50 = vadd.f32 %v652_v39, %v1333_v40  ;;  %v815_v51 = vadd.f32 %v814_v41, %v768_v35  ;;  %v774_v40 = vmul.f32 %v1341_v60, %v1341_v60 }
 0x150   : > { %v690_v57 = vadd.f32 %v689_v46, %v1335_v45  ;;  %v852_v59 = vadd.f32 %v851_v47, %v769_v43  ;;  %v775_v45 = vmul.f32 %v1343_v1, %v1343_v1  ;;  %v784_v46 = vmul.f32 %v1361_v53, %v1361_v53 }
 0x151   : > { %v654_v61 = vadd.f32 %v653_v50, %v1337_v52  ;;  %v816_v0 = vadd.f32 %v815_v51, %v770_v49  ;;  %v776_v52 = vmul.f32 %v1345_v8, %v1345_v8  ;;  %v785_v49 = vmul.f32 %v1363_v58, %v1363_v58 }
 0x152   : > { %v691_v2 = vadd.f32 %v690_v57, %v1339_v56  ;;  %v853_v3 = vadd.f32 %v852_v59, %v771_v55  ;;  %v777_v56 = vmul.f32 %v1347_v12, %v1347_v12  ;;  %v786_v55 = vmul.f32 %v1365_v63, %v1365_v63 }
 0x153   : > { %v655_v4 = vadd.f32 %v654_v61, %v1341_v60  ;;  %v817_v6 = vadd.f32 %v816_v0, %v772_v36  ;;  %v778_v60 = vmul.f32 %v1349_v16, %v1349_v16  ;;  %v787_v59 = vmul.f32 %v1367_v5, %v1367_v5 }
 0x154   : > { %v692_v7 = vadd.f32 %v691_v2, %v1343_v1  ;;  %v854_v10 = vadd.f32 %v853_v3, %v773_v38  ;;  %v779_v1 = vmul.f32 %v1351_v21, %v1351_v21  ;;  %v788_v61 = vmul.f32 %v1369_v14, %v1369_v14 }
 0x155   : > { %v818_v11 = vadd.f32 %v817_v6, %v774_v40  ;;  %v656_v13 = vadd.f32 %v655_v4, %v1345_v8  ;;  %v780_v8 = vmul.f32 %v1353_v28, %v1353_v28  ;;  %v789_v38 = vmul.f32 %v1371_v19, %v1371_v19 }
 0x156   : > { %v855_v17 = vadd.f32 %v854_v10, %v775_v45  ;;  %v693_v18 = vadd.f32 %v692_v7, %v1347_v12  ;;  %v781_v12 = vmul.f32 %v1355_v32, %v1355_v32  ;;  %v790_v3 = vmul.f32 %v1373_v24, %v1373_v24 }
 0x157   : > { %v657_v20 = vadd.f32 %v656_v13, %v1349_v16  ;;  %v819_v23 = vadd.f32 %v818_v11, %v776_v52  ;;  %v782_v16 = vmul.f32 %v1357_v37, %v1357_v37  ;;  %v791_v4 = vmul.f32 %v1375_v30, %v1375_v30 }
 0x158   : > { %v694_v25 = vadd.f32 %v693_v18, %v1351_v21  ;;  %v856_v26 = vadd.f32 %v855_v17, %v777_v56  ;;  %v783_v21 = vmul.f32 %v1359_v44, %v1359_v44  ;;  %v792_v45 = vmul.f32 %v1377_v42, %v1377_v42 }
 0x159   : > { %v658_v27 = vadd.f32 %v657_v20, %v1353_v28  ;;  %v820_v31 = vadd.f32 %v819_v23, %v778_v60  ;;  %v793_v10 = vmul.f32 %v1379_v48, %v1379_v48  ;;  %v794_v11 = vmul.f32 %v1381_v54, %v1381_v54 }
 0x15a   : > { %v695_v33 = vadd.f32 %v694_v25, %v1355_v32  ;;  %v857_v34 = vadd.f32 %v856_v26, %v779_v1  ;;  %v797_v17 = vmul.f32 %v1387_v15, %v1387_v15  ;;  %v798_v1 = vmul.f32 %v1389_v22, %v1389_v22 }
 0x15b   : > { %v659_v35 = vadd.f32 %v658_v27, %v1357_v37  ;;  %v821_v39 = vadd.f32 %v820_v31, %v780_v8 }
 0x15c   : > { %v696_v41 = vadd.f32 %v695_v33, %v1359_v44  ;;  %v858_v43 = vadd.f32 %v857_v34, %v781_v12 }
 0x15d   : > { %v660_v28 = vadd.f32 %v659_v35, %v1361_v53  ;;  %v822_v47 = vadd.f32 %v821_v39, %v782_v16  ;;  %v717_v35 = vlaneseq }
 0x15e   : > { %v697_v32 = vadd.f32 %v696_v41, %v1363_v58  ;;  %v859_v50 = vadd.f32 %v858_v43, %v783_v21 }
 0x15f   : > { %v823_v37 = vadd.f32 %v822_v47, %v784_v46  ;;  %v661_v51 = vadd.f32 %v660_v28, %v1365_v63  ;;  %vm732_vm1 = vcmp.lt.s32.totalorder %v717_v35, 256 }
 0x160   : > { %v860_v44 = vadd.f32 %v859_v50, %v785_v49  ;;  %v698_v57 = vadd.f32 %v697_v32, %v1367_v5 }
 0x161   : > { %v824_v53 = vadd.f32 %v823_v37, %v786_v55  ;;  %v662_v36 = vadd.f32 %v661_v51, %v1369_v14 }
 0x162   : > { %v861_v58 = vadd.f32 %v860_v44, %v787_v59  ;;  %v699_v0 = vadd.f32 %v698_v57, %v1371_v19 }
 0x163   : > { %v825_v2 = vadd.f32 %v824_v53, %v788_v61  ;;  %v663_v63 = vadd.f32 %v662_v36, %v1373_v24 }
 0x164   : > { %v862_v40 = vadd.f32 %v861_v58, %v789_v38  ;;  %v700_v5 = vadd.f32 %v699_v0, %v1375_v30  ;;  %v796_v30 = vmul.f32 %v1385_v9, %v1385_v9 }
 0x165   : > { %v826_v6 = vadd.f32 %v825_v2, %v790_v3  ;;  %v664_v14 = vadd.f32 %v663_v63, %v1377_v42  ;;  %v795_v42 = vmul.f32 %v1383_v62, %v1383_v62  ;;  %v636_v63 = vld [vmem:[%s1235_s25] sm:$0x3] }
 0x166   : > { %v863_v7 = vadd.f32 %v862_v40, %v791_v4  ;;  %v701_v19 = vadd.f32 %v700_v5, %v1379_v48  ;;  %v735_v5 = vld [vmem:[%s1240_s29] sm:$0x3] }
 0x167   : > { %v827_v52 = vadd.f32 %v826_v6, %v792_v45  ;;  %v665_v24 = vadd.f32 %v664_v14, %v1381_v54 }
 0x168   : > { %v864_v13 = vadd.f32 %v863_v7, %v793_v10  ;;  %v702_v56 = vadd.f32 %v701_v19, %v1383_v62  ;;  %v799_v62 = vmul.f32 %v1391_v29, %v1391_v29 }
 0x169   : > { %v828_v18 = vadd.f32 %v827_v52, %v794_v11  ;;  %v666_v48 = vadd.f32 %v665_v24, %v1385_v9 }
 0x16a   : > { %v865_v60 = vadd.f32 %v864_v13, %v795_v42  ;;  %v703_v20 = vadd.f32 %v702_v56, %v1387_v15  ;;  %v1181_v15 = vmov 1966171168  }
 0x16b   : > { %v829_v23 = vadd.f32 %v828_v18, %v796_v30  ;;  %v667_v54 = vadd.f32 %v666_v48, %v1389_v22  ;;  %v715_v16 = vunpack.c.l.s4 %v1181_v15 }
 0x16c   : > { %v866_v25 = vadd.f32 %v865_v60, %v797_v17  ;;  %v704_v26 = vadd.f32 %v703_v20, %v1391_v29  ;;  %v718_v29 = vshrl.u32 %v717_v35, 7 }
 0x16d   : > { %v668_v8 = vrot.slane %v667_v54, 4  ;;  %v830_v27 = vadd.f32 %v829_v23, %v798_v1  ;;  %v716_v32 = vunpack.c.0.s8 %v715_v16 }
 0x16e   : > { %v705_v31 = vrot.slane %v704_v26, 4  ;;  %v867_v12 = vadd.f32 %v866_v25, %v799_v62 }
 0x16f   : > { %v669_v9 = vadd.f32 %v668_v8, %v667_v54  ;;  %v831_v33 = vrot.slane %v830_v27, 4  ;;  %v719_v53 = vsub.s32 %v716_v32, %v718_v29 }
 0x170   : > { %v706_v34 = vadd.f32 %v705_v31, %v704_v26  ;;  %v868_v39 = vrot.slane %v867_v12, 4 }
 0x171   : > { %v670_v21 = vrot.slane %v669_v9, 2  ;;  %v832_v41 = vadd.f32 %v831_v33, %v830_v27 }
 0x172   : > { %v707_v22 = vrot.slane %v706_v34, 2  ;;  %v869_v43 = vadd.f32 %v868_v39, %v867_v12 }
 0x173   : > { %v671_v28 = vadd.f32 %v670_v21, %v669_v9  ;;  %v833_v46 = vrot.slane %v832_v41, 2 }
 0x174   : > { %v708_v47 = vadd.f32 %v707_v22, %v706_v34  ;;  %v870_v49 = vrot.slane %v869_v43, 2 }
 0x175   : > { %v672_v50 = vrot.slane %v671_v28, 1  ;;  %v834_v37 = vadd.f32 %v833_v46, %v832_v41 }
 0x176   : > { %v709_v51 = vrot.slane %v708_v47, 1  ;;  %v871_v55 = vadd.f32 %v870_v49, %v869_v43 }
 0x177   : > { %v673_v44 = vadd.f32 %v672_v50, %v671_v28  ;;  %v835_v57 = vrot.slane %v834_v37, 1 }
 0x178   : > { %v710_v59 = vadd.f32 %v709_v51, %v708_v47  ;;  %v872_v36 = vrot.slane %v871_v55, 1 }
 0x179   : > { %v836_v61 = vadd.f32 %v835_v57, %v834_v37 }
 0x17a   : > { %v713_v58 = vcombine.low %v673_v44, %v710_v59  ;;  %v873_v0 = vadd.f32 %v872_v36, %v871_v55 }
 0x17c   : > { %v720_v38 = vrot.slane %v713_v58, %v719_v53  ;;  %v876_v2 = vcombine.low %v836_v61, %v873_v0 }
 0x17e   : > { %v727_v3 = vrot.slane %v720_v38, %v719_v53  ;;  %v883_v40 = vrot.slane %v876_v2, %v719_v53 }
 0x180   : > { %v729_v4 = vadd.f32 %v727_v3, %v636_v63  ;;  %v890_v6 = vrot.slane %v883_v40, %v719_v53 }
 0x182   : > { %734 = vst.msk [vmem:[%s1235_s25] sm:$0x3] %vm732_vm1, %v729_v4  ;;  %v892_v14 = vadd.f32 %v890_v6, %v735_v5 }
 0x184   : > { %893 = vst.msk [vmem:[%s1240_s29] sm:$0x3] %vm732_vm1, %v892_v14 }
 0x185 PF: > { %s14_s16 = sadd.s32 1, %s1177_s16   ;;  %s1512_s12 = smov %s1169_s14 }
 0x186   : > { %p11_p8 = scmp.ge.s32.totalorder %s14_s16, 6   ;;  %s1513_s13 = smov %s1173_s15 }
 0x187   : > { %s1514_s14 = smov %s1517_s17  ;;  %s1515_s15 = smov %s1521_s18 }
 0x188   :  { %13 = sbr.rel (!%p11_p8) target bundleno = 3 (0x3), region = 74 }

// kernel: barlow_twins_forward.7
= control target key start
LH: loop header
LB: loop body
LE: loop exit
PB: predicated region body
PF: predicated region fallthrough
CT: control target
= control target key end

     0   :  { %s2033_s21 = smov 0   ;;  %s2035_s22 = smov 0   ;;  %s2471_s0 = inlined_call_operand.vmem [shape: bf16[2,2,256,128], index: 0, kind: input, shape index: {}]   ;;  %s2472_s1 = inlined_call_operand.vmem [shape: bf16[128,256], index: 1, kind: input, shape index: {}]   ;;  %s2473_s2 = inlined_call_operand.vmem [shape: f32[2,1,256], index: 2, kind: input, shape index: {}]   ;;  %s2474_s3 = inlined_call_operand.vmem [shape: f32[2,1,256], index: 3, kind: input, shape index: {}]   ;;  %s2475_s4 = inlined_call_operand.vmem [shape: f32[1,256], index: 4, kind: input, shape index: {}]   ;;  %s2476_s5 = inlined_call_operand.vmem [shape: f32[1,256], index: 5, kind: input, shape index: {}]   ;;  %s2477_s6 = inlined_call_operand.vmem [shape: bf16[2,2,256], index: 6, kind: output, shape index: {}]  }
   0x1   :  { %s2037_s23 = smov 0  }
   0x2 LB: > { %s28_s24 = sadd.s32 1, %s1989_s22  ;;  %p1810_p0 = scmp.ge.s32.totalorder %s1993_s23, 1  ;;  %s1993_s23 = sphi %s2037_s23, %s16_s23   ;;  %s1989_s22 = sphi %s2035_s22, %s2479_s22   ;;  %s1985_s21 = sphi %s2033_s21, %s2478_s21  }
   0x3   : > { %p30_p1 = scmp.ge.s32.totalorder %s28_s24, 2  ;;  %p252_p2 = scmp.lt.s32.totalorder %s1993_s23, 3 }
   0x5   : > { %s2481_s24 = smov (%p30_p1, %s28_s24), 0  ;;  %p253_p3 = pnand %p1810_p0, %p252_p2 }
   0x6   : > { %v1913_v0 = vld [vmem:[%s2472_s1 + $0x4] ss:$8 sps:$4 sm:$0xff] (!%p253_p3)   ;;  %p299_p4 = scmp.lt.s32.totalorder (!%p253_p3), %s1985_s21, 1  ;;  %v1915_v1 = vld [vmem:[%s2472_s1] ss:$8 sps:$4 sm:$0xff] (!%p253_p3)   ;;  %v1995_v2 = vmov (!%p253_p3), 0   ;;  %v1046_v59 = vlaneseq (!%p253_p3) }
   0x7   : > { %256 = sbr.rel (%p253_p3) target bundleno = 417 (0x1a1), region = 44  ;;  %710 = vmatprep.mubr.bf16.mxu0 (!%p253_p3), %v1995_v2  ;;  %870 = vmatprep.mubr.bf16.mxu1 (!%p253_p3), %v1995_v2  ;;  %v1916_v3 = vld [vmem:[%s2472_s1 + $0x14] ss:$8 sps:$4 sm:$0xff] (!%p253_p3)   ;;  %v1918_v4 = vld [vmem:[%s2472_s1 + $0x10] ss:$8 sps:$4 sm:$0xff] (!%p253_p3)   ;;  %vm1675_vm0 = vcmask (!%p253_p3), 1041409  }
   0x8   : > { %678 = vmatprep.subr.bf16.mxu0 (!%p253_p3), %v1913_v0  ;;  %1870 = vmatprep.subr.bf16.mxu1 (!%p253_p3), %v1913_v0  ;;  %v1919_v5 = vld [vmem:[%s2472_s1 + $0x24] ss:$8 sps:$4 sm:$0xff] (!%p253_p3)   ;;  %v1921_v6 = vld [vmem:[%s2472_s1 + $0x20] ss:$8 sps:$4 sm:$0xff] (!%p253_p3)   ;;  %v1922_v7 = vld [vmem:[%s2472_s1 + $0x34] ss:$8 sps:$4 sm:$0xff] (!%p253_p3)  }
   0x9   : > { %679 = vmatpush1.bf16.msra.mxu0 (!%p253_p3), %v1915_v1  ;;  %1878 = vmatpush1.bf16.msra.mxu1 (!%p253_p3), %v1915_v1  ;;  %v1924_v8 = vld [vmem:[%s2472_s1 + $0x30] ss:$8 sps:$4 sm:$0xff] (!%p253_p3)   ;;  %v1925_v9 = vld [vmem:[%s2472_s1 + $0x44] ss:$8 sps:$4 sm:$0xff] (!%p253_p3)   ;;  %v1927_v10 = vld [vmem:[%s2472_s1 + $0x40] ss:$8 sps:$4 sm:$0xff] (!%p253_p3)  }
   0xa   : > { %680 = vmatprep.subr.bf16.mxu0 (!%p253_p3), %v1916_v3  ;;  %1871 = vmatprep.subr.bf16.mxu1 (!%p253_p3), %v1916_v3  ;;  %v1928_v11 = vld [vmem:[%s2472_s1 + $0x54] ss:$8 sps:$4 sm:$0xff] (!%p253_p3)   ;;  %v1930_v12 = vld [vmem:[%s2472_s1 + $0x50] ss:$8 sps:$4 sm:$0xff] (!%p253_p3)   ;;  %v1931_v13 = vld [vmem:[%s2472_s1 + $0x64] ss:$8 sps:$4 sm:$0xff] (!%p253_p3)  }
   0xb   : > { %v1933_v14 = vld [vmem:[%s2472_s1 + $0x60] ss:$8 sps:$4 sm:$0xff] (!%p253_p3)   ;;  %v1934_v15 = vld [vmem:[%s2472_s1 + $0x74] ss:$8 sps:$4 sm:$0xff] (!%p253_p3)   ;;  %v1936_v16 = vld [vmem:[%s2472_s1 + $0x70] ss:$8 sps:$4 sm:$0xff] (!%p253_p3)  }
   0xc   : > { %v1038_v58 = vld [vmem:[%s2475_s4] sm:$0x3] (!%p253_p3)  ;;  %v2185_v61 = vshrl.u32 (!%p253_p3), %v1046_v59, 7 }
   0xd   : > { %681 = vmatpush1.bf16.msra.mxu0 (!%p253_p3), %v1918_v4  ;;  %1879 = vmatpush1.bf16.msra.mxu1 (!%p253_p3), %v1918_v4  ;;  %v1042_v63 = vld [vmem:[%s2476_s5] sm:$0x3] (!%p253_p3) }
   0xe   : > { %s2483_s21 = smov (!%p299_p4, %s1985_s21), 1  ;;  %682 = vmatprep.subr.bf16.mxu0 %v1919_v5  ;;  %1872 = vmatprep.subr.bf16.mxu1 %v1919_v5  ;;  %v1048_v0 = vsub.s32 0, %v2185_v61  ;;  %v1052_v1 = vsub.s32 1, %v2185_v61 }
   0xf   : > { %s1869_s11 = sshll.u32 %s2483_s21, 8  ;;  %s2172_s17 = sshll.u32 %s2483_s21, 1 }
  0x10   : > { %s2080_s18 = scalar_lea.vmem %s2471_s0, %s1869_s11  ;;  %s312_s25 = scalar_lea.vmem %s2473_s2, %s2172_s17 }
  0x11   : > { %683 = vmatpush1.bf16.msra.mxu0 %v1921_v6  ;;  %1880 = vmatpush1.bf16.msra.mxu1 %v1921_v6  ;;  %v1937_v17 = vld [vmem:[%s2080_s18] sm:$0xff]   ;;  %v1939_v19 = vld [vmem:[%s2080_s18 + $0x8] sm:$0xff]   ;;  %v1941_v21 = vld [vmem:[%s2080_s18 + $0x10] sm:$0xff]   ;;  %s316_s28 = scalar_lea.vmem %s2474_s3, %s2172_s17  ;;  %s324_s9 = scalar_lea.vmem %s2477_s6, %s2172_s17 }
  0x12   : > { %684 = vmatprep.subr.bf16.mxu0 %v1922_v7  ;;  %1873 = vmatprep.subr.bf16.mxu1 %v1922_v7  ;;  %v1938_v18 = vld [vmem:[%s2080_s18 + $0x80] sm:$0xff]   ;;  %v1940_v20 = vld [vmem:[%s2080_s18 + $0x88] sm:$0xff]   ;;  %v1942_v22 = vld [vmem:[%s2080_s18 + $0x90] sm:$0xff]  }
  0x13   : > { %v1943_v23 = vld [vmem:[%s2080_s18 + $0x18] sm:$0xff]   ;;  %v1945_v25 = vld [vmem:[%s2080_s18 + $0x20] sm:$0xff]   ;;  %v1947_v27 = vld [vmem:[%s2080_s18 + $0x28] sm:$0xff]  }
  0x14   : > { %v1944_v24 = vld [vmem:[%s2080_s18 + $0x98] sm:$0xff]   ;;  %v1946_v26 = vld [vmem:[%s2080_s18 + $0xa0] sm:$0xff]   ;;  %v1948_v28 = vld [vmem:[%s2080_s18 + $0xa8] sm:$0xff]  }
  0x15   : > { %685 = vmatpush1.bf16.msra.mxu0 %v1924_v8  ;;  %1881 = vmatpush1.bf16.msra.mxu1 %v1924_v8  ;;  %v1949_v29 = vld [vmem:[%s2080_s18 + $0x30] sm:$0xff]   ;;  %v1951_v31 = vld [vmem:[%s2080_s18 + $0x38] sm:$0xff]   ;;  %v1953_v33 = vld [vmem:[%s2080_s18 + $0x40] sm:$0xff]  }
  0x16   : > { %686 = vmatprep.subr.bf16.mxu0 %v1925_v9  ;;  %1874 = vmatprep.subr.bf16.mxu1 %v1925_v9  ;;  %v1950_v30 = vld [vmem:[%s2080_s18 + $0xb0] sm:$0xff]   ;;  %v1952_v32 = vld [vmem:[%s2080_s18 + $0xb8] sm:$0xff]   ;;  %v1954_v34 = vld [vmem:[%s2080_s18 + $0xc0] sm:$0xff]  }
  0x17   : > { %v1955_v35 = vld [vmem:[%s2080_s18 + $0x48] sm:$0xff]   ;;  %v1957_v37 = vld [vmem:[%s2080_s18 + $0x50] sm:$0xff]   ;;  %v1959_v39 = vld [vmem:[%s2080_s18 + $0x58] sm:$0xff]  }
  0x18   : > { %v1956_v36 = vld [vmem:[%s2080_s18 + $0xc8] sm:$0xff]   ;;  %v1958_v38 = vld [vmem:[%s2080_s18 + $0xd0] sm:$0xff]   ;;  %v1960_v40 = vld [vmem:[%s2080_s18 + $0xd8] sm:$0xff]  }
  0x19   : > { %687 = vmatpush1.bf16.msra.mxu0 %v1927_v10  ;;  %1882 = vmatpush1.bf16.msra.mxu1 %v1927_v10  ;;  %v1961_v41 = vld [vmem:[%s2080_s18 + $0x60] sm:$0xff]   ;;  %v1963_v43 = vld [vmem:[%s2080_s18 + $0x68] sm:$0xff]   ;;  %v1965_v45 = vld [vmem:[%s2080_s18 + $0x70] sm:$0xff]  }
  0x1a   : > { %688 = vmatprep.subr.bf16.mxu0 %v1928_v11  ;;  %1875 = vmatprep.subr.bf16.mxu1 %v1928_v11  ;;  %v1962_v42 = vld [vmem:[%s2080_s18 + $0xe0] sm:$0xff]   ;;  %v1964_v44 = vld [vmem:[%s2080_s18 + $0xe8] sm:$0xff]   ;;  %v1966_v46 = vld [vmem:[%s2080_s18 + $0xf0] sm:$0xff]  }
  0x1b   : > { %v1967_v47 = vld [vmem:[%s2080_s18 + $0x78] sm:$0xff]   ;;  %v1031_v49 = vld [vmem:[%s312_s25] sm:$0x3] }
  0x1c   : > { %v1968_v48 = vld [vmem:[%s2080_s18 + $0xf8] sm:$0xff]   ;;  %v1032_v50 = vmul.f32 0.001953125, %v1031_v49  ;;  %v1033_v51 = vld [vmem:[%s316_s28] sm:$0x3] }
  0x1d   : > { %689 = vmatpush1.bf16.msra.mxu0 %v1930_v12  ;;  %1883 = vmatpush1.bf16.msra.mxu1 %v1930_v12  ;;  %v1034_v52 = vmul.f32 0.001953125, %v1033_v51 }
  0x1e   : > { %690 = vmatprep.subr.bf16.mxu0 %v1931_v13  ;;  %1876 = vmatprep.subr.bf16.mxu1 %v1931_v13  ;;  %v1035_v53 = vmul.f32 %v1032_v50, %v1032_v50 }
  0x20   : > { %v1036_v54 = vsub.f32 %v1034_v52, %v1035_v53 }
  0x21   : > { %691 = vmatpush1.bf16.msra.mxu0 %v1933_v14  ;;  %1884 = vmatpush1.bf16.msra.mxu1 %v1933_v14 }
  0x22   : > { %692 = vmatprep.subr.bf16.mxu0 %v1934_v15  ;;  %1877 = vmatprep.subr.bf16.mxu1 %v1934_v15  ;;  %v1037_v55 = vmax.f32 %v1036_v54, 0.0 }
  0x24   : > { %v1039_v56 = vadd.f32 1e-05, %v1037_v55 }
  0x25   : > { %693 = vmatpush1.bf16.msra.mxu0 %v1936_v16  ;;  %1885 = vmatpush1.bf16.msra.mxu1 %v1936_v16 }
  0x26   : > { %1969 = vrsqrt.f32 %v1039_v56 }
  0x28   : > { %711 = vmatmul.mubr.bf16.vlgmr.msra.gmra.mrb[0].mxu0 %v1937_v17  ;;  %871 = vmatmul.mubr.bf16.vlgmr.msra.gmra.mrb[0].mxu1 %v1938_v18 }
  0x29   : > { %720 = vmatprep.mubr.bf16.mxu0 %v1995_v2  ;;  %880 = vmatprep.mubr.bf16.mxu1 %v1995_v2 }
  0x30   : > { %721 = vmatmul.mubr.bf16.gmra.mrb[4].mxu0 %v1939_v19  ;;  %881 = vmatmul.mubr.bf16.gmra.mrb[4].mxu1 %v1940_v20  ;;  %v1970_v57 = vpop.eup %1969 }
  0x31   : > { %730 = vmatprep.mubr.bf16.mxu0 %v1995_v2  ;;  %890 = vmatprep.mubr.bf16.mxu1 %v1995_v2  ;;  %v1041_v60 = vmul.f32 %v1970_v57, %v1038_v58 }
  0x33   : > { %v1043_v62 = vmul.f32 %v1041_v60, %v1032_v50  ;;  %v2192_v3 = vrot.slane %v1041_v60, %v1048_v0  ;;  %v2194_v4 = vrot.slane %v1041_v60, %v1052_v1 }
  0x38   : > { %731 = vmatmul.mubr.bf16.gmra.mrb[8].mxu0 %v1941_v21  ;;  %891 = vmatmul.mubr.bf16.gmra.mrb[8].mxu1 %v1942_v22 }
  0x39   : > { %740 = vmatprep.mubr.bf16.mxu0 %v1995_v2  ;;  %900 = vmatprep.mubr.bf16.mxu1 %v1995_v2 }
  0x40   : > { %741 = vmatmul.mubr.bf16.gmra.mrb[12].mxu0 %v1943_v23  ;;  %901 = vmatmul.mubr.bf16.gmra.mrb[12].mxu1 %v1944_v24 }
  0x41   : > { %750 = vmatprep.mubr.bf16.mxu0 %v1995_v2  ;;  %910 = vmatprep.mubr.bf16.mxu1 %v1995_v2 }
  0x48   : > { %751 = vmatmul.mubr.bf16.gmra.mrb[16].mxu0 %v1945_v25  ;;  %911 = vmatmul.mubr.bf16.gmra.mrb[16].mxu1 %v1946_v26 }
  0x49   : > { %760 = vmatprep.mubr.bf16.mxu0 %v1995_v2  ;;  %920 = vmatprep.mubr.bf16.mxu1 %v1995_v2 }
  0x50   : > { %761 = vmatmul.mubr.bf16.gmra.mrb[20].mxu0 %v1947_v27  ;;  %921 = vmatmul.mubr.bf16.gmra.mrb[20].mxu1 %v1948_v28 }
  0x51   : > { %770 = vmatprep.mubr.bf16.mxu0 %v1995_v2  ;;  %930 = vmatprep.mubr.bf16.mxu1 %v1995_v2 }
  0x58   : > { %771 = vmatmul.mubr.bf16.gmra.mrb[24].mxu0 %v1949_v29  ;;  %931 = vmatmul.mubr.bf16.gmra.mrb[24].mxu1 %v1950_v30 }
  0x59   : > { %780 = vmatprep.mubr.bf16.mxu0 %v1995_v2  ;;  %940 = vmatprep.mubr.bf16.mxu1 %v1995_v2 }
  0x60   : > { %781 = vmatmul.mubr.bf16.gmra.mrb[28].mxu0 %v1951_v31  ;;  %941 = vmatmul.mubr.bf16.gmra.mrb[28].mxu1 %v1952_v32 }
  0x61   : > { %790 = vmatprep.mubr.bf16.mxu0 %v1995_v2  ;;  %950 = vmatprep.mubr.bf16.mxu1 %v1995_v2 }
  0x68   : > { %791 = vmatmul.mubr.bf16.gmra.mrb[32].mxu0 %v1953_v33  ;;  %951 = vmatmul.mubr.bf16.gmra.mrb[32].mxu1 %v1954_v34 }
  0x69   : > { %800 = vmatprep.mubr.bf16.mxu0 %v1995_v2  ;;  %960 = vmatprep.mubr.bf16.mxu1 %v1995_v2 }
  0x70   : > { %801 = vmatmul.mubr.bf16.gmra.mrb[36].mxu0 %v1955_v35  ;;  %961 = vmatmul.mubr.bf16.gmra.mrb[36].mxu1 %v1956_v36 }
  0x71   : > { %810 = vmatprep.mubr.bf16.mxu0 %v1995_v2  ;;  %970 = vmatprep.mubr.bf16.mxu1 %v1995_v2 }
  0x78   : > { %811 = vmatmul.mubr.bf16.gmra.mrb[40].mxu0 %v1957_v37  ;;  %971 = vmatmul.mubr.bf16.gmra.mrb[40].mxu1 %v1958_v38 }
  0x79   : > { %820 = vmatprep.mubr.bf16.mxu0 %v1995_v2  ;;  %980 = vmatprep.mubr.bf16.mxu1 %v1995_v2 }
  0x80   : > { %821 = vmatmul.mubr.bf16.gmra.mrb[44].mxu0 %v1959_v39  ;;  %981 = vmatmul.mubr.bf16.gmra.mrb[44].mxu1 %v1960_v40 }
  0x81   : > { %830 = vmatprep.mubr.bf16.mxu0 %v1995_v2  ;;  %990 = vmatprep.mubr.bf16.mxu1 %v1995_v2 }
  0x88   : > { %831 = vmatmul.mubr.bf16.gmra.mrb[48].mxu0 %v1961_v41  ;;  %991 = vmatmul.mubr.bf16.gmra.mrb[48].mxu1 %v1962_v42 }
  0x89   : > { %840 = vmatprep.mubr.bf16.mxu0 %v1995_v2  ;;  %1000 = vmatprep.mubr.bf16.mxu1 %v1995_v2 }
  0x90   : > { %841 = vmatmul.mubr.bf16.gmra.mrb[52].mxu0 %v1963_v43  ;;  %1001 = vmatmul.mubr.bf16.gmra.mrb[52].mxu1 %v1964_v44 }
  0x91   : > { %850 = vmatprep.mubr.bf16.mxu0 %v1995_v2  ;;  %1010 = vmatprep.mubr.bf16.mxu1 %v1995_v2 }
  0x98   : > { %851 = vmatmul.mubr.bf16.gmra.mrb[56].mxu0 %v1965_v45  ;;  %1011 = vmatmul.mubr.bf16.gmra.mrb[56].mxu1 %v1966_v46 }
  0x99   : > { %860 = vmatprep.mubr.bf16.mxu0 %v1995_v2  ;;  %1020 = vmatprep.mubr.bf16.mxu1 %v1995_v2  ;;  %v1044_v2 = vsub.f32 %v1042_v63, %v1043_v62 }
  0x9b   : > { %v2196_v5 = vrot.slane %v1044_v2, %v1048_v0  ;;  %v2198_v8 = vrot.slane %v1044_v2, %v1052_v1 }
  0xa0   : > { %861 = vmatmul.mubr.bf16.gmra.mrb[60].mxu0 %v1967_v47  ;;  %1021 = vmatmul.mubr.bf16.gmra.mrb[60].mxu1 %v1968_v48 }
  0xfb   : > { %v712_v6 = vpop.f32.mrb[0].mxu0  ;;  %v872_v7 = vpop.f32.mrb[0].mxu1 }
  0xfc   : > { %v1056_v9 = vmul.f32 %v2192_v3, %v712_v6  ;;  %v1120_v10 = vmul.f32 %v2192_v3, %v872_v7  ;;  %v714_v11 = vpop.f32.mrb[1].mxu0  ;;  %v874_v12 = vpop.f32.mrb[1].mxu1 }
  0xfd   : > { %v1057_v13 = vmul.f32 %v2194_v4, %v714_v11  ;;  %v1121_v14 = vmul.f32 %v2194_v4, %v874_v12  ;;  %v716_v15 = vpop.f32.mrb[2].mxu0  ;;  %v876_v16 = vpop.f32.mrb[2].mxu1 }
  0xfe   : > { %v1195_v17 = vadd.f32 %v2196_v5, %v1056_v9  ;;  %v1259_v18 = vadd.f32 %v2196_v5, %v1120_v10  ;;  %v1058_v19 = vmul.f32 %v2192_v3, %v716_v15  ;;  %v1122_v20 = vmul.f32 %v2192_v3, %v876_v16  ;;  %v718_v21 = vpop.f32.mrb[3].mxu0  ;;  %v878_v22 = vpop.f32.mrb[3].mxu1 }
  0xff   : > { %v1196_v23 = vadd.f32 %v2198_v8, %v1057_v13  ;;  %v1260_v24 = vadd.f32 %v2198_v8, %v1121_v14  ;;  %v1059_v25 = vmul.f32 %v2194_v4, %v718_v21  ;;  %v1123_v26 = vmul.f32 %v2194_v4, %v878_v22 }
 0x100   : > { %v1323_v27 = vmax.f32 %v1195_v17, 0.0  ;;  %v1197_v28 = vadd.f32 %v2196_v5, %v1058_v19  ;;  %v1261_v29 = vadd.f32 %v2196_v5, %v1122_v20  ;;  %v1387_v33 = vmax.f32 %v1259_v18, 0.0 }
 0x101   : > { %v1324_v30 = vmax.f32 %v1196_v23, 0.0  ;;  %v1198_v31 = vadd.f32 %v2198_v8, %v1059_v25  ;;  %v1262_v32 = vadd.f32 %v2198_v8, %v1123_v26  ;;  %v1388_v36 = vmax.f32 %v1260_v24, 0.0 }
 0x102   : > { %v1325_v34 = vmax.f32 %v1197_v28, 0.0  ;;  %v1389_v35 = vmax.f32 %v1261_v29, 0.0 }
 0x103   : > { %v1326_v37 = vmax.f32 %v1198_v31, 0.0  ;;  %v1390_v38 = vmax.f32 %v1262_v32, 0.0  ;;  %v722_v39 = vpop.f32.mrb[4].mxu0  ;;  %v882_v40 = vpop.f32.mrb[4].mxu1 }
 0x104   : > { %v1451_v41 = vadd.f32 %v1325_v34, %v1323_v27  ;;  %v1525_v42 = vadd.f32 %v1389_v35, %v1387_v33  ;;  %v1060_v43 = vmul.f32 %v2192_v3, %v722_v39  ;;  %v1124_v44 = vmul.f32 %v2192_v3, %v882_v40  ;;  %v724_v45 = vpop.f32.mrb[5].mxu0  ;;  %v884_v46 = vpop.f32.mrb[5].mxu1 }
 0x105   : > { %v1488_v47 = vadd.f32 %v1326_v37, %v1324_v30  ;;  %v1562_v48 = vadd.f32 %v1390_v38, %v1388_v36  ;;  %v1061_v49 = vmul.f32 %v2194_v4, %v724_v45  ;;  %v1125_v50 = vmul.f32 %v2194_v4, %v884_v46  ;;  %v726_v51 = vpop.f32.mrb[6].mxu0  ;;  %v886_v52 = vpop.f32.mrb[6].mxu1 }
 0x106   : > { %v1199_v53 = vadd.f32 %v2196_v5, %v1060_v43  ;;  %v1263_v54 = vadd.f32 %v2196_v5, %v1124_v44  ;;  %v1062_v55 = vmul.f32 %v2192_v3, %v726_v51  ;;  %v1126_v56 = vmul.f32 %v2192_v3, %v886_v52  ;;  %v728_v57 = vpop.f32.mrb[7].mxu0  ;;  %v888_v58 = vpop.f32.mrb[7].mxu1 }
 0x107   : > { %v1200_v59 = vadd.f32 %v2198_v8, %v1061_v49  ;;  %v1264_v60 = vadd.f32 %v2198_v8, %v1125_v50  ;;  %v1063_v62 = vmul.f32 %v2194_v4, %v728_v57  ;;  %v1127_v63 = vmul.f32 %v2194_v4, %v888_v58 }
 0x108   : > { %v1327_v0 = vmax.f32 %v1199_v53, 0.0  ;;  %v1391_v1 = vmax.f32 %v1263_v54, 0.0  ;;  %v1201_v2 = vadd.f32 %v2196_v5, %v1062_v55  ;;  %v1265_v6 = vadd.f32 %v2196_v5, %v1126_v56 }
 0x109   : > { %v1328_v7 = vmax.f32 %v1200_v59, 0.0  ;;  %v1392_v9 = vmax.f32 %v1264_v60, 0.0  ;;  %v1202_v10 = vadd.f32 %v2198_v8, %v1063_v62  ;;  %v1266_v11 = vadd.f32 %v2198_v8, %v1127_v63 }
 0x10a   : > { %v1452_v12 = vadd.f32 %v1451_v41, %v1327_v0  ;;  %v1526_v13 = vadd.f32 %v1525_v42, %v1391_v1  ;;  %v1329_v14 = vmax.f32 %v1201_v2, 0.0  ;;  %v1393_v15 = vmax.f32 %v1265_v6, 0.0 }
 0x10b   : > { %v1489_v16 = vadd.f32 %v1488_v47, %v1328_v7  ;;  %v1563_v17 = vadd.f32 %v1562_v48, %v1392_v9  ;;  %v1330_v18 = vmax.f32 %v1202_v10, 0.0  ;;  %v1394_v19 = vmax.f32 %v1266_v11, 0.0  ;;  %v732_v20 = vpop.f32.mrb[8].mxu0  ;;  %v892_v21 = vpop.f32.mrb[8].mxu1 }
 0x10c   : > { %v1453_v22 = vadd.f32 %v1452_v12, %v1329_v14  ;;  %v1527_v23 = vadd.f32 %v1526_v13, %v1393_v15  ;;  %v1064_v24 = vmul.f32 %v2192_v3, %v732_v20  ;;  %v1128_v25 = vmul.f32 %v2192_v3, %v892_v21  ;;  %v734_v26 = vpop.f32.mrb[9].mxu0  ;;  %v894_v27 = vpop.f32.mrb[9].mxu1 }
 0x10d   : > { %v1490_v28 = vadd.f32 %v1489_v16, %v1330_v18  ;;  %v1564_v29 = vadd.f32 %v1563_v17, %v1394_v19  ;;  %v1065_v30 = vmul.f32 %v2194_v4, %v734_v26  ;;  %v1129_v31 = vmul.f32 %v2194_v4, %v894_v27  ;;  %v736_v32 = vpop.f32.mrb[10].mxu0  ;;  %v896_v33 = vpop.f32.mrb[10].mxu1 }
 0x10e   : > { %v1203_v34 = vadd.f32 %v2196_v5, %v1064_v24  ;;  %v1267_v35 = vadd.f32 %v2196_v5, %v1128_v25  ;;  %v1066_v36 = vmul.f32 %v2192_v3, %v736_v32  ;;  %v1130_v37 = vmul.f32 %v2192_v3, %v896_v33  ;;  %v738_v38 = vpop.f32.mrb[11].mxu0  ;;  %v898_v39 = vpop.f32.mrb[11].mxu1 }
 0x10f   : > { %v1204_v40 = vadd.f32 %v2198_v8, %v1065_v30  ;;  %v1268_v41 = vadd.f32 %v2198_v8, %v1129_v31  ;;  %v1067_v42 = vmul.f32 %v2194_v4, %v738_v38  ;;  %v1131_v43 = vmul.f32 %v2194_v4, %v898_v39 }
 0x110   : > { %v1331_v44 = vmax.f32 %v1203_v34, 0.0  ;;  %v1395_v45 = vmax.f32 %v1267_v35, 0.0  ;;  %v1205_v46 = vadd.f32 %v2196_v5, %v1066_v36  ;;  %v1269_v47 = vadd.f32 %v2196_v5, %v1130_v37 }
 0x111   : > { %v1332_v48 = vmax.f32 %v1204_v40, 0.0  ;;  %v1396_v49 = vmax.f32 %v1268_v41, 0.0  ;;  %v1206_v50 = vadd.f32 %v2198_v8, %v1067_v42  ;;  %v1270_v51 = vadd.f32 %v2198_v8, %v1131_v43 }
 0x112   : > { %v1454_v52 = vadd.f32 %v1453_v22, %v1331_v44  ;;  %v1528_v53 = vadd.f32 %v1527_v23, %v1395_v45  ;;  %v1333_v54 = vmax.f32 %v1205_v46, 0.0  ;;  %v1397_v55 = vmax.f32 %v1269_v47, 0.0 }
 0x113   : > { %v1491_v56 = vadd.f32 %v1490_v28, %v1332_v48  ;;  %v1565_v57 = vadd.f32 %v1564_v29, %v1396_v49  ;;  %v1334_v58 = vmax.f32 %v1206_v50, 0.0  ;;  %v1398_v59 = vmax.f32 %v1270_v51, 0.0  ;;  %v742_v60 = vpop.f32.mrb[12].mxu0  ;;  %v902_v62 = vpop.f32.mrb[12].mxu1 }
 0x114   : > { %v1455_v63 = vadd.f32 %v1454_v52, %v1333_v54  ;;  %v1529_v0 = vadd.f32 %v1528_v53, %v1397_v55  ;;  %v1068_v1 = vmul.f32 %v2192_v3, %v742_v60  ;;  %v1132_v2 = vmul.f32 %v2192_v3, %v902_v62  ;;  %v744_v6 = vpop.f32.mrb[13].mxu0  ;;  %v904_v7 = vpop.f32.mrb[13].mxu1 }
 0x115   : > { %v1492_v9 = vadd.f32 %v1491_v56, %v1334_v58  ;;  %v1566_v10 = vadd.f32 %v1565_v57, %v1398_v59  ;;  %v1069_v11 = vmul.f32 %v2194_v4, %v744_v6  ;;  %v1133_v12 = vmul.f32 %v2194_v4, %v904_v7  ;;  %v746_v13 = vpop.f32.mrb[14].mxu0  ;;  %v906_v14 = vpop.f32.mrb[14].mxu1 }
 0x116   : > { %v1207_v15 = vadd.f32 %v2196_v5, %v1068_v1  ;;  %v1271_v16 = vadd.f32 %v2196_v5, %v1132_v2  ;;  %v1070_v17 = vmul.f32 %v2192_v3, %v746_v13  ;;  %v1134_v18 = vmul.f32 %v2192_v3, %v906_v14  ;;  %v748_v19 = vpop.f32.mrb[15].mxu0  ;;  %v908_v20 = vpop.f32.mrb[15].mxu1 }
 0x117   : > { %v1208_v21 = vadd.f32 %v2198_v8, %v1069_v11  ;;  %v1272_v22 = vadd.f32 %v2198_v8, %v1133_v12  ;;  %v1071_v23 = vmul.f32 %v2194_v4, %v748_v19  ;;  %v1135_v24 = vmul.f32 %v2194_v4, %v908_v20 }
 0x118   : > { %v1335_v25 = vmax.f32 %v1207_v15, 0.0  ;;  %v1399_v26 = vmax.f32 %v1271_v16, 0.0  ;;  %v1209_v27 = vadd.f32 %v2196_v5, %v1070_v17  ;;  %v1273_v28 = vadd.f32 %v2196_v5, %v1134_v18 }
 0x119   : > { %v1336_v29 = vmax.f32 %v1208_v21, 0.0  ;;  %v1400_v30 = vmax.f32 %v1272_v22, 0.0  ;;  %v1210_v31 = vadd.f32 %v2198_v8, %v1071_v23  ;;  %v1274_v32 = vadd.f32 %v2198_v8, %v1135_v24 }
 0x11a   : > { %v1456_v33 = vadd.f32 %v1455_v63, %v1335_v25  ;;  %v1530_v34 = vadd.f32 %v1529_v0, %v1399_v26  ;;  %v1337_v35 = vmax.f32 %v1209_v27, 0.0  ;;  %v1401_v36 = vmax.f32 %v1273_v28, 0.0 }
 0x11b   : > { %v1493_v37 = vadd.f32 %v1492_v9, %v1336_v29  ;;  %v1567_v38 = vadd.f32 %v1566_v10, %v1400_v30  ;;  %v1338_v39 = vmax.f32 %v1210_v31, 0.0  ;;  %v1402_v40 = vmax.f32 %v1274_v32, 0.0  ;;  %v752_v41 = vpop.f32.mrb[16].mxu0  ;;  %v912_v42 = vpop.f32.mrb[16].mxu1 }
 0x11c   : > { %v1457_v43 = vadd.f32 %v1456_v33, %v1337_v35  ;;  %v1531_v44 = vadd.f32 %v1530_v34, %v1401_v36  ;;  %v1072_v45 = vmul.f32 %v2192_v3, %v752_v41  ;;  %v1136_v46 = vmul.f32 %v2192_v3, %v912_v42  ;;  %v754_v47 = vpop.f32.mrb[17].mxu0  ;;  %v914_v48 = vpop.f32.mrb[17].mxu1 }
 0x11d   : > { %v1494_v49 = vadd.f32 %v1493_v37, %v1338_v39  ;;  %v1568_v50 = vadd.f32 %v1567_v38, %v1402_v40  ;;  %v1073_v51 = vmul.f32 %v2194_v4, %v754_v47  ;;  %v1137_v52 = vmul.f32 %v2194_v4, %v914_v48  ;;  %v756_v53 = vpop.f32.mrb[18].mxu0  ;;  %v916_v54 = vpop.f32.mrb[18].mxu1 }
 0x11e   : > { %v1211_v55 = vadd.f32 %v2196_v5, %v1072_v45  ;;  %v1275_v56 = vadd.f32 %v2196_v5, %v1136_v46  ;;  %v1074_v57 = vmul.f32 %v2192_v3, %v756_v53  ;;  %v1138_v58 = vmul.f32 %v2192_v3, %v916_v54  ;;  %v758_v59 = vpop.f32.mrb[19].mxu0  ;;  %v918_v60 = vpop.f32.mrb[19].mxu1 }
 0x11f   : > { %v1212_v62 = vadd.f32 %v2198_v8, %v1073_v51  ;;  %v1276_v63 = vadd.f32 %v2198_v8, %v1137_v52  ;;  %v1075_v0 = vmul.f32 %v2194_v4, %v758_v59  ;;  %v1139_v1 = vmul.f32 %v2194_v4, %v918_v60 }
 0x120   : > { %v1339_v2 = vmax.f32 %v1211_v55, 0.0  ;;  %v1403_v6 = vmax.f32 %v1275_v56, 0.0  ;;  %v1213_v7 = vadd.f32 %v2196_v5, %v1074_v57  ;;  %v1277_v9 = vadd.f32 %v2196_v5, %v1138_v58 }
 0x121   : > { %v1340_v10 = vmax.f32 %v1212_v62, 0.0  ;;  %v1404_v11 = vmax.f32 %v1276_v63, 0.0  ;;  %v1214_v12 = vadd.f32 %v2198_v8, %v1075_v0  ;;  %v1278_v13 = vadd.f32 %v2198_v8, %v1139_v1 }
 0x122   : > { %v1458_v14 = vadd.f32 %v1457_v43, %v1339_v2  ;;  %v1532_v15 = vadd.f32 %v1531_v44, %v1403_v6  ;;  %v1341_v16 = vmax.f32 %v1213_v7, 0.0  ;;  %v1405_v17 = vmax.f32 %v1277_v9, 0.0 }
 0x123   : > { %v1495_v18 = vadd.f32 %v1494_v49, %v1340_v10  ;;  %v1569_v19 = vadd.f32 %v1568_v50, %v1404_v11  ;;  %v1342_v20 = vmax.f32 %v1214_v12, 0.0  ;;  %v1406_v21 = vmax.f32 %v1278_v13, 0.0  ;;  %v762_v22 = vpop.f32.mrb[20].mxu0  ;;  %v922_v23 = vpop.f32.mrb[20].mxu1 }
 0x124   : > { %v1459_v24 = vadd.f32 %v1458_v14, %v1341_v16  ;;  %v1533_v25 = vadd.f32 %v1532_v15, %v1405_v17  ;;  %v1076_v26 = vmul.f32 %v2192_v3, %v762_v22  ;;  %v1140_v27 = vmul.f32 %v2192_v3, %v922_v23  ;;  %v764_v28 = vpop.f32.mrb[21].mxu0  ;;  %v924_v29 = vpop.f32.mrb[21].mxu1 }
 0x125   : > { %v1496_v30 = vadd.f32 %v1495_v18, %v1342_v20  ;;  %v1570_v31 = vadd.f32 %v1569_v19, %v1406_v21  ;;  %v1077_v32 = vmul.f32 %v2194_v4, %v764_v28  ;;  %v1141_v33 = vmul.f32 %v2194_v4, %v924_v29  ;;  %v766_v34 = vpop.f32.mrb[22].mxu0  ;;  %v926_v35 = vpop.f32.mrb[22].mxu1 }
 0x126   : > { %v1215_v36 = vadd.f32 %v2196_v5, %v1076_v26  ;;  %v1279_v37 = vadd.f32 %v2196_v5, %v1140_v27  ;;  %v1078_v38 = vmul.f32 %v2192_v3, %v766_v34  ;;  %v1142_v39 = vmul.f32 %v2192_v3, %v926_v35  ;;  %v768_v40 = vpop.f32.mrb[23].mxu0  ;;  %v928_v41 = vpop.f32.mrb[23].mxu1 }
 0x127   : > { %v1216_v42 = vadd.f32 %v2198_v8, %v1077_v32  ;;  %v1280_v43 = vadd.f32 %v2198_v8, %v1141_v33  ;;  %v1079_v44 = vmul.f32 %v2194_v4, %v768_v40  ;;  %v1143_v45 = vmul.f32 %v2194_v4, %v928_v41 }
 0x128   : > { %v1343_v46 = vmax.f32 %v1215_v36, 0.0  ;;  %v1407_v47 = vmax.f32 %v1279_v37, 0.0  ;;  %v1217_v48 = vadd.f32 %v2196_v5, %v1078_v38  ;;  %v1281_v49 = vadd.f32 %v2196_v5, %v1142_v39 }
 0x129   : > { %v1344_v50 = vmax.f32 %v1216_v42, 0.0  ;;  %v1408_v51 = vmax.f32 %v1280_v43, 0.0  ;;  %v1218_v52 = vadd.f32 %v2198_v8, %v1079_v44  ;;  %v1282_v53 = vadd.f32 %v2198_v8, %v1143_v45 }
 0x12a   : > { %v1460_v54 = vadd.f32 %v1459_v24, %v1343_v46  ;;  %v1534_v55 = vadd.f32 %v1533_v25, %v1407_v47  ;;  %v1345_v56 = vmax.f32 %v1217_v48, 0.0  ;;  %v1409_v57 = vmax.f32 %v1281_v49, 0.0 }
 0x12b   : > { %v1497_v58 = vadd.f32 %v1496_v30, %v1344_v50  ;;  %v1571_v59 = vadd.f32 %v1570_v31, %v1408_v51  ;;  %v1346_v60 = vmax.f32 %v1218_v52, 0.0  ;;  %v1410_v62 = vmax.f32 %v1282_v53, 0.0  ;;  %v772_v63 = vpop.f32.mrb[24].mxu0  ;;  %v932_v0 = vpop.f32.mrb[24].mxu1 }
 0x12c   : > { %v1461_v1 = vadd.f32 %v1460_v54, %v1345_v56  ;;  %v1535_v2 = vadd.f32 %v1534_v55, %v1409_v57  ;;  %v1080_v6 = vmul.f32 %v2192_v3, %v772_v63  ;;  %v1144_v7 = vmul.f32 %v2192_v3, %v932_v0  ;;  %v774_v9 = vpop.f32.mrb[25].mxu0  ;;  %v934_v10 = vpop.f32.mrb[25].mxu1 }
 0x12d   : > { %v1498_v11 = vadd.f32 %v1497_v58, %v1346_v60  ;;  %v1572_v12 = vadd.f32 %v1571_v59, %v1410_v62  ;;  %v1081_v13 = vmul.f32 %v2194_v4, %v774_v9  ;;  %v1145_v14 = vmul.f32 %v2194_v4, %v934_v10  ;;  %v776_v15 = vpop.f32.mrb[26].mxu0  ;;  %v936_v16 = vpop.f32.mrb[26].mxu1 }
 0x12e   : > { %v1219_v17 = vadd.f32 %v2196_v5, %v1080_v6  ;;  %v1283_v18 = vadd.f32 %v2196_v5, %v1144_v7  ;;  %v1082_v19 = vmul.f32 %v2192_v3, %v776_v15  ;;  %v1146_v20 = vmul.f32 %v2192_v3, %v936_v16  ;;  %v778_v21 = vpop.f32.mrb[27].mxu0  ;;  %v938_v22 = vpop.f32.mrb[27].mxu1 }
 0x12f   : > { %v1220_v23 = vadd.f32 %v2198_v8, %v1081_v13  ;;  %v1284_v24 = vadd.f32 %v2198_v8, %v1145_v14  ;;  %v1083_v25 = vmul.f32 %v2194_v4, %v778_v21  ;;  %v1147_v26 = vmul.f32 %v2194_v4, %v938_v22 }
 0x130   : > { %v1347_v27 = vmax.f32 %v1219_v17, 0.0  ;;  %v1411_v28 = vmax.f32 %v1283_v18, 0.0  ;;  %v1221_v29 = vadd.f32 %v2196_v5, %v1082_v19  ;;  %v1285_v30 = vadd.f32 %v2196_v5, %v1146_v20 }
 0x131   : > { %v1348_v31 = vmax.f32 %v1220_v23, 0.0  ;;  %v1412_v32 = vmax.f32 %v1284_v24, 0.0  ;;  %v1222_v33 = vadd.f32 %v2198_v8, %v1083_v25  ;;  %v1286_v34 = vadd.f32 %v2198_v8, %v1147_v26 }
 0x132   : > { %v1462_v35 = vadd.f32 %v1461_v1, %v1347_v27  ;;  %v1536_v36 = vadd.f32 %v1535_v2, %v1411_v28  ;;  %v1349_v37 = vmax.f32 %v1221_v29, 0.0  ;;  %v1413_v38 = vmax.f32 %v1285_v30, 0.0 }
 0x133   : > { %v1499_v39 = vadd.f32 %v1498_v11, %v1348_v31  ;;  %v1573_v40 = vadd.f32 %v1572_v12, %v1412_v32  ;;  %v1350_v41 = vmax.f32 %v1222_v33, 0.0  ;;  %v1414_v42 = vmax.f32 %v1286_v34, 0.0  ;;  %v782_v43 = vpop.f32.mrb[28].mxu0  ;;  %v942_v44 = vpop.f32.mrb[28].mxu1 }
 0x134   : > { %v1463_v45 = vadd.f32 %v1462_v35, %v1349_v37  ;;  %v1537_v46 = vadd.f32 %v1536_v36, %v1413_v38  ;;  %v1084_v47 = vmul.f32 %v2192_v3, %v782_v43  ;;  %v1148_v48 = vmul.f32 %v2192_v3, %v942_v44  ;;  %v784_v49 = vpop.f32.mrb[29].mxu0  ;;  %v944_v50 = vpop.f32.mrb[29].mxu1 }
 0x135   : > { %v1500_v51 = vadd.f32 %v1499_v39, %v1350_v41  ;;  %v1574_v52 = vadd.f32 %v1573_v40, %v1414_v42  ;;  %v1085_v53 = vmul.f32 %v2194_v4, %v784_v49  ;;  %v1149_v54 = vmul.f32 %v2194_v4, %v944_v50  ;;  %v786_v55 = vpop.f32.mrb[30].mxu0  ;;  %v946_v56 = vpop.f32.mrb[30].mxu1 }
 0x136   : > { %v1223_v57 = vadd.f32 %v2196_v5, %v1084_v47  ;;  %v1287_v58 = vadd.f32 %v2196_v5, %v1148_v48  ;;  %v1086_v59 = vmul.f32 %v2192_v3, %v786_v55  ;;  %v1150_v60 = vmul.f32 %v2192_v3, %v946_v56  ;;  %v788_v62 = vpop.f32.mrb[31].mxu0  ;;  %v948_v63 = vpop.f32.mrb[31].mxu1 }
 0x137   : > { %v1224_v0 = vadd.f32 %v2198_v8, %v1085_v53  ;;  %v1288_v1 = vadd.f32 %v2198_v8, %v1149_v54  ;;  %v1087_v2 = vmul.f32 %v2194_v4, %v788_v62  ;;  %v1151_v6 = vmul.f32 %v2194_v4, %v948_v63 }
 0x138   : > { %v1351_v7 = vmax.f32 %v1223_v57, 0.0  ;;  %v1415_v9 = vmax.f32 %v1287_v58, 0.0  ;;  %v1225_v10 = vadd.f32 %v2196_v5, %v1086_v59  ;;  %v1289_v11 = vadd.f32 %v2196_v5, %v1150_v60 }
 0x139   : > { %v1352_v12 = vmax.f32 %v1224_v0, 0.0  ;;  %v1416_v13 = vmax.f32 %v1288_v1, 0.0  ;;  %v1226_v14 = vadd.f32 %v2198_v8, %v1087_v2  ;;  %v1290_v15 = vadd.f32 %v2198_v8, %v1151_v6 }
 0x13a   : > { %v1464_v16 = vadd.f32 %v1463_v45, %v1351_v7  ;;  %v1538_v17 = vadd.f32 %v1537_v46, %v1415_v9  ;;  %v1353_v18 = vmax.f32 %v1225_v10, 0.0  ;;  %v1417_v19 = vmax.f32 %v1289_v11, 0.0 }
 0x13b   : > { %v1501_v20 = vadd.f32 %v1500_v51, %v1352_v12  ;;  %v1575_v21 = vadd.f32 %v1574_v52, %v1416_v13  ;;  %v1354_v22 = vmax.f32 %v1226_v14, 0.0  ;;  %v1418_v23 = vmax.f32 %v1290_v15, 0.0  ;;  %v792_v24 = vpop.f32.mrb[32].mxu0  ;;  %v952_v25 = vpop.f32.mrb[32].mxu1 }
 0x13c   : > { %v1465_v26 = vadd.f32 %v1464_v16, %v1353_v18  ;;  %v1539_v27 = vadd.f32 %v1538_v17, %v1417_v19  ;;  %v1088_v28 = vmul.f32 %v2192_v3, %v792_v24  ;;  %v1152_v29 = vmul.f32 %v2192_v3, %v952_v25  ;;  %v794_v30 = vpop.f32.mrb[33].mxu0  ;;  %v954_v31 = vpop.f32.mrb[33].mxu1 }
 0x13d   : > { %v1502_v32 = vadd.f32 %v1501_v20, %v1354_v22  ;;  %v1576_v33 = vadd.f32 %v1575_v21, %v1418_v23  ;;  %v1089_v34 = vmul.f32 %v2194_v4, %v794_v30  ;;  %v1153_v35 = vmul.f32 %v2194_v4, %v954_v31  ;;  %v796_v36 = vpop.f32.mrb[34].mxu0  ;;  %v956_v37 = vpop.f32.mrb[34].mxu1 }
 0x13e   : > { %v1227_v38 = vadd.f32 %v2196_v5, %v1088_v28  ;;  %v1291_v39 = vadd.f32 %v2196_v5, %v1152_v29  ;;  %v1090_v40 = vmul.f32 %v2192_v3, %v796_v36  ;;  %v1154_v41 = vmul.f32 %v2192_v3, %v956_v37  ;;  %v798_v42 = vpop.f32.mrb[35].mxu0  ;;  %v958_v43 = vpop.f32.mrb[35].mxu1 }
 0x13f   : > { %v1228_v44 = vadd.f32 %v2198_v8, %v1089_v34  ;;  %v1292_v45 = vadd.f32 %v2198_v8, %v1153_v35  ;;  %v1091_v46 = vmul.f32 %v2194_v4, %v798_v42  ;;  %v1155_v47 = vmul.f32 %v2194_v4, %v958_v43 }
 0x140   : > { %v1355_v48 = vmax.f32 %v1227_v38, 0.0  ;;  %v1419_v49 = vmax.f32 %v1291_v39, 0.0  ;;  %v1229_v50 = vadd.f32 %v2196_v5, %v1090_v40  ;;  %v1293_v51 = vadd.f32 %v2196_v5, %v1154_v41 }
 0x141   : > { %v1356_v52 = vmax.f32 %v1228_v44, 0.0  ;;  %v1420_v53 = vmax.f32 %v1292_v45, 0.0  ;;  %v1230_v54 = vadd.f32 %v2198_v8, %v1091_v46  ;;  %v1294_v55 = vadd.f32 %v2198_v8, %v1155_v47 }
 0x142   : > { %v1466_v56 = vadd.f32 %v1465_v26, %v1355_v48  ;;  %v1540_v57 = vadd.f32 %v1539_v27, %v1419_v49  ;;  %v1357_v58 = vmax.f32 %v1229_v50, 0.0  ;;  %v1421_v59 = vmax.f32 %v1293_v51, 0.0 }
 0x143   : > { %v1503_v60 = vadd.f32 %v1502_v32, %v1356_v52  ;;  %v1577_v62 = vadd.f32 %v1576_v33, %v1420_v53  ;;  %v1358_v63 = vmax.f32 %v1230_v54, 0.0  ;;  %v1422_v0 = vmax.f32 %v1294_v55, 0.0  ;;  %v802_v1 = vpop.f32.mrb[36].mxu0  ;;  %v962_v2 = vpop.f32.mrb[36].mxu1 }
 0x144   : > { %v1467_v6 = vadd.f32 %v1466_v56, %v1357_v58  ;;  %v1541_v7 = vadd.f32 %v1540_v57, %v1421_v59  ;;  %v1092_v9 = vmul.f32 %v2192_v3, %v802_v1  ;;  %v1156_v10 = vmul.f32 %v2192_v3, %v962_v2  ;;  %v804_v11 = vpop.f32.mrb[37].mxu0  ;;  %v964_v12 = vpop.f32.mrb[37].mxu1 }
 0x145   : > { %v1504_v13 = vadd.f32 %v1503_v60, %v1358_v63  ;;  %v1578_v14 = vadd.f32 %v1577_v62, %v1422_v0  ;;  %v1093_v15 = vmul.f32 %v2194_v4, %v804_v11  ;;  %v1157_v16 = vmul.f32 %v2194_v4, %v964_v12  ;;  %v806_v17 = vpop.f32.mrb[38].mxu0  ;;  %v966_v18 = vpop.f32.mrb[38].mxu1 }
 0x146   : > { %v1231_v19 = vadd.f32 %v2196_v5, %v1092_v9  ;;  %v1295_v20 = vadd.f32 %v2196_v5, %v1156_v10  ;;  %v1094_v21 = vmul.f32 %v2192_v3, %v806_v17  ;;  %v1158_v22 = vmul.f32 %v2192_v3, %v966_v18  ;;  %v808_v23 = vpop.f32.mrb[39].mxu0  ;;  %v968_v24 = vpop.f32.mrb[39].mxu1 }
 0x147   : > { %v1232_v25 = vadd.f32 %v2198_v8, %v1093_v15  ;;  %v1296_v26 = vadd.f32 %v2198_v8, %v1157_v16  ;;  %v1095_v27 = vmul.f32 %v2194_v4, %v808_v23  ;;  %v1159_v28 = vmul.f32 %v2194_v4, %v968_v24 }
 0x148   : > { %v1359_v29 = vmax.f32 %v1231_v19, 0.0  ;;  %v1423_v30 = vmax.f32 %v1295_v20, 0.0  ;;  %v1233_v31 = vadd.f32 %v2196_v5, %v1094_v21  ;;  %v1297_v32 = vadd.f32 %v2196_v5, %v1158_v22 }
 0x149   : > { %v1360_v33 = vmax.f32 %v1232_v25, 0.0  ;;  %v1424_v34 = vmax.f32 %v1296_v26, 0.0  ;;  %v1234_v35 = vadd.f32 %v2198_v8, %v1095_v27  ;;  %v1298_v36 = vadd.f32 %v2198_v8, %v1159_v28 }
 0x14a   : > { %v1468_v37 = vadd.f32 %v1467_v6, %v1359_v29  ;;  %v1542_v38 = vadd.f32 %v1541_v7, %v1423_v30  ;;  %v1361_v39 = vmax.f32 %v1233_v31, 0.0  ;;  %v1425_v40 = vmax.f32 %v1297_v32, 0.0 }
 0x14b   : > { %v1505_v41 = vadd.f32 %v1504_v13, %v1360_v33  ;;  %v1579_v42 = vadd.f32 %v1578_v14, %v1424_v34  ;;  %v1362_v43 = vmax.f32 %v1234_v35, 0.0  ;;  %v1426_v44 = vmax.f32 %v1298_v36, 0.0  ;;  %v812_v45 = vpop.f32.mrb[40].mxu0  ;;  %v972_v46 = vpop.f32.mrb[40].mxu1 }
 0x14c   : > { %v1469_v47 = vadd.f32 %v1468_v37, %v1361_v39  ;;  %v1543_v48 = vadd.f32 %v1542_v38, %v1425_v40  ;;  %v1096_v49 = vmul.f32 %v2192_v3, %v812_v45  ;;  %v1160_v50 = vmul.f32 %v2192_v3, %v972_v46  ;;  %v814_v51 = vpop.f32.mrb[41].mxu0  ;;  %v974_v52 = vpop.f32.mrb[41].mxu1 }
 0x14d   : > { %v1506_v53 = vadd.f32 %v1505_v41, %v1362_v43  ;;  %v1580_v54 = vadd.f32 %v1579_v42, %v1426_v44  ;;  %v1097_v55 = vmul.f32 %v2194_v4, %v814_v51  ;;  %v1161_v56 = vmul.f32 %v2194_v4, %v974_v52  ;;  %v816_v57 = vpop.f32.mrb[42].mxu0  ;;  %v976_v58 = vpop.f32.mrb[42].mxu1 }
 0x14e   : > { %v1235_v59 = vadd.f32 %v2196_v5, %v1096_v49  ;;  %v1299_v60 = vadd.f32 %v2196_v5, %v1160_v50  ;;  %v1098_v62 = vmul.f32 %v2192_v3, %v816_v57  ;;  %v1162_v63 = vmul.f32 %v2192_v3, %v976_v58  ;;  %v818_v0 = vpop.f32.mrb[43].mxu0  ;;  %v978_v1 = vpop.f32.mrb[43].mxu1 }
 0x14f   : > { %v1236_v2 = vadd.f32 %v2198_v8, %v1097_v55  ;;  %v1300_v6 = vadd.f32 %v2198_v8, %v1161_v56  ;;  %v1099_v7 = vmul.f32 %v2194_v4, %v818_v0  ;;  %v1163_v9 = vmul.f32 %v2194_v4, %v978_v1 }
 0x150   : > { %v1363_v10 = vmax.f32 %v1235_v59, 0.0  ;;  %v1427_v11 = vmax.f32 %v1299_v60, 0.0  ;;  %v1237_v12 = vadd.f32 %v2196_v5, %v1098_v62  ;;  %v1301_v13 = vadd.f32 %v2196_v5, %v1162_v63 }
 0x151   : > { %v1364_v14 = vmax.f32 %v1236_v2, 0.0  ;;  %v1428_v15 = vmax.f32 %v1300_v6, 0.0  ;;  %v1238_v16 = vadd.f32 %v2198_v8, %v1099_v7  ;;  %v1302_v17 = vadd.f32 %v2198_v8, %v1163_v9 }
 0x152   : > { %v1470_v18 = vadd.f32 %v1469_v47, %v1363_v10  ;;  %v1544_v19 = vadd.f32 %v1543_v48, %v1427_v11  ;;  %v1365_v20 = vmax.f32 %v1237_v12, 0.0  ;;  %v1429_v21 = vmax.f32 %v1301_v13, 0.0 }
 0x153   : > { %v1507_v22 = vadd.f32 %v1506_v53, %v1364_v14  ;;  %v1581_v23 = vadd.f32 %v1580_v54, %v1428_v15  ;;  %v1366_v24 = vmax.f32 %v1238_v16, 0.0  ;;  %v1430_v25 = vmax.f32 %v1302_v17, 0.0  ;;  %v822_v26 = vpop.f32.mrb[44].mxu0  ;;  %v982_v27 = vpop.f32.mrb[44].mxu1 }
 0x154   : > { %v1471_v28 = vadd.f32 %v1470_v18, %v1365_v20  ;;  %v1545_v29 = vadd.f32 %v1544_v19, %v1429_v21  ;;  %v1100_v30 = vmul.f32 %v2192_v3, %v822_v26  ;;  %v1164_v31 = vmul.f32 %v2192_v3, %v982_v27  ;;  %v824_v32 = vpop.f32.mrb[45].mxu0  ;;  %v984_v33 = vpop.f32.mrb[45].mxu1 }
 0x155   : > { %v1508_v34 = vadd.f32 %v1507_v22, %v1366_v24  ;;  %v1582_v35 = vadd.f32 %v1581_v23, %v1430_v25  ;;  %v1101_v36 = vmul.f32 %v2194_v4, %v824_v32  ;;  %v1165_v37 = vmul.f32 %v2194_v4, %v984_v33  ;;  %v826_v38 = vpop.f32.mrb[46].mxu0  ;;  %v986_v39 = vpop.f32.mrb[46].mxu1 }
 0x156   : > { %v1239_v40 = vadd.f32 %v2196_v5, %v1100_v30  ;;  %v1303_v41 = vadd.f32 %v2196_v5, %v1164_v31  ;;  %v1102_v42 = vmul.f32 %v2192_v3, %v826_v38  ;;  %v1166_v43 = vmul.f32 %v2192_v3, %v986_v39  ;;  %v828_v44 = vpop.f32.mrb[47].mxu0  ;;  %v988_v45 = vpop.f32.mrb[47].mxu1 }
 0x157   : > { %v1240_v46 = vadd.f32 %v2198_v8, %v1101_v36  ;;  %v1304_v47 = vadd.f32 %v2198_v8, %v1165_v37  ;;  %v1103_v48 = vmul.f32 %v2194_v4, %v828_v44  ;;  %v1167_v49 = vmul.f32 %v2194_v4, %v988_v45 }
 0x158   : > { %v1367_v50 = vmax.f32 %v1239_v40, 0.0  ;;  %v1431_v51 = vmax.f32 %v1303_v41, 0.0  ;;  %v1241_v52 = vadd.f32 %v2196_v5, %v1102_v42  ;;  %v1305_v53 = vadd.f32 %v2196_v5, %v1166_v43 }
 0x159   : > { %v1368_v54 = vmax.f32 %v1240_v46, 0.0  ;;  %v1432_v55 = vmax.f32 %v1304_v47, 0.0  ;;  %v1242_v56 = vadd.f32 %v2198_v8, %v1103_v48  ;;  %v1306_v57 = vadd.f32 %v2198_v8, %v1167_v49 }
 0x15a   : > { %v1472_v58 = vadd.f32 %v1471_v28, %v1367_v50  ;;  %v1546_v59 = vadd.f32 %v1545_v29, %v1431_v51  ;;  %v1369_v60 = vmax.f32 %v1241_v52, 0.0  ;;  %v1433_v62 = vmax.f32 %v1305_v53, 0.0 }
 0x15b   : > { %v1509_v63 = vadd.f32 %v1508_v34, %v1368_v54  ;;  %v1583_v0 = vadd.f32 %v1582_v35, %v1432_v55  ;;  %v1370_v1 = vmax.f32 %v1242_v56, 0.0  ;;  %v1434_v2 = vmax.f32 %v1306_v57, 0.0  ;;  %v832_v6 = vpop.f32.mrb[48].mxu0  ;;  %v992_v7 = vpop.f32.mrb[48].mxu1 }
 0x15c   : > { %v1473_v9 = vadd.f32 %v1472_v58, %v1369_v60  ;;  %v1547_v10 = vadd.f32 %v1546_v59, %v1433_v62  ;;  %v1104_v11 = vmul.f32 %v2192_v3, %v832_v6  ;;  %v1168_v12 = vmul.f32 %v2192_v3, %v992_v7  ;;  %v834_v13 = vpop.f32.mrb[49].mxu0  ;;  %v994_v14 = vpop.f32.mrb[49].mxu1 }
 0x15d   : > { %v1510_v15 = vadd.f32 %v1509_v63, %v1370_v1  ;;  %v1584_v16 = vadd.f32 %v1583_v0, %v1434_v2  ;;  %v1105_v17 = vmul.f32 %v2194_v4, %v834_v13  ;;  %v1169_v18 = vmul.f32 %v2194_v4, %v994_v14  ;;  %v836_v19 = vpop.f32.mrb[50].mxu0  ;;  %v996_v20 = vpop.f32.mrb[50].mxu1 }
 0x15e   : > { %v1243_v21 = vadd.f32 %v2196_v5, %v1104_v11  ;;  %v1307_v22 = vadd.f32 %v2196_v5, %v1168_v12  ;;  %v1106_v23 = vmul.f32 %v2192_v3, %v836_v19  ;;  %v1170_v24 = vmul.f32 %v2192_v3, %v996_v20  ;;  %v838_v25 = vpop.f32.mrb[51].mxu0  ;;  %v998_v26 = vpop.f32.mrb[51].mxu1 }
 0x15f   : > { %v1244_v27 = vadd.f32 %v2198_v8, %v1105_v17  ;;  %v1308_v28 = vadd.f32 %v2198_v8, %v1169_v18  ;;  %v1107_v29 = vmul.f32 %v2194_v4, %v838_v25  ;;  %v1171_v30 = vmul.f32 %v2194_v4, %v998_v26 }
 0x160   : > { %v1371_v31 = vmax.f32 %v1243_v21, 0.0  ;;  %v1435_v32 = vmax.f32 %v1307_v22, 0.0  ;;  %v1245_v33 = vadd.f32 %v2196_v5, %v1106_v23  ;;  %v1309_v34 = vadd.f32 %v2196_v5, %v1170_v24 }
 0x161   : > { %v1372_v35 = vmax.f32 %v1244_v27, 0.0  ;;  %v1436_v36 = vmax.f32 %v1308_v28, 0.0  ;;  %v1246_v37 = vadd.f32 %v2198_v8, %v1107_v29  ;;  %v1310_v38 = vadd.f32 %v2198_v8, %v1171_v30 }
 0x162   : > { %v1474_v39 = vadd.f32 %v1473_v9, %v1371_v31  ;;  %v1548_v40 = vadd.f32 %v1547_v10, %v1435_v32  ;;  %v1373_v41 = vmax.f32 %v1245_v33, 0.0  ;;  %v1437_v42 = vmax.f32 %v1309_v34, 0.0 }
 0x163   : > { %v1511_v43 = vadd.f32 %v1510_v15, %v1372_v35  ;;  %v1585_v44 = vadd.f32 %v1584_v16, %v1436_v36  ;;  %v1374_v45 = vmax.f32 %v1246_v37, 0.0  ;;  %v1438_v46 = vmax.f32 %v1310_v38, 0.0  ;;  %v842_v47 = vpop.f32.mrb[52].mxu0  ;;  %v1002_v48 = vpop.f32.mrb[52].mxu1 }
 0x164   : > { %v1475_v49 = vadd.f32 %v1474_v39, %v1373_v41  ;;  %v1549_v50 = vadd.f32 %v1548_v40, %v1437_v42  ;;  %v1108_v51 = vmul.f32 %v2192_v3, %v842_v47  ;;  %v1172_v52 = vmul.f32 %v2192_v3, %v1002_v48  ;;  %v844_v53 = vpop.f32.mrb[53].mxu0  ;;  %v1004_v54 = vpop.f32.mrb[53].mxu1 }
 0x165   : > { %v1512_v55 = vadd.f32 %v1511_v43, %v1374_v45  ;;  %v1586_v56 = vadd.f32 %v1585_v44, %v1438_v46  ;;  %v1109_v57 = vmul.f32 %v2194_v4, %v844_v53  ;;  %v1173_v58 = vmul.f32 %v2194_v4, %v1004_v54  ;;  %v846_v59 = vpop.f32.mrb[54].mxu0  ;;  %v1006_v60 = vpop.f32.mrb[54].mxu1 }
 0x166   : > { %v1247_v62 = vadd.f32 %v2196_v5, %v1108_v51  ;;  %v1311_v63 = vadd.f32 %v2196_v5, %v1172_v52  ;;  %v1110_v0 = vmul.f32 %v2192_v3, %v846_v59  ;;  %v1174_v1 = vmul.f32 %v2192_v3, %v1006_v60  ;;  %v848_v2 = vpop.f32.mrb[55].mxu0  ;;  %v1008_v6 = vpop.f32.mrb[55].mxu1 }
 0x167   : > { %v1248_v7 = vadd.f32 %v2198_v8, %v1109_v57  ;;  %v1312_v9 = vadd.f32 %v2198_v8, %v1173_v58  ;;  %v1111_v10 = vmul.f32 %v2194_v4, %v848_v2  ;;  %v1175_v11 = vmul.f32 %v2194_v4, %v1008_v6 }
 0x168   : > { %v1375_v12 = vmax.f32 %v1247_v62, 0.0  ;;  %v1439_v13 = vmax.f32 %v1311_v63, 0.0  ;;  %v1249_v14 = vadd.f32 %v2196_v5, %v1110_v0  ;;  %v1313_v15 = vadd.f32 %v2196_v5, %v1174_v1 }
 0x169   : > { %v1376_v16 = vmax.f32 %v1248_v7, 0.0  ;;  %v1440_v17 = vmax.f32 %v1312_v9, 0.0  ;;  %v1250_v18 = vadd.f32 %v2198_v8, %v1111_v10  ;;  %v1314_v19 = vadd.f32 %v2198_v8, %v1175_v11 }
 0x16a   : > { %v1476_v20 = vadd.f32 %v1475_v49, %v1375_v12  ;;  %v1550_v21 = vadd.f32 %v1549_v50, %v1439_v13  ;;  %v1377_v22 = vmax.f32 %v1249_v14, 0.0  ;;  %v1441_v23 = vmax.f32 %v1313_v15, 0.0 }
 0x16b   : > { %v1513_v24 = vadd.f32 %v1512_v55, %v1376_v16  ;;  %v1587_v25 = vadd.f32 %v1586_v56, %v1440_v17  ;;  %v1378_v26 = vmax.f32 %v1250_v18, 0.0  ;;  %v1442_v27 = vmax.f32 %v1314_v19, 0.0  ;;  %v852_v28 = vpop.f32.mrb[56].mxu0  ;;  %v1012_v29 = vpop.f32.mrb[56].mxu1 }
 0x16c   : > { %v1477_v30 = vadd.f32 %v1476_v20, %v1377_v22  ;;  %v1551_v31 = vadd.f32 %v1550_v21, %v1441_v23  ;;  %v1112_v32 = vmul.f32 %v2192_v3, %v852_v28  ;;  %v1176_v33 = vmul.f32 %v2192_v3, %v1012_v29  ;;  %v854_v34 = vpop.f32.mrb[57].mxu0  ;;  %v1014_v35 = vpop.f32.mrb[57].mxu1 }
 0x16d   : > { %v1514_v36 = vadd.f32 %v1513_v24, %v1378_v26  ;;  %v1588_v37 = vadd.f32 %v1587_v25, %v1442_v27  ;;  %v1113_v38 = vmul.f32 %v2194_v4, %v854_v34  ;;  %v1177_v39 = vmul.f32 %v2194_v4, %v1014_v35  ;;  %v856_v40 = vpop.f32.mrb[58].mxu0  ;;  %v1016_v41 = vpop.f32.mrb[58].mxu1 }
 0x16e   : > { %v1251_v42 = vadd.f32 %v2196_v5, %v1112_v32  ;;  %v1315_v43 = vadd.f32 %v2196_v5, %v1176_v33  ;;  %v1114_v44 = vmul.f32 %v2192_v3, %v856_v40  ;;  %v1178_v45 = vmul.f32 %v2192_v3, %v1016_v41  ;;  %v858_v46 = vpop.f32.mrb[59].mxu0  ;;  %v1018_v47 = vpop.f32.mrb[59].mxu1 }
 0x16f   : > { %v1252_v48 = vadd.f32 %v2198_v8, %v1113_v38  ;;  %v1316_v49 = vadd.f32 %v2198_v8, %v1177_v39  ;;  %v1115_v50 = vmul.f32 %v2194_v4, %v858_v46  ;;  %v1179_v51 = vmul.f32 %v2194_v4, %v1018_v47 }
 0x170   : > { %v1379_v52 = vmax.f32 %v1251_v42, 0.0  ;;  %v1443_v53 = vmax.f32 %v1315_v43, 0.0  ;;  %v1253_v54 = vadd.f32 %v2196_v5, %v1114_v44  ;;  %v1317_v55 = vadd.f32 %v2196_v5, %v1178_v45 }
 0x171   : > { %v1380_v56 = vmax.f32 %v1252_v48, 0.0  ;;  %v1444_v57 = vmax.f32 %v1316_v49, 0.0  ;;  %v1254_v58 = vadd.f32 %v2198_v8, %v1115_v50  ;;  %v1318_v59 = vadd.f32 %v2198_v8, %v1179_v51 }
 0x172   : > { %v1478_v60 = vadd.f32 %v1477_v30, %v1379_v52  ;;  %v1552_v62 = vadd.f32 %v1551_v31, %v1443_v53  ;;  %v1381_v63 = vmax.f32 %v1253_v54, 0.0  ;;  %v1445_v0 = vmax.f32 %v1317_v55, 0.0 }
 0x173   : > { %v1515_v1 = vadd.f32 %v1514_v36, %v1380_v56  ;;  %v1589_v2 = vadd.f32 %v1588_v37, %v1444_v57  ;;  %v1382_v6 = vmax.f32 %v1254_v58, 0.0  ;;  %v1446_v7 = vmax.f32 %v1318_v59, 0.0  ;;  %v862_v9 = vpop.f32.mrb[60].mxu0  ;;  %v1022_v10 = vpop.f32.mrb[60].mxu1 }
 0x174   : > { %v1479_v11 = vadd.f32 %v1478_v60, %v1381_v63  ;;  %v1553_v12 = vadd.f32 %v1552_v62, %v1445_v0  ;;  %v1116_v13 = vmul.f32 %v2192_v3, %v862_v9  ;;  %v1180_v14 = vmul.f32 %v2192_v3, %v1022_v10  ;;  %v864_v15 = vpop.f32.mrb[61].mxu0  ;;  %v1024_v16 = vpop.f32.mrb[61].mxu1 }
 0x175   : > { %v1516_v17 = vadd.f32 %v1515_v1, %v1382_v6  ;;  %v1590_v18 = vadd.f32 %v1589_v2, %v1446_v7  ;;  %v1117_v19 = vmul.f32 %v2194_v4, %v864_v15  ;;  %v1181_v20 = vmul.f32 %v2194_v4, %v1024_v16  ;;  %v866_v21 = vpop.f32.mrb[62].mxu0  ;;  %v1026_v22 = vpop.f32.mrb[62].mxu1 }
 0x176   : > { %v1255_v23 = vadd.f32 %v2196_v5, %v1116_v13  ;;  %v1319_v24 = vadd.f32 %v2196_v5, %v1180_v14  ;;  %v1118_v25 = vmul.f32 %v2192_v3, %v866_v21  ;;  %v1182_v26 = vmul.f32 %v2192_v3, %v1026_v22  ;;  %v868_v27 = vpop.f32.mrb[63].mxu0  ;;  %v1028_v28 = vpop.f32.mrb[63].mxu1 }
 0x177   : > { %v1256_v29 = vadd.f32 %v2198_v8, %v1117_v19  ;;  %v1320_v30 = vadd.f32 %v2198_v8, %v1181_v20  ;;  %v1119_v31 = vmul.f32 %v2194_v4, %v868_v27  ;;  %v1183_v47 = vmul.f32 %v2194_v4, %v1028_v28 }
 0x178   : > { %v1383_v32 = vmax.f32 %v1255_v23, 0.0  ;;  %v1447_v33 = vmax.f32 %v1319_v24, 0.0  ;;  %v1257_v34 = vadd.f32 %v2196_v5, %v1118_v25  ;;  %v1321_v35 = vadd.f32 %v2196_v5, %v1182_v26 }
 0x179   : > { %v1384_v36 = vmax.f32 %v1256_v29, 0.0  ;;  %v1448_v37 = vmax.f32 %v1320_v30, 0.0  ;;  %v1258_v38 = vadd.f32 %v2198_v8, %v1119_v31  ;;  %v1322_v5 = vadd.f32 %v2198_v8, %v1183_v47 }
 0x17a   : > { %v1480_v39 = vadd.f32 %v1479_v11, %v1383_v32  ;;  %v1554_v3 = vadd.f32 %v1553_v12, %v1447_v33  ;;  %v1385_v40 = vmax.f32 %v1257_v34, 0.0  ;;  %v1449_v41 = vmax.f32 %v1321_v35, 0.0 }
 0x17b   : > { %v1517_v42 = vadd.f32 %v1516_v17, %v1384_v36  ;;  %v1591_v43 = vadd.f32 %v1590_v18, %v1448_v37  ;;  %v1386_v44 = vmax.f32 %v1258_v38, 0.0  ;;  %v1450_v54 = vmax.f32 %v1322_v5, 0.0 }
 0x17c   : > { %v1481_v45 = vadd.f32 %v1480_v39, %v1385_v40  ;;  %v1555_v46 = vadd.f32 %v1554_v3, %v1449_v41  ;;  %v1996_v60 = vmov 1966171168   ;;  %v1997_v15 = vmov 1935823168  }
 0x17d   : > { %v1518_v48 = vadd.f32 %v1517_v42, %v1386_v44  ;;  %v1592_v58 = vadd.f32 %v1591_v43, %v1450_v54  ;;  %v1614_v62 = vunpack.c.l.s4 %v1996_v60  ;;  %v1643_v16 = vunpack.c.l.s4 %v1997_v15 }
 0x17e   : > { %v1482_v49 = vrot.slane %v1481_v45, 4  ;;  %v1556_v50 = vrot.slane %v1555_v46, 4 }
 0x17f   : > { %v1519_v51 = vrot.slane %v1518_v48, 4  ;;  %v1593_v1 = vrot.slane %v1592_v58, 4  ;;  %v1615_v8 = vunpack.c.0.s8 %v1614_v62  ;;  %v1644_v23 = vunpack.c.0.s8 %v1643_v16 }
 0x180   : > { %v1483_v52 = vadd.f32 %v1482_v49, %v1481_v45  ;;  %v1557_v53 = vadd.f32 %v1556_v50, %v1555_v46 }
 0x181   : > { %v1520_v55 = vadd.f32 %v1519_v51, %v1518_v48  ;;  %v1594_v7 = vadd.f32 %v1593_v1, %v1592_v58  ;;  %v1618_v19 = vsub.s32 %v1615_v8, %v2185_v61  ;;  %v1647_v28 = vsub.s32 %v1644_v23, %v2185_v61 }
 0x182   : > { %v1484_v56 = vrot.slane %v1483_v52, 2  ;;  %v1558_v57 = vrot.slane %v1557_v53, 2 }
 0x183   : > { %v1521_v59 = vrot.slane %v1520_v55, 2  ;;  %v1595_v11 = vrot.slane %v1594_v7, 2 }
 0x184   : > { %v1485_v63 = vadd.f32 %v1484_v56, %v1483_v52  ;;  %v1559_v0 = vadd.f32 %v1558_v57, %v1557_v53 }
 0x185   : > { %v1522_v4 = vadd.f32 %v1521_v59, %v1520_v55  ;;  %v1596_v17 = vadd.f32 %v1595_v11, %v1594_v7 }
 0x186   : > { %v1486_v2 = vrot.slane %v1485_v63, 1  ;;  %v1560_v6 = vrot.slane %v1559_v0, 1 }
 0x187   : > { %v1523_v9 = vrot.slane %v1522_v4, 1  ;;  %v1597_v20 = vrot.slane %v1596_v17, 1 }
 0x188   : > { %v1487_v10 = vadd.f32 %v1486_v2, %v1485_v63  ;;  %v1561_v14 = vadd.f32 %v1560_v6, %v1559_v0 }
 0x189   : > { %v1524_v12 = vadd.f32 %v1523_v9, %v1522_v4  ;;  %v1598_v24 = vadd.f32 %v1597_v20, %v1596_v17 }
 0x18a   : > { %v1600_v13 = vmul.f32 0.00390625, %v1487_v10  ;;  %v1602_v22 = vmul.f32 0.00390625, %v1561_v14 }
 0x18b   : > { %v1601_v18 = vmul.f32 0.00390625, %v1524_v12  ;;  %v1603_v26 = vmul.f32 0.00390625, %v1598_v24 }
 0x18d   : > { %v1864_v21 = vpack.c.bf16 %v1601_v18, %v1600_v13  ;;  %v1865_v29 = vpack.c.bf16 %v1603_v26, %v1602_v22 }
 0x18f   : > { %v1619_v25 = vrot.slane %v1864_v21, %v1618_v19  ;;  %v1634_v30 = vrot.slane %v1865_v29, %v1618_v19 }
 0x191   : > { %v1626_v27 = vrot.slane %v1619_v25, %v1618_v19  ;;  %v1641_v32 = vrot.slane %v1634_v30, %v1618_v19 }
 0x193   : > { %v1648_v31 = vrot.slane %v1626_v27, %v1647_v28  ;;  %v1662_v33 = vrot.slane %v1641_v32, %v1647_v28 }
 0x195   : > { %v1655_v34 = vrot.slane %v1648_v31, %v1647_v28  ;;  %v1669_v35 = vrot.slane %v1662_v33, %v1647_v28 }
 0x197   : > { %v1672_v36 = vunpack.c.l.b16 %v1669_v35  ;;  %v1673_v37 = vunpack.c.h.b16 %v1669_v35  ;;  %v1670_v38 = vunpack.c.l.b16 %v1655_v34  ;;  %v1671_v39 = vunpack.c.h.b16 %v1655_v34 }
 0x199   : > { %v1674_v3 = vrot.slane %v1672_v36, 7  ;;  %v1677_v40 = vrot.slane %v1673_v37, 7 }
 0x19b   : > { %v1676_v41 = vsel %vm1675_vm0, %v1674_v3, %v1670_v38  ;;  %v1678_v42 = vsel %vm1675_vm0, %v1677_v40, %v1671_v39 }
 0x19c   : > { %v1679_v43 = vpack.c.b16 %v1678_v42, %v1676_v41 }
 0x19e   : > { %v1686_v61 = vrot.slane %v1679_v43, %v1618_v19 }
 0x1a0   : > { %1866 = vst.sshfl [vmem:[%s324_s9] sm:$0x5 pattern:$0x73625140] %v1686_v61 }
 0x1a1 PF: > { %s16_s23 = sadd.s32 1, %s1993_s23   ;;  %s2478_s21 = smov %s1989_s22 }
 0x1a2   : > { %p13_p5 = scmp.ge.s32.totalorder %s16_s23, 4   ;;  %s2479_s22 = smov %s2481_s24 }
 0x1a4   :  { %15 = sbr.rel (!%p13_p5) target bundleno = 2 (0x2), region = 80 }

// kernel: barlow_twins_forward.8
= control target key start
LH: loop header
LB: loop body
LE: loop exit
PB: predicated region body
PF: predicated region fallthrough
CT: control target
= control target key end

     0   :  { %s1158_s15 = smov 0   ;;  %s1160_s16 = smov 0   ;;  %s1364_s0 = inlined_call_operand.vmem [shape: bf16[4,256], index: 0, kind: input, shape index: {}]   ;;  %s1365_s1 = inlined_call_operand.vmem [shape: bf16[256,512], index: 1, kind: input, shape index: {}]   ;;  %s1366_s2 = inlined_call_operand.vmem [shape: f32[1,512], index: 2, kind: input, shape index: {}]   ;;  %s1367_s3 = inlined_call_operand.vmem [shape: f32[1,512], index: 3, kind: input, shape index: {}]   ;;  %s1368_s4 = inlined_call_operand.vmem [shape: bf16[4,512], index: 4, kind: output, shape index: {}]  }
   0x1   :  { %s1162_s17 = smov 0   ;;  %s1164_s18 = smov 0  }
   0x2   :  { %s1166_s19 = smov 0  }
   0x3 LB: > { %s26_s20 = sadd.s32 1, %s1127_s18  ;;  %p63_p1 = scmp.ne.s32.totalorder %s1119_s16, %s1115_s15  ;;  %s1131_s19 = sphi %s1166_s19, %s14_s19   ;;  %s1127_s18 = sphi %s1164_s18, %s1372_s18   ;;  %s1123_s17 = sphi %s1162_s17, %s1371_s17   ;;  %s1119_s16 = sphi %s1160_s16, %s1370_s16   ;;  %s1115_s15 = sphi %s1158_s15, %s1369_s15  }
   0x4   : > { %p28_p0 = scmp.ge.s32.totalorder %s26_s20, 2  ;;  %p64_p2 = scmp.eq.s32.totalorder %s1131_s19, 0 }
   0x5   : > { %s56_s22 = sadd.s32 1, %s1119_s16  ;;  %p948_p5 = scmp.ge.s32.totalorder %s1131_s19, 2 }
   0x6   : > { %s1374_s20 = smov (%p28_p0, %s26_s20), 0  ;;  %p65_p3 = por %p64_p2, %p63_p1 }
   0x7   : > { %s52_s21 = ssub.s32 %s1127_s18, %s1374_s20  ;;  %170 = sbr.rel (%p948_p5) target bundleno = 34 (0x22), region = 20 }
   0x8   : > { %p54_p4 = scmp.eq.s32.totalorder %s52_s21, 0 }
   0xa   : > { %s1193_s23 = scalar_select %p54_p4, %s1119_s16, %s56_s22  }
   0xe   : > { %173 = sbr.rel (!%p65_p3) target bundleno = 34 (0x22), region = 24  ;;  %s175_s24 = sand.u32 (%p65_p3), 1, %s1119_s16  }
   0xf   : > { %s995_s25 = sshll.u32 (%p65_p3), %s1127_s18, 3  ;;  %s949_s26 = sshll.u32 (%p65_p3), %s175_s24, 8 }
  0x10   : > { %s1201_s29 = scalar_lea.vmem (%p65_p3), %s1365_s1, %s995_s25  ;;  %s1206_s30 = scalar_lea.vmem (%p65_p3), [#allocation3], %s949_s26 }
  0x11   : > { %v273_v0 = vld [vmem:[%s1201_s29] sm:$0xff] (%p65_p3)  ;;  %v275_v1 = vld [vmem:[%s1201_s29 + $0x10] sm:$0xff] (%p65_p3) }
  0x12   : > { %v277_v2 = vld [vmem:[%s1201_s29 + $0x20] sm:$0xff] (%p65_p3)  ;;  %274 = vst [vmem:[%s1206_s30] sm:$0xff] (%p65_p3), %v273_v0  ;;  %276 = vst [vmem:[%s1206_s30 + $0x8] sm:$0xff] (%p65_p3), %v275_v1  ;;  %v279_v3 = vld [vmem:[%s1201_s29 + $0x30] sm:$0xff] (%p65_p3) }
  0x13   : > { %278 = vst [vmem:[%s1206_s30 + $0x10] sm:$0xff] (%p65_p3), %v277_v2  ;;  %v281_v4 = vld [vmem:[%s1201_s29 + $0x40] sm:$0xff] (%p65_p3)  ;;  %v283_v5 = vld [vmem:[%s1201_s29 + $0x50] sm:$0xff] (%p65_p3)  ;;  %280 = vst [vmem:[%s1206_s30 + $0x18] sm:$0xff] (%p65_p3), %v279_v3 }
  0x14   : > { %282 = vst [vmem:[%s1206_s30 + $0x20] sm:$0xff] (%p65_p3), %v281_v4  ;;  %284 = vst [vmem:[%s1206_s30 + $0x28] sm:$0xff] (%p65_p3), %v283_v5  ;;  %v285_v6 = vld [vmem:[%s1201_s29 + $0x60] sm:$0xff] (%p65_p3)  ;;  %v287_v7 = vld [vmem:[%s1201_s29 + $0x70] sm:$0xff] (%p65_p3) }
  0x15   : > { %v289_v8 = vld [vmem:[%s1201_s29 + $0x80] sm:$0xff]  ;;  %286 = vst [vmem:[%s1206_s30 + $0x30] sm:$0xff] %v285_v6  ;;  %288 = vst [vmem:[%s1206_s30 + $0x38] sm:$0xff] %v287_v7  ;;  %v291_v9 = vld [vmem:[%s1201_s29 + $0x90] sm:$0xff] }
  0x16   : > { %290 = vst [vmem:[%s1206_s30 + $0x40] sm:$0xff] %v289_v8  ;;  %v293_v10 = vld [vmem:[%s1201_s29 + $0xa0] sm:$0xff]  ;;  %v295_v11 = vld [vmem:[%s1201_s29 + $0xb0] sm:$0xff]  ;;  %292 = vst [vmem:[%s1206_s30 + $0x48] sm:$0xff] %v291_v9 }
  0x17   : > { %294 = vst [vmem:[%s1206_s30 + $0x50] sm:$0xff] %v293_v10  ;;  %296 = vst [vmem:[%s1206_s30 + $0x58] sm:$0xff] %v295_v11  ;;  %v297_v12 = vld [vmem:[%s1201_s29 + $0xc0] sm:$0xff]  ;;  %v299_v13 = vld [vmem:[%s1201_s29 + $0xd0] sm:$0xff] }
  0x18   : > { %v301_v14 = vld [vmem:[%s1201_s29 + $0xe0] sm:$0xff]  ;;  %298 = vst [vmem:[%s1206_s30 + $0x60] sm:$0xff] %v297_v12  ;;  %300 = vst [vmem:[%s1206_s30 + $0x68] sm:$0xff] %v299_v13  ;;  %v303_v15 = vld [vmem:[%s1201_s29 + $0xf0] sm:$0xff] }
  0x19   : > { %302 = vst [vmem:[%s1206_s30 + $0x70] sm:$0xff] %v301_v14  ;;  %v305_v16 = vld [vmem:[%s1201_s29 + $0x100] sm:$0xff]  ;;  %v307_v17 = vld [vmem:[%s1201_s29 + $0x110] sm:$0xff]  ;;  %304 = vst [vmem:[%s1206_s30 + $0x78] sm:$0xff] %v303_v15 }
  0x1a   : > { %306 = vst [vmem:[%s1206_s30 + $0x80] sm:$0xff] %v305_v16  ;;  %308 = vst [vmem:[%s1206_s30 + $0x88] sm:$0xff] %v307_v17  ;;  %v309_v18 = vld [vmem:[%s1201_s29 + $0x120] sm:$0xff]  ;;  %v311_v19 = vld [vmem:[%s1201_s29 + $0x130] sm:$0xff] }
  0x1b   : > { %v313_v20 = vld [vmem:[%s1201_s29 + $0x140] sm:$0xff]  ;;  %310 = vst [vmem:[%s1206_s30 + $0x90] sm:$0xff] %v309_v18  ;;  %312 = vst [vmem:[%s1206_s30 + $0x98] sm:$0xff] %v311_v19  ;;  %v315_v21 = vld [vmem:[%s1201_s29 + $0x150] sm:$0xff] }
  0x1c   : > { %314 = vst [vmem:[%s1206_s30 + $0xa0] sm:$0xff] %v313_v20  ;;  %v317_v22 = vld [vmem:[%s1201_s29 + $0x160] sm:$0xff]  ;;  %v319_v23 = vld [vmem:[%s1201_s29 + $0x170] sm:$0xff]  ;;  %316 = vst [vmem:[%s1206_s30 + $0xa8] sm:$0xff] %v315_v21 }
  0x1d   : > { %318 = vst [vmem:[%s1206_s30 + $0xb0] sm:$0xff] %v317_v22  ;;  %320 = vst [vmem:[%s1206_s30 + $0xb8] sm:$0xff] %v319_v23  ;;  %v321_v24 = vld [vmem:[%s1201_s29 + $0x180] sm:$0xff]  ;;  %v323_v25 = vld [vmem:[%s1201_s29 + $0x190] sm:$0xff] }
  0x1e   : > { %v325_v26 = vld [vmem:[%s1201_s29 + $0x1a0] sm:$0xff]  ;;  %322 = vst [vmem:[%s1206_s30 + $0xc0] sm:$0xff] %v321_v24  ;;  %324 = vst [vmem:[%s1206_s30 + $0xc8] sm:$0xff] %v323_v25  ;;  %v327_v27 = vld [vmem:[%s1201_s29 + $0x1b0] sm:$0xff] }
  0x1f   : > { %326 = vst [vmem:[%s1206_s30 + $0xd0] sm:$0xff] %v325_v26  ;;  %v329_v28 = vld [vmem:[%s1201_s29 + $0x1c0] sm:$0xff]  ;;  %v331_v29 = vld [vmem:[%s1201_s29 + $0x1d0] sm:$0xff]  ;;  %328 = vst [vmem:[%s1206_s30 + $0xd8] sm:$0xff] %v327_v27 }
  0x20   : > { %330 = vst [vmem:[%s1206_s30 + $0xe0] sm:$0xff] %v329_v28  ;;  %332 = vst [vmem:[%s1206_s30 + $0xe8] sm:$0xff] %v331_v29  ;;  %v333_v30 = vld [vmem:[%s1201_s29 + $0x1e0] sm:$0xff]  ;;  %v335_v31 = vld [vmem:[%s1201_s29 + $0x1f0] sm:$0xff] }
  0x21   : > { %334 = vst [vmem:[%s1206_s30 + $0xf0] sm:$0xff] %v333_v30  ;;  %336 = vst [vmem:[%s1206_s30 + $0xf8] sm:$0xff] %v335_v31 }
  0x22 PF: > { %p952_p6 = scmp.ge.s32.totalorder %s1131_s19, 1  ;;  %p357_p7 = scmp.lt.s32.totalorder %s1131_s19, 3 }
  0x24   : > { %p358_p8 = pnand %p952_p6, %p357_p7 }
  0x25   : > { %s364_s5 = sand.u32 (!%p358_p8), 1, %s1115_s15   ;;  %v1275_v32 = vld.sshfl [vmem:[%s1364_s0] sm:$0x33 pattern:$0x76325410] (!%p358_p8)  ;;  %vm684_vm0 = vcmask (!%p358_p8), 1041408  }
  0x26   : > { %361 = sbr.rel (%p358_p8) target bundleno = 395 (0x18b), region = 70  ;;  %s953_s8 = sshll.u32 (!%p358_p8), %s364_s5, 8  ;;  %v467_v33 = vcombine.high (!%p358_p8), %v1275_v32, %v1275_v32 }
  0x27   : > { %s1279_s9 = scalar_lea.vmem (!%p358_p8), [#allocation3], %s953_s8  ;;  %s954_s10 = sshll.u32 (!%p358_p8), %s1123_s17, 1 }
  0x28   : > { %v1037_v34 = vld [vmem:[%s1279_s9 + $0x4] ss:$8 sps:$4 sm:$0xff] (!%p358_p8)   ;;  %662 = vmatprep.mubr.bf16.mxu0 (!%p358_p8), %v467_v33  ;;  %v1039_v35 = vld [vmem:[%s1279_s9] ss:$8 sps:$4 sm:$0xff] (!%p358_p8)   ;;  %v1040_v36 = vld [vmem:[%s1279_s9 + $0x14] ss:$8 sps:$4 sm:$0xff] (!%p358_p8)  }
  0x29   : > { %630 = vmatprep.subr.bf16.mxu0 (!%p358_p8), %v1037_v34  ;;  %v1042_v37 = vld [vmem:[%s1279_s9 + $0x10] ss:$8 sps:$4 sm:$0xff] (!%p358_p8)   ;;  %v1043_v38 = vld [vmem:[%s1279_s9 + $0x24] ss:$8 sps:$4 sm:$0xff] (!%p358_p8)   ;;  %v1045_v39 = vld [vmem:[%s1279_s9 + $0x20] ss:$8 sps:$4 sm:$0xff] (!%p358_p8)  }
  0x2a   : > { %631 = vmatpush1.bf16.msra.mxu0 (!%p358_p8), %v1039_v35  ;;  %v1046_v40 = vld [vmem:[%s1279_s9 + $0x34] ss:$8 sps:$4 sm:$0xff] (!%p358_p8)   ;;  %v1048_v41 = vld [vmem:[%s1279_s9 + $0x30] ss:$8 sps:$4 sm:$0xff] (!%p358_p8)   ;;  %v1049_v42 = vld [vmem:[%s1279_s9 + $0x44] ss:$8 sps:$4 sm:$0xff] (!%p358_p8)  }
  0x2b   : > { %632 = vmatprep.subr.bf16.mxu0 (!%p358_p8), %v1040_v36  ;;  %v1051_v43 = vld [vmem:[%s1279_s9 + $0x40] ss:$8 sps:$4 sm:$0xff] (!%p358_p8)   ;;  %v1052_v44 = vld [vmem:[%s1279_s9 + $0x54] ss:$8 sps:$4 sm:$0xff] (!%p358_p8)   ;;  %v1054_v45 = vld [vmem:[%s1279_s9 + $0x50] ss:$8 sps:$4 sm:$0xff] (!%p358_p8)  }
  0x2c   : > { %v1055_v46 = vld [vmem:[%s1279_s9 + $0x64] ss:$8 sps:$4 sm:$0xff] (!%p358_p8)   ;;  %v1057_v47 = vld [vmem:[%s1279_s9 + $0x60] ss:$8 sps:$4 sm:$0xff] (!%p358_p8)   ;;  %v1058_v48 = vld [vmem:[%s1279_s9 + $0x74] ss:$8 sps:$4 sm:$0xff] (!%p358_p8)  }
  0x2d   : > { %v1060_v49 = vld [vmem:[%s1279_s9 + $0x70] ss:$8 sps:$4 sm:$0xff]   ;;  %v1061_v50 = vld [vmem:[%s1279_s9 + $0x84] ss:$8 sps:$4 sm:$0xff]   ;;  %v1063_v51 = vld [vmem:[%s1279_s9 + $0x80] ss:$8 sps:$4 sm:$0xff]  }
  0x2e   : > { %633 = vmatpush1.bf16.msra.mxu0 %v1042_v37  ;;  %v1064_v52 = vld [vmem:[%s1279_s9 + $0x94] ss:$8 sps:$4 sm:$0xff]   ;;  %v1066_v53 = vld [vmem:[%s1279_s9 + $0x90] ss:$8 sps:$4 sm:$0xff]   ;;  %v1067_v54 = vld [vmem:[%s1279_s9 + $0xa4] ss:$8 sps:$4 sm:$0xff]  }
  0x2f   : > { %634 = vmatprep.subr.bf16.mxu0 %v1043_v38  ;;  %v1069_v55 = vld [vmem:[%s1279_s9 + $0xa0] ss:$8 sps:$4 sm:$0xff]   ;;  %v1070_v56 = vld [vmem:[%s1279_s9 + $0xb4] ss:$8 sps:$4 sm:$0xff]   ;;  %v1072_v57 = vld [vmem:[%s1279_s9 + $0xb0] ss:$8 sps:$4 sm:$0xff]  }
  0x30   : > { %v1073_v58 = vld [vmem:[%s1279_s9 + $0xc4] ss:$8 sps:$4 sm:$0xff]   ;;  %v1075_v59 = vld [vmem:[%s1279_s9 + $0xc0] ss:$8 sps:$4 sm:$0xff]   ;;  %v1076_v60 = vld [vmem:[%s1279_s9 + $0xd4] ss:$8 sps:$4 sm:$0xff]  }
  0x31   : > { %v1078_v61 = vld [vmem:[%s1279_s9 + $0xd0] ss:$8 sps:$4 sm:$0xff]   ;;  %v1079_v62 = vld [vmem:[%s1279_s9 + $0xe4] ss:$8 sps:$4 sm:$0xff]   ;;  %v1081_v63 = vld [vmem:[%s1279_s9 + $0xe0] ss:$8 sps:$4 sm:$0xff]  }
  0x32   : > { %635 = vmatpush1.bf16.msra.mxu0 %v1045_v39  ;;  %v1082_v0 = vld [vmem:[%s1279_s9 + $0xf4] ss:$8 sps:$4 sm:$0xff]   ;;  %v1084_v1 = vld [vmem:[%s1279_s9 + $0xf0] ss:$8 sps:$4 sm:$0xff]   ;;  %p400_p9 = scmp.lt.s32.totalorder %s954_s10, 3 }
  0x33   : > { %636 = vmatprep.subr.bf16.mxu0 %v1046_v40 }
  0x34   : > { %s1376_s10 = smov (!%p400_p9, %s954_s10), 3 }
  0x35   : > { %s402_s13 = scalar_lea.vmem %s1366_s2, %s1376_s10  ;;  %s407_s17 = scalar_lea.vmem %s1367_s3, %s1376_s10 }
  0x36   : > { %637 = vmatpush1.bf16.msra.mxu0 %v1048_v41  ;;  %s957_s21 = sshll.u32 %s1376_s10, 1 }
  0x37   : > { %638 = vmatprep.subr.bf16.mxu0 %v1049_v42  ;;  %s413_s25 = scalar_lea.vmem %s1368_s4, %s957_s21 }
  0x3a   : > { %639 = vmatpush1.bf16.msra.mxu0 %v1051_v43 }
  0x3b   : > { %640 = vmatprep.subr.bf16.mxu0 %v1052_v44 }
  0x3e   : > { %641 = vmatpush1.bf16.msra.mxu0 %v1054_v45 }
  0x3f   : > { %642 = vmatprep.subr.bf16.mxu0 %v1055_v46 }
  0x42   : > { %643 = vmatpush1.bf16.msra.mxu0 %v1057_v47 }
  0x43   : > { %644 = vmatprep.subr.bf16.mxu0 %v1058_v48 }
  0x46   : > { %645 = vmatpush1.bf16.msra.mxu0 %v1060_v49 }
  0x47   : > { %646 = vmatprep.subr.bf16.mxu0 %v1061_v50 }
  0x4a   : > { %647 = vmatpush1.bf16.msra.mxu0 %v1063_v51 }
  0x4b   : > { %648 = vmatprep.subr.bf16.mxu0 %v1064_v52 }
  0x4e   : > { %649 = vmatpush1.bf16.msra.mxu0 %v1066_v53 }
  0x4f   : > { %650 = vmatprep.subr.bf16.mxu0 %v1067_v54 }
  0x52   : > { %651 = vmatpush1.bf16.msra.mxu0 %v1069_v55 }
  0x53   : > { %652 = vmatprep.subr.bf16.mxu0 %v1070_v56 }
  0x56   : > { %653 = vmatpush1.bf16.msra.mxu0 %v1072_v57 }
  0x57   : > { %654 = vmatprep.subr.bf16.mxu0 %v1073_v58 }
  0x5a   : > { %655 = vmatpush1.bf16.msra.mxu0 %v1075_v59 }
  0x5b   : > { %656 = vmatprep.subr.bf16.mxu0 %v1076_v60 }
  0x5e   : > { %657 = vmatpush1.bf16.msra.mxu0 %v1078_v61 }
  0x5f   : > { %658 = vmatprep.subr.bf16.mxu0 %v1079_v62 }
  0x62   : > { %659 = vmatpush1.bf16.msra.mxu0 %v1081_v63 }
  0x63   : > { %660 = vmatprep.subr.bf16.mxu0 %v1082_v0 }
  0x66   : > { %661 = vmatpush1.bf16.msra.mxu0 %v1084_v1 }
  0x69   : > { %663 = vmatmul.mubr.bf16.vlgmr.msra.gmra.mrb[0].mxu0 %v1275_v32 }
 0x13c   : > { %v664_v2 = vpop.f32.mrb[0].mxu0 }
 0x13d   : > { %v666_v3 = vpop.f32.mrb[1].mxu0 }
 0x13e   : > { %v673_v4 = vcombine.low %v664_v2, %v666_v3  ;;  %v996_v5 = vcombine.low %v666_v3, %v666_v3  ;;  %v668_v6 = vpop.f32.mrb[2].mxu0 }
 0x13f   : > { %v669_v7 = vpop.f32.mrb[3].mxu0 }
 0x140   : > { %v685_v8 = vsel %vm684_vm0, %v673_v4, 0.0  ;;  %v692_v9 = vsel %vm684_vm0, %v996_v5, 0.0  ;;  %v763_v10 = vrot.slane %v673_v4, 2  ;;  %v764_v11 = vrot.slane %v996_v5, 2 }
 0x141   : > { %v686_v12 = vrot.slane %v685_v8, 4  ;;  %v693_v13 = vrot.slane %v692_v9, 4 }
 0x142   : > { %v767_v14 = vsel %vm684_vm0, %v763_v10, 0.0  ;;  %v774_v15 = vsel %vm684_vm0, %v764_v11, 0.0 }
 0x143   : > { %v687_v16 = vadd.f32 %v686_v12, %v685_v8  ;;  %v694_v17 = vadd.f32 %v693_v13, %v692_v9  ;;  %v768_v18 = vrot.slane %v767_v14, 4  ;;  %v775_v19 = vrot.slane %v774_v15, 4 }
 0x145   : > { %v688_v20 = vrot.slane %v687_v16, 2  ;;  %v695_v21 = vrot.slane %v694_v17, 2  ;;  %v769_v22 = vadd.f32 %v768_v18, %v767_v14  ;;  %v776_v23 = vadd.f32 %v775_v19, %v774_v15 }
 0x147   : > { %v689_v24 = vadd.f32 %v688_v20, %v687_v16  ;;  %v696_v25 = vadd.f32 %v695_v21, %v694_v17  ;;  %v770_v26 = vrot.slane %v769_v22, 2  ;;  %v777_v27 = vrot.slane %v776_v23, 2 }
 0x148   : > { %v738_v17 = vlaneseq }
 0x149   : > { %v690_v28 = vrot.slane %v689_v24, 1  ;;  %v697_v29 = vrot.slane %v696_v25, 1  ;;  %v771_v30 = vadd.f32 %v770_v26, %v769_v22  ;;  %v778_v31 = vadd.f32 %v777_v27, %v776_v23 }
 0x14a   : > { %v739_v23 = vshrl.u32 %v738_v17, 7 }
 0x14b   : > { %v691_v32 = vadd.f32 %v690_v28, %v689_v24  ;;  %v698_v33 = vadd.f32 %v697_v29, %v696_v25  ;;  %v772_v34 = vrot.slane %v771_v30, 1  ;;  %v779_v35 = vrot.slane %v778_v31, 1  ;;  %v736_v29 = vld [vmem:[%s402_s13] sm:$0x3] }
 0x14c   : > { %v740_v27 = vsub.s32 0, %v739_v23  ;;  %v744_v28 = vsub.s32 1, %v739_v23 }
 0x14d   : > { %v700_v36 = vmul.f32 0.5, %v691_v32  ;;  %v701_v37 = vmul.f32 0.5, %v698_v33  ;;  %v773_v38 = vadd.f32 %v772_v34, %v771_v30  ;;  %v780_v39 = vadd.f32 %v779_v35, %v778_v31  ;;  %v749_v34 = vld [vmem:[%s407_s17] sm:$0x3] }
 0x14e   : > { %v741_v31 = vrot.slane %v736_v29, %v740_v27  ;;  %v745_v32 = vrot.slane %v736_v29, %v744_v28 }
 0x14f   : > { %v704_v40 = vcombine.low %v700_v36, %v701_v37  ;;  %v781_v41 = vmul.f32 0.5, %v773_v38  ;;  %v782_v42 = vmul.f32 0.5, %v780_v39  ;;  %v754_v38 = vrot.slane %v749_v34, %v740_v27 }
 0x150   : > { %v746_v37 = vcombine.low %v741_v31, %v745_v32  ;;  %v758_v39 = vrot.slane %v749_v34, %v744_v28 }
 0x151   : > { %v1318_v43 = vsub.f32 %v673_v4, %v704_v40  ;;  %v785_v44 = vcombine.low %v781_v41, %v782_v42 }
 0x153   : > { %v707_v45 = vmul.f32 %v1318_v43, %v1318_v43  ;;  %v786_v46 = vrot.slane %v785_v44, 6  ;;  %v759_v44 = vcombine.low %v754_v38, %v758_v39 }
 0x155   : > { %v709_v47 = vcombine.high %v707_v45, %v707_v45  ;;  %v711_v48 = vsel %vm684_vm0, %v707_v45, 0.0  ;;  %v1323_v49 = vsub.f32 %v673_v4, %v786_v46 }
 0x156   : > { %v712_v50 = vrot.slane %v711_v48, 4 }
 0x157   : > { %v718_v51 = vsel %vm684_vm0, %v709_v47, 0.0  ;;  %v789_v52 = vmul.f32 %v1323_v49, %v1323_v49  ;;  %v822_v47 = vrot.slane %v746_v37, 6 }
 0x158   : > { %v713_v53 = vadd.f32 %v712_v50, %v711_v48  ;;  %v719_v54 = vrot.slane %v718_v51, 4 }
 0x159   : > { %v791_v55 = vcombine.high %v789_v52, %v789_v52  ;;  %v792_v56 = vrot.slane %v789_v52, 2 }
 0x15a   : > { %v714_v57 = vrot.slane %v713_v53, 2  ;;  %v720_v58 = vadd.f32 %v719_v54, %v718_v51  ;;  %v825_v51 = vrot.slane %v759_v44, 6 }
 0x15b   : > { %v793_v59 = vrot.slane %v791_v55, 2  ;;  %v796_v60 = vsel %vm684_vm0, %v792_v56, 0.0 }
 0x15c   : > { %v715_v61 = vadd.f32 %v714_v57, %v713_v53  ;;  %v721_v62 = vrot.slane %v720_v58, 2  ;;  %v797_v63 = vrot.slane %v796_v60, 4 }
 0x15d   : > { %v803_v0 = vsel %vm684_vm0, %v793_v59, 0.0 }
 0x15e   : > { %v716_v1 = vrot.slane %v715_v61, 1  ;;  %v722_v2 = vadd.f32 %v721_v62, %v720_v58  ;;  %v798_v3 = vadd.f32 %v797_v63, %v796_v60  ;;  %v804_v4 = vrot.slane %v803_v0, 4 }
 0x160   : > { %v717_v5 = vadd.f32 %v716_v1, %v715_v61  ;;  %v723_v6 = vrot.slane %v722_v2, 1  ;;  %v799_v7 = vrot.slane %v798_v3, 2  ;;  %v805_v8 = vadd.f32 %v804_v4, %v803_v0 }
 0x162   : > { %v724_v9 = vadd.f32 %v723_v6, %v722_v2  ;;  %v725_v10 = vmul.f32 0.5, %v717_v5  ;;  %v800_v11 = vadd.f32 %v799_v7, %v798_v3  ;;  %v806_v12 = vrot.slane %v805_v8, 2 }
 0x164   : > { %v726_v13 = vmul.f32 0.5, %v724_v9  ;;  %v727_v14 = vadd.f32 1e-05, %v725_v10  ;;  %v801_v15 = vrot.slane %v800_v11, 1  ;;  %v807_v16 = vadd.f32 %v806_v12, %v805_v8 }
 0x166   : > { %v728_v18 = vadd.f32 1e-05, %v726_v13  ;;  %v802_v19 = vadd.f32 %v801_v15, %v800_v11  ;;  %v808_v20 = vrot.slane %v807_v16, 1  ;;  %1085 = vrsqrt.f32 %v727_v14 }
 0x168   : > { %1087 = vrsqrt.f32 %v728_v18  ;;  %v809_v21 = vadd.f32 %v808_v20, %v807_v16  ;;  %v810_v22 = vmul.f32 0.5, %v802_v19 }
 0x16a   : > { %v811_v24 = vmul.f32 0.5, %v809_v21  ;;  %v812_v25 = vadd.f32 1e-05, %v810_v22 }
 0x16c   : > { %v813_v26 = vadd.f32 1e-05, %v811_v24  ;;  %1089 = vrsqrt.f32 %v812_v25 }
 0x16e   : > { %1091 = vrsqrt.f32 %v813_v26 }
 0x170   : > { %v1086_v30 = vpop.eup %1085 }
 0x172   : > { %v1088_v33 = vpop.eup %1087 }
 0x173   : > { %v733_v35 = vcombine.low %v1086_v30, %v1088_v33 }
 0x175   : > { %v735_v36 = vmul.f32 %v733_v35, %v1318_v43 }
 0x176   : > { %v1090_v40 = vpop.eup %1089 }
 0x177   : > { %v748_v42 = vmul.f32 %v746_v37, %v735_v36 }
 0x178   : > { %v1092_v41 = vpop.eup %1091 }
 0x179   : > { %v818_v45 = vcombine.low %v1090_v40, %v1092_v41  ;;  %v761_v48 = vadd.f32 %v759_v44, %v748_v42 }
 0x17b   : > { %v819_v46 = vrot.slane %v818_v45, 6  ;;  %v762_v53 = vmax.f32 %v761_v48, 0.0 }
 0x17d   : > { %v821_v50 = vmul.f32 %v819_v46, %v1323_v49  ;;  %v830_v43 = vcombine.high %v762_v53, %v762_v53 }
 0x17f   : > { %v824_v52 = vmul.f32 %v822_v47, %v821_v50 }
 0x181   : > { %v827_v54 = vadd.f32 %v825_v51, %v824_v52 }
 0x183   : > { %v828_v55 = vmax.f32 %v827_v54, 0.0 }
 0x185   : > { %v833_v56 = vcombine.high %v828_v55, %v828_v55  ;;  %v835_v57 = vsel %vm684_vm0, %v762_v53, %v828_v55 }
 0x187   : > { %v836_v58 = vsel %vm684_vm0, %v830_v43, %v833_v56 }
 0x188   : > { %v991_v59 = vpack.c.bf16 %v836_v58, %v835_v57 }
 0x18a   : > { %992 = vst.sshfl [vmem:[%s413_s25] sm:$0x33 pattern:$0x76325410] %v991_v59 }
 0x18b PF: > { %s14_s19 = sadd.s32 1, %s1131_s19   ;;  %s1369_s15 = smov %s1119_s16 }
 0x18c   : > { %p11_p10 = scmp.ge.s32.totalorder %s14_s19, 4   ;;  %s1370_s16 = smov %s1193_s23 }
 0x18d   : > { %s1371_s17 = smov %s1127_s18  ;;  %s1372_s18 = smov %s1374_s20 }
 0x18e   :  { %13 = sbr.rel (!%p11_p10) target bundleno = 3 (0x3), region = 124 }

// kernel: barlow_twins_forward.9
= control target key start
LH: loop header
LB: loop body
LE: loop exit
PB: predicated region body
PF: predicated region fallthrough
CT: control target
= control target key end

     0   :  { %s1202_s15 = smov 0   ;;  %s1204_s16 = smov 0   ;;  %s1437_s0 = inlined_call_operand.vmem [shape: bf16[4,512], index: 0, kind: input, shape index: {}]   ;;  %s1438_s1 = inlined_call_operand.vmem [shape: bf16[512,512], index: 1, kind: input, shape index: {}]   ;;  %s1439_s2 = inlined_call_operand.vmem [shape: f32[1,512], index: 2, kind: input, shape index: {}]   ;;  %s1440_s3 = inlined_call_operand.vmem [shape: f32[1,512], index: 3, kind: input, shape index: {}]   ;;  %s1441_s4 = inlined_call_operand.vmem [shape: bf16[4,512], index: 4, kind: output, shape index: {}]  }
   0x1   :  { %s1206_s17 = smov 0   ;;  %s1208_s18 = smov 0  }
   0x2   :  { %s1210_s19 = smov 0   ;;  %s1212_s20 = smov 0  }
   0x3   :  { %s1214_s21 = smov 0  }
   0x4 LB: > { %s23_s22 = sadd.s32 1, %s1166_s19  ;;  %s26_s23 = sadd.s32 1, %s1170_s20  ;;  %s1174_s21 = sphi %s1214_s21, %s14_s21   ;;  %s1170_s20 = sphi %s1212_s20, %s1447_s20   ;;  %s1166_s19 = sphi %s1210_s19, %s1446_s19   ;;  %s1162_s18 = sphi %s1208_s18, %s1445_s18   ;;  %s1158_s17 = sphi %s1206_s17, %s1444_s17   ;;  %s1154_s16 = sphi %s1204_s16, %s1443_s16   ;;  %s1150_s15 = sphi %s1202_s15, %s1442_s15  }
   0x5   : > { %p24_p0 = scmp.ge.s32.totalorder %s23_s22, 2  ;;  %p63_p1 = scmp.ne.s32.totalorder %s1154_s16, %s1150_s15 }
   0x6   : > { %p64_p2 = scmp.eq.s32.totalorder %s1174_s21, 0  ;;  %s56_s27 = sadd.s32 1, %s1154_s16 }
   0x7   : > { %s1449_s22 = smov (%p24_p0, %s23_s22), 0  ;;  %s1451_s23 = smov (!%p24_p0, %s26_s23), %s1170_s20 }
   0x8   : > { %p65_p3 = por %p64_p2, %p63_p1  ;;  %p28_p4 = scmp.ge.s32.totalorder %s1451_s23, 2 }
   0x9   : > { %s51_s24 = ssub.s32 %s1166_s19, %s1449_s22  ;;  %p952_p6 = scmp.ge.s32.totalorder %s1174_s21, 4 }
   0xa   : > { %s1453_s23 = smov (%p28_p4, %s1451_s23), 0 }
   0xb   : > { %s52_s25 = ssub.s32 %s1170_s20, %s1453_s23  ;;  %170 = sbr.rel (%p952_p6) target bundleno = 41 (0x29), region = 20 }
   0xc   : > { %s53_s26 = sor.u32 %s52_s25, %s51_s24 }
   0xd   : > { %p54_p5 = scmp.eq.s32.totalorder %s53_s26, 0 }
   0xf   : > { %s1253_s28 = scalar_select %p54_p5, %s1154_s16, %s56_s27  }
  0x12   : > { %173 = sbr.rel (!%p65_p3) target bundleno = 41 (0x29), region = 24  ;;  %s175_s29 = sand.u32 (%p65_p3), 1, %s1154_s16  }
  0x13   : > { %s955_s30 = sshll.u32 (%p65_p3), %s1170_s20, 1  ;;  %s953_s5 = sshll.u32 (%p65_p3), %s175_s29, 8 }
  0x14   : > { %s1005_s6 = sshll.u32 (%p65_p3), %s1166_s19, 7  ;;  %s1267_s12 = scalar_lea.vmem (%p65_p3), [#allocation3], %s953_s5 }
  0x15   : > { %s181_s7 = sadd.s32 (%p65_p3), %s1005_s6, %s955_s30 }
  0x16   : > { %s957_s8 = sshll.u32 (%p65_p3), %s181_s7, 2 }
  0x17   : > { %s1262_s11 = scalar_lea.vmem (%p65_p3), %s1438_s1, %s957_s8 }
  0x18   : > { %v273_v0 = vld [vmem:[%s1262_s11] sm:$0xff] (%p65_p3)  ;;  %v275_v1 = vld [vmem:[%s1262_s11 + $0x10] sm:$0xff] (%p65_p3) }
  0x19   : > { %v277_v2 = vld [vmem:[%s1262_s11 + $0x20] sm:$0xff]  ;;  %274 = vst [vmem:[%s1267_s12] sm:$0xff] %v273_v0  ;;  %276 = vst [vmem:[%s1267_s12 + $0x8] sm:$0xff] %v275_v1  ;;  %v279_v3 = vld [vmem:[%s1262_s11 + $0x30] sm:$0xff] }
  0x1a   : > { %278 = vst [vmem:[%s1267_s12 + $0x10] sm:$0xff] %v277_v2  ;;  %v281_v4 = vld [vmem:[%s1262_s11 + $0x40] sm:$0xff]  ;;  %v283_v5 = vld [vmem:[%s1262_s11 + $0x50] sm:$0xff]  ;;  %280 = vst [vmem:[%s1267_s12 + $0x18] sm:$0xff] %v279_v3 }
  0x1b   : > { %282 = vst [vmem:[%s1267_s12 + $0x20] sm:$0xff] %v281_v4  ;;  %284 = vst [vmem:[%s1267_s12 + $0x28] sm:$0xff] %v283_v5  ;;  %v285_v6 = vld [vmem:[%s1262_s11 + $0x60] sm:$0xff]  ;;  %v287_v7 = vld [vmem:[%s1262_s11 + $0x70] sm:$0xff] }
  0x1c   : > { %v289_v8 = vld [vmem:[%s1262_s11 + $0x80] sm:$0xff]  ;;  %286 = vst [vmem:[%s1267_s12 + $0x30] sm:$0xff] %v285_v6  ;;  %288 = vst [vmem:[%s1267_s12 + $0x38] sm:$0xff] %v287_v7  ;;  %v291_v9 = vld [vmem:[%s1262_s11 + $0x90] sm:$0xff] }
  0x1d   : > { %290 = vst [vmem:[%s1267_s12 + $0x40] sm:$0xff] %v289_v8  ;;  %v293_v10 = vld [vmem:[%s1262_s11 + $0xa0] sm:$0xff]  ;;  %v295_v11 = vld [vmem:[%s1262_s11 + $0xb0] sm:$0xff]  ;;  %292 = vst [vmem:[%s1267_s12 + $0x48] sm:$0xff] %v291_v9 }
  0x1e   : > { %294 = vst [vmem:[%s1267_s12 + $0x50] sm:$0xff] %v293_v10  ;;  %296 = vst [vmem:[%s1267_s12 + $0x58] sm:$0xff] %v295_v11  ;;  %v297_v12 = vld [vmem:[%s1262_s11 + $0xc0] sm:$0xff]  ;;  %v299_v13 = vld [vmem:[%s1262_s11 + $0xd0] sm:$0xff] }
  0x1f   : > { %v301_v14 = vld [vmem:[%s1262_s11 + $0xe0] sm:$0xff]  ;;  %298 = vst [vmem:[%s1267_s12 + $0x60] sm:$0xff] %v297_v12  ;;  %300 = vst [vmem:[%s1267_s12 + $0x68] sm:$0xff] %v299_v13  ;;  %v303_v15 = vld [vmem:[%s1262_s11 + $0xf0] sm:$0xff] }
  0x20   : > { %302 = vst [vmem:[%s1267_s12 + $0x70] sm:$0xff] %v301_v14  ;;  %v305_v16 = vld [vmem:[%s1262_s11 + $0x100] sm:$0xff]  ;;  %v307_v17 = vld [vmem:[%s1262_s11 + $0x110] sm:$0xff]  ;;  %304 = vst [vmem:[%s1267_s12 + $0x78] sm:$0xff] %v303_v15 }
  0x21   : > { %306 = vst [vmem:[%s1267_s12 + $0x80] sm:$0xff] %v305_v16  ;;  %308 = vst [vmem:[%s1267_s12 + $0x88] sm:$0xff] %v307_v17  ;;  %v309_v18 = vld [vmem:[%s1262_s11 + $0x120] sm:$0xff]  ;;  %v311_v19 = vld [vmem:[%s1262_s11 + $0x130] sm:$0xff] }
  0x22   : > { %v313_v20 = vld [vmem:[%s1262_s11 + $0x140] sm:$0xff]  ;;  %310 = vst [vmem:[%s1267_s12 + $0x90] sm:$0xff] %v309_v18  ;;  %312 = vst [vmem:[%s1267_s12 + $0x98] sm:$0xff] %v311_v19  ;;  %v315_v21 = vld [vmem:[%s1262_s11 + $0x150] sm:$0xff] }
  0x23   : > { %314 = vst [vmem:[%s1267_s12 + $0xa0] sm:$0xff] %v313_v20  ;;  %v317_v22 = vld [vmem:[%s1262_s11 + $0x160] sm:$0xff]  ;;  %v319_v23 = vld [vmem:[%s1262_s11 + $0x170] sm:$0xff]  ;;  %316 = vst [vmem:[%s1267_s12 + $0xa8] sm:$0xff] %v315_v21 }
  0x24   : > { %318 = vst [vmem:[%s1267_s12 + $0xb0] sm:$0xff] %v317_v22  ;;  %320 = vst [vmem:[%s1267_s12 + $0xb8] sm:$0xff] %v319_v23  ;;  %v321_v24 = vld [vmem:[%s1262_s11 + $0x180] sm:$0xff]  ;;  %v323_v25 = vld [vmem:[%s1262_s11 + $0x190] sm:$0xff] }
  0x25   : > { %v325_v26 = vld [vmem:[%s1262_s11 + $0x1a0] sm:$0xff]  ;;  %322 = vst [vmem:[%s1267_s12 + $0xc0] sm:$0xff] %v321_v24  ;;  %324 = vst [vmem:[%s1267_s12 + $0xc8] sm:$0xff] %v323_v25  ;;  %v327_v27 = vld [vmem:[%s1262_s11 + $0x1b0] sm:$0xff] }
  0x26   : > { %326 = vst [vmem:[%s1267_s12 + $0xd0] sm:$0xff] %v325_v26  ;;  %v329_v28 = vld [vmem:[%s1262_s11 + $0x1c0] sm:$0xff]  ;;  %v331_v29 = vld [vmem:[%s1262_s11 + $0x1d0] sm:$0xff]  ;;  %328 = vst [vmem:[%s1267_s12 + $0xd8] sm:$0xff] %v327_v27 }
  0x27   : > { %330 = vst [vmem:[%s1267_s12 + $0xe0] sm:$0xff] %v329_v28  ;;  %332 = vst [vmem:[%s1267_s12 + $0xe8] sm:$0xff] %v331_v29  ;;  %v333_v30 = vld [vmem:[%s1262_s11 + $0x1e0] sm:$0xff]  ;;  %v335_v31 = vld [vmem:[%s1262_s11 + $0x1f0] sm:$0xff] }
  0x28   : > { %334 = vst [vmem:[%s1267_s12 + $0xf0] sm:$0xff] %v333_v30  ;;  %336 = vst [vmem:[%s1267_s12 + $0xf8] sm:$0xff] %v335_v31 }
  0x29 PF: > { %p958_p7 = scmp.ge.s32.totalorder %s1174_s21, 1  ;;  %p357_p8 = scmp.lt.s32.totalorder %s1174_s21, 5 }
  0x2b   : > { %p358_p9 = pnand %p958_p7, %p357_p8 }
  0x2c   : > { %s364_s13 = sand.u32 (!%p358_p9), 1, %s1150_s15   ;;  %s960_s14 = sshll.u32 (!%p358_p9), %s1162_s18, 1 }
  0x2d   : > { %361 = sbr.rel (%p358_p9) target bundleno = 426 (0x1aa), region = 70  ;;  %s959_s24 = sshll.u32 (!%p358_p9), %s364_s13, 8 }
  0x2e   : > { %p400_p10 = scmp.lt.s32.totalorder (!%p358_p9), %s960_s14, 3  ;;  %s1350_s18 = scalar_lea.vmem (!%p358_p9), [#allocation3], %s959_s24 }
  0x2f   : > { %p964_p11 = scmp.ne.s32.totalorder (!%p358_p9), %s1158_s17, 0 }
  0x34   : > { %s1455_s14 = smov (!%p400_p10, %s960_s14), 3  ;;  %418 = sbr.rel (%p964_p11) target bundleno = 59 (0x3b), region = 78 }
  0x35   : > { %s402_s27 = scalar_lea.vmem %s1439_s2, %s1455_s14  ;;  %s407_s5 = scalar_lea.vmem %s1440_s3, %s1455_s14  ;;  %v1176_v32 = vmov (!%p964_p11), 0.0  }
  0x36   : > { %s963_s6 = sshll.u32 %s1455_s14, 1  ;;  %419 = vst [vmem:[#allocation2] sm:$0xff] (!%p964_p11), %v1176_v32 }
  0x37   : > { %s1348_s15 = scalar_lea.vmem %s1441_s4, %s963_s6 }
  0x3b PF: > { %v1063_v33 = vld [vmem:[%s1350_s18 + $0x4] ss:$8 sps:$4 sm:$0xff]   ;;  %v1065_v34 = vld [vmem:[%s1350_s18] ss:$8 sps:$4 sm:$0xff]   ;;  %v1066_v35 = vld [vmem:[%s1350_s18 + $0x14] ss:$8 sps:$4 sm:$0xff]  }
  0x3c   : > { %630 = vmatprep.subr.bf16.mxu0 %v1063_v33  ;;  %v1068_v36 = vld [vmem:[%s1350_s18 + $0x10] ss:$8 sps:$4 sm:$0xff]   ;;  %v1069_v37 = vld [vmem:[%s1350_s18 + $0x24] ss:$8 sps:$4 sm:$0xff]   ;;  %v1071_v38 = vld [vmem:[%s1350_s18 + $0x20] ss:$8 sps:$4 sm:$0xff]  }
  0x3d   : > { %631 = vmatpush1.bf16.msra.mxu0 %v1065_v34  ;;  %v1072_v39 = vld [vmem:[%s1350_s18 + $0x34] ss:$8 sps:$4 sm:$0xff]   ;;  %s965_s9 = sshll.u32 %s1158_s17, 8  ;;  %v1074_v40 = vld [vmem:[%s1350_s18 + $0x30] ss:$8 sps:$4 sm:$0xff]   ;;  %p1000_p12 = scmp.ne.s32.totalorder %s1158_s17, 1 }
  0x3e   : > { %632 = vmatprep.subr.bf16.mxu0 %v1066_v35  ;;  %v1075_v41 = vld [vmem:[%s1350_s18 + $0x44] ss:$8 sps:$4 sm:$0xff]   ;;  %s421_s10 = sshra.s32 %s965_s9, 7  ;;  %v1077_v42 = vld [vmem:[%s1350_s18 + $0x40] ss:$8 sps:$4 sm:$0xff]   ;;  %v426_v4 = vld [vmem:[#allocation2] sm:$0xff] }
  0x3f   : > { %s966_s11 = sshll.u32 %s421_s10, 1  ;;  %v1078_v43 = vld [vmem:[%s1350_s18 + $0x54] ss:$8 sps:$4 sm:$0xff]   ;;  %v1080_v44 = vld [vmem:[%s1350_s18 + $0x50] ss:$8 sps:$4 sm:$0xff]   ;;  %vm685_vm0 = vcmask (!%p1000_p12), 1041408  }
  0x40   : > { %s424_s24 = scalar_lea.vmem %s1437_s0, %s966_s11  ;;  %v1081_v45 = vld [vmem:[%s1350_s18 + $0x64] ss:$8 sps:$4 sm:$0xff]   ;;  %v1083_v48 = vld [vmem:[%s1350_s18 + $0x60] ss:$8 sps:$4 sm:$0xff]   ;;  %v1084_v49 = vld [vmem:[%s1350_s18 + $0x74] ss:$8 sps:$4 sm:$0xff]  }
  0x41   : > { %633 = vmatpush1.bf16.msra.mxu0 %v1068_v36  ;;  %v967_v46 = vld.sshfl [vmem:[%s424_s24] sm:$0x33 pattern:$0x76325410]  ;;  %v1087_v51 = vld [vmem:[%s1350_s18 + $0x84] ss:$8 sps:$4 sm:$0xff]  }
  0x42   : > { %634 = vmatprep.subr.bf16.mxu0 %v1069_v37  ;;  %v467_v47 = vcombine.high %v967_v46, %v967_v46  ;;  %v1086_v50 = vld [vmem:[%s1350_s18 + $0x70] ss:$8 sps:$4 sm:$0xff]   ;;  %v1089_v52 = vld [vmem:[%s1350_s18 + $0x80] ss:$8 sps:$4 sm:$0xff]   ;;  %v1090_v53 = vld [vmem:[%s1350_s18 + $0x94] ss:$8 sps:$4 sm:$0xff]  }
  0x43   : > { %v1092_v54 = vld [vmem:[%s1350_s18 + $0x90] ss:$8 sps:$4 sm:$0xff]   ;;  %v1093_v55 = vld [vmem:[%s1350_s18 + $0xa4] ss:$8 sps:$4 sm:$0xff]   ;;  %v1095_v56 = vld [vmem:[%s1350_s18 + $0xa0] ss:$8 sps:$4 sm:$0xff]  }
  0x44   : > { %662 = vmatprep.mubr.bf16.mxu0 %v467_v47  ;;  %v1096_v57 = vld [vmem:[%s1350_s18 + $0xb4] ss:$8 sps:$4 sm:$0xff]   ;;  %v1098_v58 = vld [vmem:[%s1350_s18 + $0xb0] ss:$8 sps:$4 sm:$0xff]   ;;  %v1099_v59 = vld [vmem:[%s1350_s18 + $0xc4] ss:$8 sps:$4 sm:$0xff]  }
  0x45   : > { %635 = vmatpush1.bf16.msra.mxu0 %v1071_v38  ;;  %v1101_v60 = vld [vmem:[%s1350_s18 + $0xc0] ss:$8 sps:$4 sm:$0xff]   ;;  %v1102_v61 = vld [vmem:[%s1350_s18 + $0xd4] ss:$8 sps:$4 sm:$0xff]   ;;  %v1104_v62 = vld [vmem:[%s1350_s18 + $0xd0] ss:$8 sps:$4 sm:$0xff]  }
  0x46   : > { %636 = vmatprep.subr.bf16.mxu0 %v1072_v39  ;;  %v1105_v63 = vld [vmem:[%s1350_s18 + $0xe4] ss:$8 sps:$4 sm:$0xff]   ;;  %v1107_v0 = vld [vmem:[%s1350_s18 + $0xe0] ss:$8 sps:$4 sm:$0xff]   ;;  %v1108_v1 = vld [vmem:[%s1350_s18 + $0xf4] ss:$8 sps:$4 sm:$0xff]  }
  0x47   : > { %v1110_v2 = vld [vmem:[%s1350_s18 + $0xf0] ss:$8 sps:$4 sm:$0xff]  }
  0x49   : > { %637 = vmatpush1.bf16.msra.mxu0 %v1074_v40 }
  0x4a   : > { %638 = vmatprep.subr.bf16.mxu0 %v1075_v41 }
  0x4d   : > { %639 = vmatpush1.bf16.msra.mxu0 %v1077_v42 }
  0x4e   : > { %640 = vmatprep.subr.bf16.mxu0 %v1078_v43 }
  0x51   : > { %641 = vmatpush1.bf16.msra.mxu0 %v1080_v44 }
  0x52   : > { %642 = vmatprep.subr.bf16.mxu0 %v1081_v45 }
  0x55   : > { %643 = vmatpush1.bf16.msra.mxu0 %v1083_v48 }
  0x56   : > { %644 = vmatprep.subr.bf16.mxu0 %v1084_v49 }
  0x59   : > { %645 = vmatpush1.bf16.msra.mxu0 %v1086_v50 }
  0x5a   : > { %646 = vmatprep.subr.bf16.mxu0 %v1087_v51 }
  0x5d   : > { %647 = vmatpush1.bf16.msra.mxu0 %v1089_v52 }
  0x5e   : > { %648 = vmatprep.subr.bf16.mxu0 %v1090_v53 }
  0x61   : > { %649 = vmatpush1.bf16.msra.mxu0 %v1092_v54 }
  0x62   : > { %650 = vmatprep.subr.bf16.mxu0 %v1093_v55 }
  0x65   : > { %651 = vmatpush1.bf16.msra.mxu0 %v1095_v56 }
  0x66   : > { %652 = vmatprep.subr.bf16.mxu0 %v1096_v57 }
  0x69   : > { %653 = vmatpush1.bf16.msra.mxu0 %v1098_v58 }
  0x6a   : > { %654 = vmatprep.subr.bf16.mxu0 %v1099_v59 }
  0x6d   : > { %655 = vmatpush1.bf16.msra.mxu0 %v1101_v60 }
  0x6e   : > { %656 = vmatprep.subr.bf16.mxu0 %v1102_v61 }
  0x71   : > { %657 = vmatpush1.bf16.msra.mxu0 %v1104_v62 }
  0x72   : > { %658 = vmatprep.subr.bf16.mxu0 %v1105_v63 }
  0x75   : > { %659 = vmatpush1.bf16.msra.mxu0 %v1107_v0 }
  0x76   : > { %660 = vmatprep.subr.bf16.mxu0 %v1108_v1 }
  0x79   : > { %661 = vmatpush1.bf16.msra.mxu0 %v1110_v2 }
  0x7c   : > { %663 = vmatmul.mubr.bf16.vlgmr.msra.gmra.mrb[0].mxu0 %v967_v46 }
 0x14f   : > { %v664_v3 = vpop.f32.mrb[0].mxu0  ;;  %680 = sbr.rel (%p1000_p12) target bundleno = 426 (0x1aa), region = 82 }
 0x150   : > { %v666_v5 = vpop.f32.mrb[1].mxu0 }
 0x151   : > { %v673_v6 = vcombine.low %v664_v3, %v666_v5  ;;  %v668_v7 = vpop.f32.mrb[2].mxu0 }
 0x152   : > { %v669_v8 = vpop.f32.mrb[3].mxu0 }
 0x153   : > { %v675_v9 = vadd.f32 %v673_v6, %v426_v4 }
 0x155   : > { %676 = vst [vmem:[#allocation2] sm:$0xff] %v675_v9 }
 0x15c   : > { %v681_v10 = vld [vmem:[#allocation2] sm:$0xff] }
 0x15d   : > { %v683_v11 = vcombine.high %v681_v10, %v681_v10  ;;  %v686_v12 = vsel %vm685_vm0, %v681_v10, 0.0  ;;  %v764_v13 = vrot.slane %v681_v10, 2 }
 0x15e   : > { %v687_v14 = vrot.slane %v686_v12, 4 }
 0x15f   : > { %v693_v15 = vsel %vm685_vm0, %v683_v11, 0.0  ;;  %v765_v16 = vrot.slane %v683_v11, 2  ;;  %v768_v17 = vsel %vm685_vm0, %v764_v13, 0.0 }
 0x160   : > { %v688_v18 = vadd.f32 %v687_v14, %v686_v12  ;;  %v694_v19 = vrot.slane %v693_v15, 4  ;;  %v769_v20 = vrot.slane %v768_v17, 4 }
 0x161   : > { %v775_v21 = vsel %vm685_vm0, %v765_v16, 0.0 }
 0x162   : > { %v689_v22 = vrot.slane %v688_v18, 2  ;;  %v695_v23 = vadd.f32 %v694_v19, %v693_v15  ;;  %v770_v24 = vadd.f32 %v769_v20, %v768_v17  ;;  %v776_v25 = vrot.slane %v775_v21, 4 }
 0x164   : > { %v690_v26 = vadd.f32 %v689_v22, %v688_v18  ;;  %v696_v27 = vrot.slane %v695_v23, 2  ;;  %v771_v28 = vrot.slane %v770_v24, 2  ;;  %v777_v29 = vadd.f32 %v776_v25, %v775_v21 }
 0x165   : > { %v739_v22 = vlaneseq }
 0x166   : > { %v691_v30 = vrot.slane %v690_v26, 1  ;;  %v697_v31 = vadd.f32 %v696_v27, %v695_v23  ;;  %v772_v32 = vadd.f32 %v771_v28, %v770_v24  ;;  %v778_v33 = vrot.slane %v777_v29, 2 }
 0x167   : > { %v740_v27 = vshrl.u32 %v739_v22, 7 }
 0x168   : > { %v692_v34 = vadd.f32 %v691_v30, %v690_v26  ;;  %v698_v35 = vrot.slane %v697_v31, 1  ;;  %v773_v36 = vrot.slane %v772_v32, 1  ;;  %v779_v37 = vadd.f32 %v778_v33, %v777_v29  ;;  %v737_v33 = vld [vmem:[%s402_s27] sm:$0x3] }
 0x16a   : > { %v699_v38 = vadd.f32 %v698_v35, %v697_v31  ;;  %v701_v39 = vmul.f32 0.5, %v692_v34  ;;  %v774_v40 = vadd.f32 %v773_v36, %v772_v32  ;;  %v780_v41 = vrot.slane %v779_v37, 1 }
 0x16b   : > { %v741_v31 = vsub.s32 0, %v740_v27  ;;  %v745_v32 = vsub.s32 1, %v740_v27 }
 0x16c   : > { %v702_v42 = vmul.f32 0.5, %v699_v38  ;;  %v781_v43 = vadd.f32 %v780_v41, %v779_v37  ;;  %v782_v44 = vmul.f32 0.5, %v774_v40 }
 0x16d   : > { %v742_v36 = vrot.slane %v737_v33, %v741_v31  ;;  %v746_v37 = vrot.slane %v737_v33, %v745_v32 }
 0x16e   : > { %v705_v45 = vcombine.low %v701_v39, %v702_v42  ;;  %v783_v46 = vmul.f32 0.5, %v781_v43  ;;  %v750_v39 = vld [vmem:[%s407_s5] sm:$0x3] }
 0x16f   : > { %v747_v41 = vcombine.low %v742_v36, %v746_v37  ;;  %v755_v42 = vrot.slane %v750_v39, %v741_v31  ;;  %v759_v43 = vrot.slane %v750_v39, %v745_v32 }
 0x170   : > { %v707_v47 = vsub.f32 %v681_v10, %v705_v45  ;;  %v786_v48 = vcombine.low %v782_v44, %v783_v46 }
 0x172   : > { %v708_v49 = vmul.f32 %v707_v47, %v707_v47  ;;  %v787_v50 = vrot.slane %v786_v48, 6  ;;  %v760_v48 = vcombine.low %v755_v42, %v759_v43 }
 0x174   : > { %v710_v51 = vcombine.high %v708_v49, %v708_v49  ;;  %v712_v52 = vsel %vm685_vm0, %v708_v49, 0.0  ;;  %v1395_v54 = vsub.f32 %v681_v10, %v787_v50 }
 0x175   : > { %v713_v53 = vrot.slane %v712_v52, 4 }
 0x176   : > { %v719_v55 = vsel %vm685_vm0, %v710_v51, 0.0  ;;  %v790_v58 = vmul.f32 %v1395_v54, %v1395_v54 }
 0x177   : > { %v714_v56 = vadd.f32 %v713_v53, %v712_v52  ;;  %v720_v57 = vrot.slane %v719_v55, 4  ;;  %v823_v52 = vrot.slane %v747_v41, 6 }
 0x178   : > { %v792_v61 = vcombine.high %v790_v58, %v790_v58  ;;  %v793_v62 = vrot.slane %v790_v58, 2 }
 0x179   : > { %v715_v59 = vrot.slane %v714_v56, 2  ;;  %v721_v60 = vadd.f32 %v720_v57, %v719_v55  ;;  %v826_v55 = vrot.slane %v760_v48, 6 }
 0x17a   : > { %v794_v1 = vrot.slane %v792_v61, 2  ;;  %v797_v2 = vsel %vm685_vm0, %v793_v62, 0.0 }
 0x17b   : > { %v716_v63 = vadd.f32 %v715_v59, %v714_v56  ;;  %v722_v0 = vrot.slane %v721_v60, 2  ;;  %v798_v3 = vrot.slane %v797_v2, 4 }
 0x17c   : > { %v804_v6 = vsel %vm685_vm0, %v794_v1, 0.0 }
 0x17d   : > { %v717_v4 = vrot.slane %v716_v63, 1  ;;  %v723_v5 = vadd.f32 %v722_v0, %v721_v60  ;;  %v799_v7 = vadd.f32 %v798_v3, %v797_v2  ;;  %v805_v8 = vrot.slane %v804_v6, 4 }
 0x17f   : > { %v718_v9 = vadd.f32 %v717_v4, %v716_v63  ;;  %v724_v10 = vrot.slane %v723_v5, 1  ;;  %v800_v11 = vrot.slane %v799_v7, 2  ;;  %v806_v12 = vadd.f32 %v805_v8, %v804_v6 }
 0x181   : > { %v725_v13 = vadd.f32 %v724_v10, %v723_v5  ;;  %v726_v14 = vmul.f32 0.5, %v718_v9  ;;  %v801_v15 = vadd.f32 %v800_v11, %v799_v7  ;;  %v807_v16 = vrot.slane %v806_v12, 2 }
 0x183   : > { %v727_v17 = vmul.f32 0.5, %v725_v13  ;;  %v728_v18 = vadd.f32 1e-05, %v726_v14  ;;  %v802_v19 = vrot.slane %v801_v15, 1  ;;  %v808_v20 = vadd.f32 %v807_v16, %v806_v12 }
 0x185   : > { %v729_v21 = vadd.f32 1e-05, %v727_v17  ;;  %1112 = vrsqrt.f32 %v728_v18  ;;  %v803_v23 = vadd.f32 %v802_v19, %v801_v15  ;;  %v809_v24 = vrot.slane %v808_v20, 1 }
 0x187   : > { %1114 = vrsqrt.f32 %v729_v21  ;;  %v810_v25 = vadd.f32 %v809_v24, %v808_v20  ;;  %v811_v26 = vmul.f32 0.5, %v803_v23 }
 0x189   : > { %v812_v28 = vmul.f32 0.5, %v810_v25  ;;  %v813_v29 = vadd.f32 1e-05, %v811_v26 }
 0x18b   : > { %v814_v30 = vadd.f32 1e-05, %v812_v28  ;;  %1116 = vrsqrt.f32 %v813_v29 }
 0x18d   : > { %1118 = vrsqrt.f32 %v814_v30 }
 0x18f   : > { %v1113_v34 = vpop.eup %1112 }
 0x191   : > { %v1115_v35 = vpop.eup %1114 }
 0x192   : > { %v734_v38 = vcombine.low %v1113_v34, %v1115_v35 }
 0x194   : > { %v736_v40 = vmul.f32 %v734_v38, %v707_v47 }
 0x195   : > { %v1117_v44 = vpop.eup %1116 }
 0x196   : > { %v749_v45 = vmul.f32 %v747_v41, %v736_v40 }
 0x197   : > { %v1119_v46 = vpop.eup %1118 }
 0x198   : > { %v819_v49 = vcombine.low %v1117_v44, %v1119_v46  ;;  %v762_v50 = vadd.f32 %v760_v48, %v749_v45 }
 0x19a   : > { %v820_v51 = vrot.slane %v819_v49, 6  ;;  %v763_v56 = vmax.f32 %v762_v50, 0.0 }
 0x19c   : > { %v822_v53 = vmul.f32 %v820_v51, %v1395_v54  ;;  %v831_v47 = vcombine.high %v763_v56, %v763_v56 }
 0x19e   : > { %v825_v57 = vmul.f32 %v823_v52, %v822_v53 }
 0x1a0   : > { %v828_v58 = vadd.f32 %v826_v55, %v825_v57 }
 0x1a2   : > { %v829_v59 = vmax.f32 %v828_v58, 0.0 }
 0x1a4   : > { %v834_v60 = vcombine.high %v829_v59, %v829_v59  ;;  %v836_v61 = vsel %vm685_vm0, %v763_v56, %v829_v59 }
 0x1a6   : > { %v837_v62 = vsel %vm685_vm0, %v831_v47, %v834_v60 }
 0x1a7   : > { %v1001_v63 = vpack.c.bf16 %v837_v62, %v836_v61 }
 0x1a9   : > { %1002 = vst.sshfl [vmem:[%s1348_s15] sm:$0x33 pattern:$0x76325410] %v1001_v63 }
 0x1aa PF: > { %s14_s21 = sadd.s32 1, %s1174_s21   ;;  %s1442_s15 = smov %s1154_s16 }
 0x1ab   : > { %p11_p13 = scmp.ge.s32.totalorder %s14_s21, 6   ;;  %s1443_s16 = smov %s1253_s28 }
 0x1ac   : > { %s1444_s17 = smov %s1166_s19  ;;  %s1445_s18 = smov %s1170_s20 }
 0x1ad   : > { %s1446_s19 = smov %s1449_s22  ;;  %s1447_s20 = smov %s1453_s23 }
 0x1ae   :  { %13 = sbr.rel (!%p11_p13) target bundleno = 4 (0x4), region = 124 }

// kernel: barlow_twins_forward.10
= control target key start
LH: loop header
LB: loop body
LE: loop exit
PB: predicated region body
PF: predicated region fallthrough
CT: control target
= control target key end

     0   :  { %s1189_s15 = smov 0   ;;  %s1191_s16 = smov 0   ;;  %s1424_s0 = inlined_call_operand.vmem [shape: bf16[4,512], index: 0, kind: input, shape index: {}]   ;;  %s1425_s1 = inlined_call_operand.vmem [shape: bf16[512,512], index: 1, kind: input, shape index: {}]   ;;  %s1426_s2 = inlined_call_operand.vmem [shape: f32[1,512], index: 2, kind: input, shape index: {}]   ;;  %s1427_s3 = inlined_call_operand.vmem [shape: f32[1,512], index: 3, kind: input, shape index: {}]   ;;  %s1428_s4 = inlined_call_operand.vmem [shape: f32[4,512], index: 4, kind: output, shape index: {}]  }
   0x1   :  { %s1193_s17 = smov 0   ;;  %s1195_s18 = smov 0  }
   0x2   :  { %s1197_s19 = smov 0   ;;  %s1199_s20 = smov 0  }
   0x3   :  { %s1201_s21 = smov 0  }
   0x4 LB: > { %s23_s22 = sadd.s32 1, %s1153_s19  ;;  %s26_s23 = sadd.s32 1, %s1157_s20  ;;  %s1161_s21 = sphi %s1201_s21, %s14_s21   ;;  %s1157_s20 = sphi %s1199_s20, %s1434_s20   ;;  %s1153_s19 = sphi %s1197_s19, %s1433_s19   ;;  %s1149_s18 = sphi %s1195_s18, %s1432_s18   ;;  %s1145_s17 = sphi %s1193_s17, %s1431_s17   ;;  %s1141_s16 = sphi %s1191_s16, %s1430_s16   ;;  %s1137_s15 = sphi %s1189_s15, %s1429_s15  }
   0x5   : > { %p24_p0 = scmp.ge.s32.totalorder %s23_s22, 2  ;;  %p63_p1 = scmp.ne.s32.totalorder %s1141_s16, %s1137_s15 }
   0x6   : > { %p64_p2 = scmp.eq.s32.totalorder %s1161_s21, 0  ;;  %s56_s27 = sadd.s32 1, %s1141_s16 }
   0x7   : > { %s1436_s22 = smov (%p24_p0, %s23_s22), 0  ;;  %s1438_s23 = smov (!%p24_p0, %s26_s23), %s1157_s20 }
   0x8   : > { %p65_p3 = por %p64_p2, %p63_p1  ;;  %p28_p4 = scmp.ge.s32.totalorder %s1438_s23, 2 }
   0x9   : > { %s51_s24 = ssub.s32 %s1153_s19, %s1436_s22  ;;  %p941_p6 = scmp.ge.s32.totalorder %s1161_s21, 4 }
   0xa   : > { %s1440_s23 = smov (%p28_p4, %s1438_s23), 0 }
   0xb   : > { %s52_s25 = ssub.s32 %s1157_s20, %s1440_s23  ;;  %170 = sbr.rel (%p941_p6) target bundleno = 41 (0x29), region = 20 }
   0xc   : > { %s53_s26 = sor.u32 %s52_s25, %s51_s24 }
   0xd   : > { %p54_p5 = scmp.eq.s32.totalorder %s53_s26, 0 }
   0xf   : > { %s1240_s28 = scalar_select %p54_p5, %s1141_s16, %s56_s27  }
  0x12   : > { %173 = sbr.rel (!%p65_p3) target bundleno = 41 (0x29), region = 24  ;;  %s175_s29 = sand.u32 (%p65_p3), 1, %s1141_s16  }
  0x13   : > { %s944_s30 = sshll.u32 (%p65_p3), %s1157_s20, 1  ;;  %s942_s5 = sshll.u32 (%p65_p3), %s175_s29, 8 }
  0x14   : > { %s992_s6 = sshll.u32 (%p65_p3), %s1153_s19, 7  ;;  %s1254_s12 = scalar_lea.vmem (%p65_p3), [#allocation3], %s942_s5 }
  0x15   : > { %s181_s7 = sadd.s32 (%p65_p3), %s992_s6, %s944_s30 }
  0x16   : > { %s946_s8 = sshll.u32 (%p65_p3), %s181_s7, 2 }
  0x17   : > { %s1249_s11 = scalar_lea.vmem (%p65_p3), %s1425_s1, %s946_s8 }
  0x18   : > { %v273_v0 = vld [vmem:[%s1249_s11] sm:$0xff] (%p65_p3)  ;;  %v275_v1 = vld [vmem:[%s1249_s11 + $0x10] sm:$0xff] (%p65_p3) }
  0x19   : > { %v277_v2 = vld [vmem:[%s1249_s11 + $0x20] sm:$0xff]  ;;  %274 = vst [vmem:[%s1254_s12] sm:$0xff] %v273_v0  ;;  %276 = vst [vmem:[%s1254_s12 + $0x8] sm:$0xff] %v275_v1  ;;  %v279_v3 = vld [vmem:[%s1249_s11 + $0x30] sm:$0xff] }
  0x1a   : > { %278 = vst [vmem:[%s1254_s12 + $0x10] sm:$0xff] %v277_v2  ;;  %v281_v4 = vld [vmem:[%s1249_s11 + $0x40] sm:$0xff]  ;;  %v283_v5 = vld [vmem:[%s1249_s11 + $0x50] sm:$0xff]  ;;  %280 = vst [vmem:[%s1254_s12 + $0x18] sm:$0xff] %v279_v3 }
  0x1b   : > { %282 = vst [vmem:[%s1254_s12 + $0x20] sm:$0xff] %v281_v4  ;;  %284 = vst [vmem:[%s1254_s12 + $0x28] sm:$0xff] %v283_v5  ;;  %v285_v6 = vld [vmem:[%s1249_s11 + $0x60] sm:$0xff]  ;;  %v287_v7 = vld [vmem:[%s1249_s11 + $0x70] sm:$0xff] }
  0x1c   : > { %v289_v8 = vld [vmem:[%s1249_s11 + $0x80] sm:$0xff]  ;;  %286 = vst [vmem:[%s1254_s12 + $0x30] sm:$0xff] %v285_v6  ;;  %288 = vst [vmem:[%s1254_s12 + $0x38] sm:$0xff] %v287_v7  ;;  %v291_v9 = vld [vmem:[%s1249_s11 + $0x90] sm:$0xff] }
  0x1d   : > { %290 = vst [vmem:[%s1254_s12 + $0x40] sm:$0xff] %v289_v8  ;;  %v293_v10 = vld [vmem:[%s1249_s11 + $0xa0] sm:$0xff]  ;;  %v295_v11 = vld [vmem:[%s1249_s11 + $0xb0] sm:$0xff]  ;;  %292 = vst [vmem:[%s1254_s12 + $0x48] sm:$0xff] %v291_v9 }
  0x1e   : > { %294 = vst [vmem:[%s1254_s12 + $0x50] sm:$0xff] %v293_v10  ;;  %296 = vst [vmem:[%s1254_s12 + $0x58] sm:$0xff] %v295_v11  ;;  %v297_v12 = vld [vmem:[%s1249_s11 + $0xc0] sm:$0xff]  ;;  %v299_v13 = vld [vmem:[%s1249_s11 + $0xd0] sm:$0xff] }
  0x1f   : > { %v301_v14 = vld [vmem:[%s1249_s11 + $0xe0] sm:$0xff]  ;;  %298 = vst [vmem:[%s1254_s12 + $0x60] sm:$0xff] %v297_v12  ;;  %300 = vst [vmem:[%s1254_s12 + $0x68] sm:$0xff] %v299_v13  ;;  %v303_v15 = vld [vmem:[%s1249_s11 + $0xf0] sm:$0xff] }
  0x20   : > { %302 = vst [vmem:[%s1254_s12 + $0x70] sm:$0xff] %v301_v14  ;;  %v305_v16 = vld [vmem:[%s1249_s11 + $0x100] sm:$0xff]  ;;  %v307_v17 = vld [vmem:[%s1249_s11 + $0x110] sm:$0xff]  ;;  %304 = vst [vmem:[%s1254_s12 + $0x78] sm:$0xff] %v303_v15 }
  0x21   : > { %306 = vst [vmem:[%s1254_s12 + $0x80] sm:$0xff] %v305_v16  ;;  %308 = vst [vmem:[%s1254_s12 + $0x88] sm:$0xff] %v307_v17  ;;  %v309_v18 = vld [vmem:[%s1249_s11 + $0x120] sm:$0xff]  ;;  %v311_v19 = vld [vmem:[%s1249_s11 + $0x130] sm:$0xff] }
  0x22   : > { %v313_v20 = vld [vmem:[%s1249_s11 + $0x140] sm:$0xff]  ;;  %310 = vst [vmem:[%s1254_s12 + $0x90] sm:$0xff] %v309_v18  ;;  %312 = vst [vmem:[%s1254_s12 + $0x98] sm:$0xff] %v311_v19  ;;  %v315_v21 = vld [vmem:[%s1249_s11 + $0x150] sm:$0xff] }
  0x23   : > { %314 = vst [vmem:[%s1254_s12 + $0xa0] sm:$0xff] %v313_v20  ;;  %v317_v22 = vld [vmem:[%s1249_s11 + $0x160] sm:$0xff]  ;;  %v319_v23 = vld [vmem:[%s1249_s11 + $0x170] sm:$0xff]  ;;  %316 = vst [vmem:[%s1254_s12 + $0xa8] sm:$0xff] %v315_v21 }
  0x24   : > { %318 = vst [vmem:[%s1254_s12 + $0xb0] sm:$0xff] %v317_v22  ;;  %320 = vst [vmem:[%s1254_s12 + $0xb8] sm:$0xff] %v319_v23  ;;  %v321_v24 = vld [vmem:[%s1249_s11 + $0x180] sm:$0xff]  ;;  %v323_v25 = vld [vmem:[%s1249_s11 + $0x190] sm:$0xff] }
  0x25   : > { %v325_v26 = vld [vmem:[%s1249_s11 + $0x1a0] sm:$0xff]  ;;  %322 = vst [vmem:[%s1254_s12 + $0xc0] sm:$0xff] %v321_v24  ;;  %324 = vst [vmem:[%s1254_s12 + $0xc8] sm:$0xff] %v323_v25  ;;  %v327_v27 = vld [vmem:[%s1249_s11 + $0x1b0] sm:$0xff] }
  0x26   : > { %326 = vst [vmem:[%s1254_s12 + $0xd0] sm:$0xff] %v325_v26  ;;  %v329_v28 = vld [vmem:[%s1249_s11 + $0x1c0] sm:$0xff]  ;;  %v331_v29 = vld [vmem:[%s1249_s11 + $0x1d0] sm:$0xff]  ;;  %328 = vst [vmem:[%s1254_s12 + $0xd8] sm:$0xff] %v327_v27 }
  0x27   : > { %330 = vst [vmem:[%s1254_s12 + $0xe0] sm:$0xff] %v329_v28  ;;  %332 = vst [vmem:[%s1254_s12 + $0xe8] sm:$0xff] %v331_v29  ;;  %v333_v30 = vld [vmem:[%s1249_s11 + $0x1e0] sm:$0xff]  ;;  %v335_v31 = vld [vmem:[%s1249_s11 + $0x1f0] sm:$0xff] }
  0x28   : > { %334 = vst [vmem:[%s1254_s12 + $0xf0] sm:$0xff] %v333_v30  ;;  %336 = vst [vmem:[%s1254_s12 + $0xf8] sm:$0xff] %v335_v31 }
  0x29 PF: > { %p947_p7 = scmp.ge.s32.totalorder %s1161_s21, 1  ;;  %p357_p8 = scmp.lt.s32.totalorder %s1161_s21, 5 }
  0x2b   : > { %p358_p9 = pnand %p947_p7, %p357_p8 }
  0x2c   : > { %s364_s13 = sand.u32 (!%p358_p9), 1, %s1137_s15   ;;  %s949_s14 = sshll.u32 (!%p358_p9), %s1149_s18, 1 }
  0x2d   : > { %361 = sbr.rel (%p358_p9) target bundleno = 424 (0x1a8), region = 70  ;;  %s948_s24 = sshll.u32 (!%p358_p9), %s364_s13, 8 }
  0x2e   : > { %p400_p10 = scmp.lt.s32.totalorder (!%p358_p9), %s949_s14, 3  ;;  %s1337_s18 = scalar_lea.vmem (!%p358_p9), [#allocation3], %s948_s24 }
  0x2f   : > { %p953_p11 = scmp.ne.s32.totalorder (!%p358_p9), %s1145_s17, 0 }
  0x34   : > { %s1442_s14 = smov (!%p400_p10, %s949_s14), 3  ;;  %418 = sbr.rel (%p953_p11) target bundleno = 59 (0x3b), region = 78 }
  0x35   : > { %s402_s27 = scalar_lea.vmem %s1426_s2, %s1442_s14  ;;  %s407_s5 = scalar_lea.vmem %s1427_s3, %s1442_s14  ;;  %v1163_v32 = vmov (!%p953_p11), 0.0  }
  0x36   : > { %s952_s6 = sshll.u32 %s1442_s14, 2  ;;  %419 = vst [vmem:[#allocation2] sm:$0xff] (!%p953_p11), %v1163_v32 }
  0x37   : > { %s1335_s15 = scalar_lea.vmem %s1428_s4, %s952_s6 }
  0x3b PF: > { %v1050_v33 = vld [vmem:[%s1337_s18 + $0x4] ss:$8 sps:$4 sm:$0xff]   ;;  %v1052_v34 = vld [vmem:[%s1337_s18] ss:$8 sps:$4 sm:$0xff]   ;;  %v1053_v35 = vld [vmem:[%s1337_s18 + $0x14] ss:$8 sps:$4 sm:$0xff]  }
  0x3c   : > { %630 = vmatprep.subr.bf16.mxu0 %v1050_v33  ;;  %v1055_v36 = vld [vmem:[%s1337_s18 + $0x10] ss:$8 sps:$4 sm:$0xff]   ;;  %v1056_v37 = vld [vmem:[%s1337_s18 + $0x24] ss:$8 sps:$4 sm:$0xff]   ;;  %v1058_v38 = vld [vmem:[%s1337_s18 + $0x20] ss:$8 sps:$4 sm:$0xff]  }
  0x3d   : > { %631 = vmatpush1.bf16.msra.mxu0 %v1052_v34  ;;  %v1059_v39 = vld [vmem:[%s1337_s18 + $0x34] ss:$8 sps:$4 sm:$0xff]   ;;  %s954_s9 = sshll.u32 %s1145_s17, 8  ;;  %v1061_v40 = vld [vmem:[%s1337_s18 + $0x30] ss:$8 sps:$4 sm:$0xff]   ;;  %p989_p12 = scmp.ne.s32.totalorder %s1145_s17, 1 }
  0x3e   : > { %632 = vmatprep.subr.bf16.mxu0 %v1053_v35  ;;  %v1062_v41 = vld [vmem:[%s1337_s18 + $0x44] ss:$8 sps:$4 sm:$0xff]   ;;  %s421_s10 = sshra.s32 %s954_s9, 7  ;;  %v1064_v42 = vld [vmem:[%s1337_s18 + $0x40] ss:$8 sps:$4 sm:$0xff]   ;;  %v426_v4 = vld [vmem:[#allocation2] sm:$0xff] }
  0x3f   : > { %s955_s11 = sshll.u32 %s421_s10, 1  ;;  %v1065_v43 = vld [vmem:[%s1337_s18 + $0x54] ss:$8 sps:$4 sm:$0xff]   ;;  %v1067_v44 = vld [vmem:[%s1337_s18 + $0x50] ss:$8 sps:$4 sm:$0xff]   ;;  %vm685_vm0 = vcmask (!%p989_p12), 1041408  }
  0x40   : > { %s424_s24 = scalar_lea.vmem %s1424_s0, %s955_s11  ;;  %v1068_v45 = vld [vmem:[%s1337_s18 + $0x64] ss:$8 sps:$4 sm:$0xff]   ;;  %v1070_v48 = vld [vmem:[%s1337_s18 + $0x60] ss:$8 sps:$4 sm:$0xff]   ;;  %v1071_v49 = vld [vmem:[%s1337_s18 + $0x74] ss:$8 sps:$4 sm:$0xff]  }
  0x41   : > { %633 = vmatpush1.bf16.msra.mxu0 %v1055_v36  ;;  %v956_v46 = vld.sshfl [vmem:[%s424_s24] sm:$0x33 pattern:$0x76325410]  ;;  %v1074_v51 = vld [vmem:[%s1337_s18 + $0x84] ss:$8 sps:$4 sm:$0xff]  }
  0x42   : > { %634 = vmatprep.subr.bf16.mxu0 %v1056_v37  ;;  %v467_v47 = vcombine.high %v956_v46, %v956_v46  ;;  %v1073_v50 = vld [vmem:[%s1337_s18 + $0x70] ss:$8 sps:$4 sm:$0xff]   ;;  %v1076_v52 = vld [vmem:[%s1337_s18 + $0x80] ss:$8 sps:$4 sm:$0xff]   ;;  %v1077_v53 = vld [vmem:[%s1337_s18 + $0x94] ss:$8 sps:$4 sm:$0xff]  }
  0x43   : > { %v1079_v54 = vld [vmem:[%s1337_s18 + $0x90] ss:$8 sps:$4 sm:$0xff]   ;;  %v1080_v55 = vld [vmem:[%s1337_s18 + $0xa4] ss:$8 sps:$4 sm:$0xff]   ;;  %v1082_v56 = vld [vmem:[%s1337_s18 + $0xa0] ss:$8 sps:$4 sm:$0xff]  }
  0x44   : > { %662 = vmatprep.mubr.bf16.mxu0 %v467_v47  ;;  %v1083_v57 = vld [vmem:[%s1337_s18 + $0xb4] ss:$8 sps:$4 sm:$0xff]   ;;  %v1085_v58 = vld [vmem:[%s1337_s18 + $0xb0] ss:$8 sps:$4 sm:$0xff]   ;;  %v1086_v59 = vld [vmem:[%s1337_s18 + $0xc4] ss:$8 sps:$4 sm:$0xff]  }
  0x45   : > { %635 = vmatpush1.bf16.msra.mxu0 %v1058_v38  ;;  %v1088_v60 = vld [vmem:[%s1337_s18 + $0xc0] ss:$8 sps:$4 sm:$0xff]   ;;  %v1089_v61 = vld [vmem:[%s1337_s18 + $0xd4] ss:$8 sps:$4 sm:$0xff]   ;;  %v1091_v62 = vld [vmem:[%s1337_s18 + $0xd0] ss:$8 sps:$4 sm:$0xff]  }
  0x46   : > { %636 = vmatprep.subr.bf16.mxu0 %v1059_v39  ;;  %v1092_v63 = vld [vmem:[%s1337_s18 + $0xe4] ss:$8 sps:$4 sm:$0xff]   ;;  %v1094_v0 = vld [vmem:[%s1337_s18 + $0xe0] ss:$8 sps:$4 sm:$0xff]   ;;  %v1095_v1 = vld [vmem:[%s1337_s18 + $0xf4] ss:$8 sps:$4 sm:$0xff]  }
  0x47   : > { %v1097_v2 = vld [vmem:[%s1337_s18 + $0xf0] ss:$8 sps:$4 sm:$0xff]  }
  0x49   : > { %637 = vmatpush1.bf16.msra.mxu0 %v1061_v40 }
  0x4a   : > { %638 = vmatprep.subr.bf16.mxu0 %v1062_v41 }
  0x4d   : > { %639 = vmatpush1.bf16.msra.mxu0 %v1064_v42 }
  0x4e   : > { %640 = vmatprep.subr.bf16.mxu0 %v1065_v43 }
  0x51   : > { %641 = vmatpush1.bf16.msra.mxu0 %v1067_v44 }
  0x52   : > { %642 = vmatprep.subr.bf16.mxu0 %v1068_v45 }
  0x55   : > { %643 = vmatpush1.bf16.msra.mxu0 %v1070_v48 }
  0x56   : > { %644 = vmatprep.subr.bf16.mxu0 %v1071_v49 }
  0x59   : > { %645 = vmatpush1.bf16.msra.mxu0 %v1073_v50 }
  0x5a   : > { %646 = vmatprep.subr.bf16.mxu0 %v1074_v51 }
  0x5d   : > { %647 = vmatpush1.bf16.msra.mxu0 %v1076_v52 }
  0x5e   : > { %648 = vmatprep.subr.bf16.mxu0 %v1077_v53 }
  0x61   : > { %649 = vmatpush1.bf16.msra.mxu0 %v1079_v54 }
  0x62   : > { %650 = vmatprep.subr.bf16.mxu0 %v1080_v55 }
  0x65   : > { %651 = vmatpush1.bf16.msra.mxu0 %v1082_v56 }
  0x66   : > { %652 = vmatprep.subr.bf16.mxu0 %v1083_v57 }
  0x69   : > { %653 = vmatpush1.bf16.msra.mxu0 %v1085_v58 }
  0x6a   : > { %654 = vmatprep.subr.bf16.mxu0 %v1086_v59 }
  0x6d   : > { %655 = vmatpush1.bf16.msra.mxu0 %v1088_v60 }
  0x6e   : > { %656 = vmatprep.subr.bf16.mxu0 %v1089_v61 }
  0x71   : > { %657 = vmatpush1.bf16.msra.mxu0 %v1091_v62 }
  0x72   : > { %658 = vmatprep.subr.bf16.mxu0 %v1092_v63 }
  0x75   : > { %659 = vmatpush1.bf16.msra.mxu0 %v1094_v0 }
  0x76   : > { %660 = vmatprep.subr.bf16.mxu0 %v1095_v1 }
  0x79   : > { %661 = vmatpush1.bf16.msra.mxu0 %v1097_v2 }
  0x7c   : > { %663 = vmatmul.mubr.bf16.vlgmr.msra.gmra.mrb[0].mxu0 %v956_v46 }
 0x14f   : > { %v664_v3 = vpop.f32.mrb[0].mxu0  ;;  %680 = sbr.rel (%p989_p12) target bundleno = 424 (0x1a8), region = 82 }
 0x150   : > { %v666_v5 = vpop.f32.mrb[1].mxu0 }
 0x151   : > { %v673_v6 = vcombine.low %v664_v3, %v666_v5  ;;  %v668_v7 = vpop.f32.mrb[2].mxu0 }
 0x152   : > { %v669_v8 = vpop.f32.mrb[3].mxu0 }
 0x153   : > { %v675_v9 = vadd.f32 %v673_v6, %v426_v4 }
 0x155   : > { %676 = vst [vmem:[#allocation2] sm:$0xff] %v675_v9 }
 0x15c   : > { %v681_v10 = vld [vmem:[#allocation2] sm:$0xff] }
 0x15d   : > { %v683_v11 = vcombine.high %v681_v10, %v681_v10  ;;  %v686_v12 = vsel %vm685_vm0, %v681_v10, 0.0  ;;  %v763_v13 = vrot.slane %v681_v10, 2 }
 0x15e   : > { %v687_v14 = vrot.slane %v686_v12, 4 }
 0x15f   : > { %v693_v15 = vsel %vm685_vm0, %v683_v11, 0.0  ;;  %v764_v16 = vrot.slane %v683_v11, 2  ;;  %v767_v17 = vsel %vm685_vm0, %v763_v13, 0.0 }
 0x160   : > { %v688_v18 = vadd.f32 %v687_v14, %v686_v12  ;;  %v694_v19 = vrot.slane %v693_v15, 4  ;;  %v768_v20 = vrot.slane %v767_v17, 4 }
 0x161   : > { %v774_v21 = vsel %vm685_vm0, %v764_v16, 0.0 }
 0x162   : > { %v689_v22 = vrot.slane %v688_v18, 2  ;;  %v695_v23 = vadd.f32 %v694_v19, %v693_v15  ;;  %v769_v24 = vadd.f32 %v768_v20, %v767_v17  ;;  %v775_v25 = vrot.slane %v774_v21, 4 }
 0x164   : > { %v690_v26 = vadd.f32 %v689_v22, %v688_v18  ;;  %v696_v27 = vrot.slane %v695_v23, 2  ;;  %v770_v28 = vrot.slane %v769_v24, 2  ;;  %v776_v29 = vadd.f32 %v775_v25, %v774_v21 }
 0x166   : > { %v691_v30 = vrot.slane %v690_v26, 1  ;;  %v697_v31 = vadd.f32 %v696_v27, %v695_v23  ;;  %v771_v32 = vadd.f32 %v770_v28, %v769_v24  ;;  %v777_v33 = vrot.slane %v776_v29, 2 }
 0x167   : > { %v739_v24 = vlaneseq }
 0x168   : > { %v692_v34 = vadd.f32 %v691_v30, %v690_v26  ;;  %v698_v35 = vrot.slane %v697_v31, 1  ;;  %v772_v36 = vrot.slane %v771_v32, 1  ;;  %v778_v37 = vadd.f32 %v777_v33, %v776_v29 }
 0x169   : > { %v740_v29 = vshrl.u32 %v739_v24, 7 }
 0x16a   : > { %v699_v38 = vadd.f32 %v698_v35, %v697_v31  ;;  %v701_v39 = vmul.f32 0.5, %v692_v34  ;;  %v773_v40 = vadd.f32 %v772_v36, %v771_v32  ;;  %v779_v41 = vrot.slane %v778_v37, 1  ;;  %v737_v34 = vld [vmem:[%s402_s27] sm:$0x3] }
 0x16b   : > { %v741_v32 = vsub.s32 0, %v740_v29  ;;  %v745_v33 = vsub.s32 1, %v740_v29 }
 0x16c   : > { %v702_v42 = vmul.f32 0.5, %v699_v38  ;;  %v780_v43 = vadd.f32 %v779_v41, %v778_v37  ;;  %v781_v44 = vmul.f32 0.5, %v773_v40  ;;  %v750_v37 = vld [vmem:[%s407_s5] sm:$0x3] }
 0x16d   : > { %v742_v38 = vrot.slane %v737_v34, %v741_v32  ;;  %v755_v41 = vrot.slane %v750_v37, %v741_v32 }
 0x16e   : > { %v705_v45 = vcombine.low %v701_v39, %v702_v42  ;;  %v782_v46 = vmul.f32 0.5, %v780_v43  ;;  %v746_v39 = vrot.slane %v737_v34, %v745_v33  ;;  %v759_v42 = vrot.slane %v750_v37, %v745_v33 }
 0x170   : > { %v707_v47 = vsub.f32 %v681_v10, %v705_v45  ;;  %v785_v48 = vcombine.low %v781_v44, %v782_v46  ;;  %v747_v44 = vcombine.low %v742_v38, %v746_v39 }
 0x172   : > { %v708_v49 = vmul.f32 %v707_v47, %v707_v47  ;;  %v786_v50 = vrot.slane %v785_v48, 6  ;;  %v760_v48 = vcombine.low %v755_v41, %v759_v42 }
 0x174   : > { %v710_v51 = vcombine.high %v708_v49, %v708_v49  ;;  %v712_v52 = vsel %vm685_vm0, %v708_v49, 0.0  ;;  %v1382_v54 = vsub.f32 %v681_v10, %v786_v50 }
 0x175   : > { %v713_v53 = vrot.slane %v712_v52, 4 }
 0x176   : > { %v719_v55 = vsel %vm685_vm0, %v710_v51, 0.0  ;;  %v789_v58 = vmul.f32 %v1382_v54, %v1382_v54  ;;  %v822_v51 = vrot.slane %v747_v44, 6 }
 0x177   : > { %v714_v56 = vadd.f32 %v713_v53, %v712_v52  ;;  %v720_v57 = vrot.slane %v719_v55, 4 }
 0x178   : > { %v791_v61 = vcombine.high %v789_v58, %v789_v58  ;;  %v792_v62 = vrot.slane %v789_v58, 2 }
 0x179   : > { %v715_v59 = vrot.slane %v714_v56, 2  ;;  %v721_v60 = vadd.f32 %v720_v57, %v719_v55  ;;  %v825_v55 = vrot.slane %v760_v48, 6 }
 0x17a   : > { %v793_v1 = vrot.slane %v791_v61, 2  ;;  %v796_v2 = vsel %vm685_vm0, %v792_v62, 0.0 }
 0x17b   : > { %v716_v63 = vadd.f32 %v715_v59, %v714_v56  ;;  %v722_v0 = vrot.slane %v721_v60, 2  ;;  %v797_v3 = vrot.slane %v796_v2, 4 }
 0x17c   : > { %v803_v6 = vsel %vm685_vm0, %v793_v1, 0.0 }
 0x17d   : > { %v717_v4 = vrot.slane %v716_v63, 1  ;;  %v723_v5 = vadd.f32 %v722_v0, %v721_v60  ;;  %v798_v7 = vadd.f32 %v797_v3, %v796_v2  ;;  %v804_v8 = vrot.slane %v803_v6, 4 }
 0x17f   : > { %v718_v9 = vadd.f32 %v717_v4, %v716_v63  ;;  %v724_v10 = vrot.slane %v723_v5, 1  ;;  %v799_v11 = vrot.slane %v798_v7, 2  ;;  %v805_v12 = vadd.f32 %v804_v8, %v803_v6 }
 0x181   : > { %v725_v13 = vadd.f32 %v724_v10, %v723_v5  ;;  %v726_v14 = vmul.f32 0.5, %v718_v9  ;;  %v800_v15 = vadd.f32 %v799_v11, %v798_v7  ;;  %v806_v16 = vrot.slane %v805_v12, 2 }
 0x183   : > { %v727_v17 = vmul.f32 0.5, %v725_v13  ;;  %v728_v18 = vadd.f32 1e-05, %v726_v14  ;;  %v801_v19 = vrot.slane %v800_v15, 1  ;;  %v807_v20 = vadd.f32 %v806_v16, %v805_v12 }
 0x185   : > { %v729_v21 = vadd.f32 1e-05, %v727_v17  ;;  %1099 = vrsqrt.f32 %v728_v18  ;;  %v802_v22 = vadd.f32 %v801_v19, %v800_v15  ;;  %v808_v23 = vrot.slane %v807_v20, 1 }
 0x187   : > { %1101 = vrsqrt.f32 %v729_v21  ;;  %v809_v25 = vadd.f32 %v808_v23, %v807_v20  ;;  %v810_v26 = vmul.f32 0.5, %v802_v22 }
 0x189   : > { %v811_v27 = vmul.f32 0.5, %v809_v25  ;;  %v812_v28 = vadd.f32 1e-05, %v810_v26 }
 0x18b   : > { %v813_v30 = vadd.f32 1e-05, %v811_v27  ;;  %1103 = vrsqrt.f32 %v812_v28 }
 0x18d   : > { %1105 = vrsqrt.f32 %v813_v30 }
 0x18f   : > { %v1100_v31 = vpop.eup %1099 }
 0x191   : > { %v1102_v35 = vpop.eup %1101 }
 0x192   : > { %v734_v36 = vcombine.low %v1100_v31, %v1102_v35 }
 0x194   : > { %v736_v40 = vmul.f32 %v734_v36, %v707_v47 }
 0x195   : > { %v1104_v43 = vpop.eup %1103 }
 0x196   : > { %v749_v46 = vmul.f32 %v747_v44, %v736_v40 }
 0x197   : > { %v1106_v45 = vpop.eup %1105 }
 0x198   : > { %v818_v49 = vcombine.low %v1104_v43, %v1106_v45  ;;  %v762_v52 = vadd.f32 %v760_v48, %v749_v46 }
 0x19a   : > { %v819_v50 = vrot.slane %v818_v49, 6  ;;  %v829_v58 = vcombine.high %v762_v52, %v762_v52 }
 0x19c   : > { %v821_v53 = vmul.f32 %v819_v50, %v1382_v54 }
 0x19e   : > { %v824_v56 = vmul.f32 %v822_v51, %v821_v53 }
 0x1a0   : > { %v827_v57 = vadd.f32 %v825_v55, %v824_v56 }
 0x1a2   : > { %v832_v59 = vcombine.high %v827_v57, %v827_v57  ;;  %v834_v47 = vsel %vm685_vm0, %v762_v52, %v827_v57 }
 0x1a4   : > { %v835_v60 = vsel %vm685_vm0, %v829_v58, %v832_v59 }
 0x1a5   : > { %v838_v61 = vcombine.low %v834_v47, %v835_v60 }
 0x1a7   : > { %840 = vst [vmem:[%s1335_s15] sm:$0xff] %v838_v61 }
 0x1a8 PF: > { %s14_s21 = sadd.s32 1, %s1161_s21   ;;  %s1429_s15 = smov %s1141_s16 }
 0x1a9   : > { %p11_p13 = scmp.ge.s32.totalorder %s14_s21, 6   ;;  %s1430_s16 = smov %s1240_s28 }
 0x1aa   : > { %s1431_s17 = smov %s1153_s19  ;;  %s1432_s18 = smov %s1157_s20 }
 0x1ab   : > { %s1433_s19 = smov %s1436_s22  ;;  %s1434_s20 = smov %s1440_s23 }
 0x1ac   :  { %13 = sbr.rel (!%p11_p13) target bundleno = 4 (0x4), region = 124 }

// kernel: barlow_twins_forward.11
= control target key start
LH: loop header
LB: loop body
LE: loop exit
PB: predicated region body
PF: predicated region fallthrough
CT: control target
= control target key end

     0   :  { %7 = vsyncpa [#allocation4], 0  ;;  %s1638_s9 = smov 0   ;;  %s1640_s10 = smov 0   ;;  %s2434_s0 = inlined_call_operand.vmem [shape: f32[512,2], index: 0, kind: input, shape index: {}]   ;;  %s2435_s1 = inlined_call_operand.vmem [shape: f32[2,512], index: 1, kind: input, shape index: {}]   ;;  %s2436_s2 = inlined_call_operand.vmem [shape: f32[2,2], index: 2, kind: output, shape index: {}]  }
   0x1   :  { %s1642_s11 = smov 0   ;;  %s1644_s12 = smov 0  }
   0x2   :  { %s1646_s13 = smov 0  }
   0x3 LB: > { %s1378_s14 = sadd.s32 4294967295, %s1618_s13   ;;  %s22_s15 = sadd.s32 1, %s1610_s11  ;;  %s1618_s13 = sphi %s1646_s13, %s13_s13   ;;  %s1614_s12 = sphi %s1644_s12, %s2498_s12   ;;  %s1610_s11 = sphi %s1642_s11, %s2497_s11   ;;  %s1606_s10 = sphi %s1640_s10, %s2496_s10   ;;  %s1602_s9 = sphi %s1638_s9, %s2495_s9  }
   0x4   : > { %p23_p0 = scmp.ge.s32.totalorder %s22_s15, 2  ;;  %s25_s16 = sadd.s32 1, %s1614_s12 }
   0x5   : > { %p1381_p1 = scmp.ge.s32.totalorder %s1618_s13, 1  ;;  %p132_p2 = scmp.lt.s32.totalorder %s1618_s13, 5 }
   0x6   : > { %s2500_s15 = smov (%p23_p0, %s22_s15), 0  ;;  %s2502_s16 = smov (!%p23_p0, %s25_s16), %s1614_s12 }
   0x7   : > { %p133_p3 = pnand %p1381_p1, %p132_p2  ;;  %p27_p4 = scmp.ge.s32.totalorder %s2502_s16, 2 }
   0x9   : > { %s2504_s16 = smov (%p27_p4, %s2502_s16), 0  ;;  %136 = sbr.rel (%p133_p3) target bundleno = 887 (0x377), region = 28 }
  0x10   : > { %s1384_s17 = sshll.u32 %s1602_s9, 1  ;;  %v1620_v0 = vmov 0.0   ;;  %s1382_s18 = sshll.u32 %s1606_s10, 5  ;;  %vm313_vm0 = vcmask 1041408   ;;  %vm216_vm1 = vcmask 15360  }
  0x11   : > { %p161_p5 = scmp.lt.s32.totalorder %s1384_s17, 3  ;;  %382 = vmatprep.mubr.f32.mxu0 %v1620_v0  ;;  %478 = vmatprep.mubr.f32.mxu1 %v1620_v0  ;;  %p155_p6 = scmp.lt.s32.totalorder %s1382_s18, 63 }
  0x12   : > { %p1515_p7 = scmp.eq.s32.totalorder %s1602_s9, 0  ;;  %s1621_s27 = smov 0.0  }
  0x13   : > { %s2506_s17 = smov (!%p161_p5, %s1384_s17), 3  ;;  %s2508_s18 = smov (!%p155_p6, %s1382_s18), 63 }
  0x14   : > { %s1385_s19 = sshll.u32 %s2506_s17, 1  ;;  %s1383_s23 = sshll.u32 %s2508_s18, 3 }
  0x15   : > { %s164_s22 = scalar_lea.vmem %s2435_s1, %s1385_s19  ;;  %s1683_s26 = scalar_lea.vmem %s2434_s0, %s1383_s23 }
  0x16   : > { %v1387_v1 = vld.sshfl [vmem:[%s164_s22] sm:$0x33 pattern:$0x76325410]  ;;  %v175_v4 = vld [vmem:[%s1683_s26 + $0x8] sm:$0xff]  ;;  %v176_v7 = vld [vmem:[%s1683_s26 + $0x10] sm:$0xff]  ;;  %p1423_p8 = scmp.ne.s32.totalorder %s1606_s10, %s1602_s9 }
  0x17   : > { %v215_v2 = vcombine.high %v1387_v1, %v1387_v1  ;;  %v174_v3 = vld [vmem:[%s1683_s26] sm:$0xff]  ;;  %v191_v6 = vld [vmem:[%s1683_s26 + $0x88] sm:$0xff]  ;;  %v192_v8 = vld [vmem:[%s1683_s26 + $0x90] sm:$0xff]  ;;  %1506 = sst [smem:[#allocation2]] (%p1515_p7), %s1621_s27 }
  0x18   : > { %v190_v5 = vld [vmem:[%s1683_s26 + $0x80] sm:$0xff]  ;;  %v177_v9 = vld [vmem:[%s1683_s26 + $0x18] sm:$0xff]  ;;  %v179_v13 = vld [vmem:[%s1683_s26 + $0x28] sm:$0xff]  ;;  %1507 = sst [smem:[#allocation2 + $0x1]] (%p1515_p7), %s1621_s27 }
  0x19   : > { %1388 = vmatprep.subr.msk.mxu0 %vm313_vm0, %v215_v2  ;;  %1497 = vmatprep.subr.msk.mxu1 %vm313_vm0, %v215_v2  ;;  %v193_v10 = vld [vmem:[%s1683_s26 + $0x98] sm:$0xff]  ;;  %v178_v11 = vld [vmem:[%s1683_s26 + $0x20] sm:$0xff]  ;;  %v195_v14 = vld [vmem:[%s1683_s26 + $0xa8] sm:$0xff]  ;;  %s1422_s28 = sld [smem:[#allocation2 + $0x1]] }
  0x1a   : > { %1389 = vmatpush1.msk.msra.mxu0 %vm313_vm0, %v1387_v1  ;;  %1498 = vmatpush1.msk.msra.mxu1 %vm313_vm0, %v1387_v1  ;;  %v194_v12 = vld [vmem:[%s1683_s26 + $0xa0] sm:$0xff]  ;;  %v180_v15 = vld [vmem:[%s1683_s26 + $0x30] sm:$0xff]  ;;  %v181_v17 = vld [vmem:[%s1683_s26 + $0x38] sm:$0xff] }
  0x1b   : > { %1390 = vmatmul.mubr.msk.f32.vlgmr.msra.gmra.mrb[0].mxu0 %vm216_vm1, %v174_v3  ;;  %1406 = vmatmul.mubr.msk.f32.vlgmr.msra.gmra.mrb[0].mxu1 %vm216_vm1, %v190_v5  ;;  %v196_v16 = vld [vmem:[%s1683_s26 + $0xb0] sm:$0xff]  ;;  %v197_v18 = vld [vmem:[%s1683_s26 + $0xb8] sm:$0xff]  ;;  %v182_v19 = vld [vmem:[%s1683_s26 + $0x40] sm:$0xff] }
  0x1c   : > { %388 = vmatprep.mubr.f32.mxu0 %v1620_v0  ;;  %484 = vmatprep.mubr.f32.mxu1 %v1620_v0  ;;  %v198_v20 = vld [vmem:[%s1683_s26 + $0xc0] sm:$0xff]  ;;  %v183_v21 = vld [vmem:[%s1683_s26 + $0x48] sm:$0xff]  ;;  %v184_v23 = vld [vmem:[%s1683_s26 + $0x50] sm:$0xff] }
  0x1d   : > { %v199_v22 = vld [vmem:[%s1683_s26 + $0xc8] sm:$0xff]  ;;  %v200_v24 = vld [vmem:[%s1683_s26 + $0xd0] sm:$0xff]  ;;  %v185_v25 = vld [vmem:[%s1683_s26 + $0x58] sm:$0xff] }
  0x1e   : > { %v201_v26 = vld [vmem:[%s1683_s26 + $0xd8] sm:$0xff]  ;;  %v186_v27 = vld [vmem:[%s1683_s26 + $0x60] sm:$0xff]  ;;  %v187_v29 = vld [vmem:[%s1683_s26 + $0x68] sm:$0xff] }
  0x1f   : > { %1391 = vmatmul.mubr.msk.f32.gmra.mrb[2].mxu0 %vm216_vm1, %v175_v4  ;;  %1407 = vmatmul.mubr.msk.f32.gmra.mrb[2].mxu1 %vm216_vm1, %v191_v6  ;;  %v202_v28 = vld [vmem:[%s1683_s26 + $0xe0] sm:$0xff]  ;;  %v203_v30 = vld [vmem:[%s1683_s26 + $0xe8] sm:$0xff]  ;;  %v188_v31 = vld [vmem:[%s1683_s26 + $0x70] sm:$0xff] }
  0x20   : > { %394 = vmatprep.mubr.f32.mxu0 %v1620_v0  ;;  %490 = vmatprep.mubr.f32.mxu1 %v1620_v0  ;;  %v204_v32 = vld [vmem:[%s1683_s26 + $0xf0] sm:$0xff]  ;;  %v189_v33 = vld [vmem:[%s1683_s26 + $0x78] sm:$0xff] }
  0x21   : > { %v205_v34 = vld [vmem:[%s1683_s26 + $0xf8] sm:$0xff] }
  0x23   : > { %1392 = vmatmul.mubr.msk.f32.gmra.mrb[4].mxu0 %vm216_vm1, %v176_v7  ;;  %1408 = vmatmul.mubr.msk.f32.gmra.mrb[4].mxu1 %vm216_vm1, %v192_v8 }
  0x24   : > { %400 = vmatprep.mubr.f32.mxu0 %v1620_v0  ;;  %496 = vmatprep.mubr.f32.mxu1 %v1620_v0 }
  0x27   : > { %1393 = vmatmul.mubr.msk.f32.gmra.mrb[6].mxu0 %vm216_vm1, %v177_v9  ;;  %1409 = vmatmul.mubr.msk.f32.gmra.mrb[6].mxu1 %vm216_vm1, %v193_v10 }
  0x28   : > { %406 = vmatprep.mubr.f32.mxu0 %v1620_v0  ;;  %502 = vmatprep.mubr.f32.mxu1 %v1620_v0 }
  0x2b   : > { %1394 = vmatmul.mubr.msk.f32.gmra.mrb[8].mxu0 %vm216_vm1, %v178_v11  ;;  %1410 = vmatmul.mubr.msk.f32.gmra.mrb[8].mxu1 %vm216_vm1, %v194_v12 }
  0x2c   : > { %412 = vmatprep.mubr.f32.mxu0 %v1620_v0  ;;  %508 = vmatprep.mubr.f32.mxu1 %v1620_v0 }
  0x2f   : > { %1395 = vmatmul.mubr.msk.f32.gmra.mrb[10].mxu0 %vm216_vm1, %v179_v13  ;;  %1411 = vmatmul.mubr.msk.f32.gmra.mrb[10].mxu1 %vm216_vm1, %v195_v14 }
  0x30   : > { %418 = vmatprep.mubr.f32.mxu0 %v1620_v0  ;;  %514 = vmatprep.mubr.f32.mxu1 %v1620_v0 }
  0x33   : > { %1396 = vmatmul.mubr.msk.f32.gmra.mrb[12].mxu0 %vm216_vm1, %v180_v15  ;;  %1412 = vmatmul.mubr.msk.f32.gmra.mrb[12].mxu1 %vm216_vm1, %v196_v16 }
  0x34   : > { %424 = vmatprep.mubr.f32.mxu0 %v1620_v0  ;;  %520 = vmatprep.mubr.f32.mxu1 %v1620_v0 }
  0x37   : > { %1397 = vmatmul.mubr.msk.f32.gmra.mrb[14].mxu0 %vm216_vm1, %v181_v17  ;;  %1413 = vmatmul.mubr.msk.f32.gmra.mrb[14].mxu1 %vm216_vm1, %v197_v18 }
  0x38   : > { %430 = vmatprep.mubr.f32.mxu0 %v1620_v0  ;;  %526 = vmatprep.mubr.f32.mxu1 %v1620_v0 }
  0x3b   : > { %1398 = vmatmul.mubr.msk.f32.gmra.mrb[16].mxu0 %vm216_vm1, %v182_v19  ;;  %1414 = vmatmul.mubr.msk.f32.gmra.mrb[16].mxu1 %vm216_vm1, %v198_v20 }
  0x3c   : > { %436 = vmatprep.mubr.f32.mxu0 %v1620_v0  ;;  %532 = vmatprep.mubr.f32.mxu1 %v1620_v0 }
  0x3f   : > { %1399 = vmatmul.mubr.msk.f32.gmra.mrb[18].mxu0 %vm216_vm1, %v183_v21  ;;  %1415 = vmatmul.mubr.msk.f32.gmra.mrb[18].mxu1 %vm216_vm1, %v199_v22 }
  0x40   : > { %442 = vmatprep.mubr.f32.mxu0 %v1620_v0  ;;  %538 = vmatprep.mubr.f32.mxu1 %v1620_v0 }
  0x43   : > { %1400 = vmatmul.mubr.msk.f32.gmra.mrb[20].mxu0 %vm216_vm1, %v184_v23  ;;  %1416 = vmatmul.mubr.msk.f32.gmra.mrb[20].mxu1 %vm216_vm1, %v200_v24 }
  0x44   : > { %448 = vmatprep.mubr.f32.mxu0 %v1620_v0  ;;  %544 = vmatprep.mubr.f32.mxu1 %v1620_v0 }
  0x47   : > { %1401 = vmatmul.mubr.msk.f32.gmra.mrb[22].mxu0 %vm216_vm1, %v185_v25  ;;  %1417 = vmatmul.mubr.msk.f32.gmra.mrb[22].mxu1 %vm216_vm1, %v201_v26 }
  0x48   : > { %454 = vmatprep.mubr.f32.mxu0 %v1620_v0  ;;  %550 = vmatprep.mubr.f32.mxu1 %v1620_v0 }
  0x4b   : > { %1402 = vmatmul.mubr.msk.f32.gmra.mrb[24].mxu0 %vm216_vm1, %v186_v27  ;;  %1418 = vmatmul.mubr.msk.f32.gmra.mrb[24].mxu1 %vm216_vm1, %v202_v28 }
  0x4c   : > { %460 = vmatprep.mubr.f32.mxu0 %v1620_v0  ;;  %556 = vmatprep.mubr.f32.mxu1 %v1620_v0 }
  0x4f   : > { %1403 = vmatmul.mubr.msk.f32.gmra.mrb[26].mxu0 %vm216_vm1, %v187_v29  ;;  %1419 = vmatmul.mubr.msk.f32.gmra.mrb[26].mxu1 %vm216_vm1, %v203_v30 }
  0x50   : > { %466 = vmatprep.mubr.f32.mxu0 %v1620_v0  ;;  %562 = vmatprep.mubr.f32.mxu1 %v1620_v0 }
  0x53   : > { %1404 = vmatmul.mubr.msk.f32.gmra.mrb[28].mxu0 %vm216_vm1, %v188_v31  ;;  %1420 = vmatmul.mubr.msk.f32.gmra.mrb[28].mxu1 %vm216_vm1, %v204_v32 }
  0x54   : > { %472 = vmatprep.mubr.f32.mxu0 %v1620_v0  ;;  %568 = vmatprep.mubr.f32.mxu1 %v1620_v0 }
  0x57   : > { %1405 = vmatmul.mubr.msk.f32.gmra.mrb[30].mxu0 %vm216_vm1, %v189_v33  ;;  %1421 = vmatmul.mubr.msk.f32.gmra.mrb[30].mxu1 %vm216_vm1, %v205_v34 }
  0xee   : > { %v1779_v35 = vpop.f32.mrb[0].mxu0  ;;  %v1783_v39 = vpop.f32.mrb[0].mxu1 }
  0xef   : > { %v576_v36 = vmul.f32 %v1779_v35, %v1779_v35  ;;  %v386_v37 = vpop.f32.mrb[1].mxu0  ;;  %v1785_v40 = vpop.f32.mrb[1].mxu1 }
  0xf0   : > { %v577_v38 = vmul.f32 %v386_v37, %v386_v37 }
  0xf2   : > { %v640_v41 = vadd.f32 %v577_v38, %v576_v36  ;;  %v1787_v42 = vpop.f32.mrb[2].mxu0  ;;  %v1791_v46 = vpop.f32.mrb[2].mxu1 }
  0xf3   : > { %v578_v43 = vmul.f32 %v1787_v42, %v1787_v42  ;;  %v392_v44 = vpop.f32.mrb[3].mxu0  ;;  %v1793_v48 = vpop.f32.mrb[3].mxu1 }
  0xf4   : > { %v579_v45 = vmul.f32 %v392_v44, %v392_v44 }
  0xf5   : > { %v641_v47 = vadd.f32 %v640_v41, %v578_v43 }
  0xf6   : > { %v1795_v49 = vpop.f32.mrb[4].mxu0  ;;  %v1799_v54 = vpop.f32.mrb[4].mxu1 }
  0xf7   : > { %v642_v50 = vadd.f32 %v641_v47, %v579_v45  ;;  %v580_v51 = vmul.f32 %v1795_v49, %v1795_v49  ;;  %v398_v52 = vpop.f32.mrb[5].mxu0  ;;  %v1801_v56 = vpop.f32.mrb[5].mxu1 }
  0xf8   : > { %v581_v53 = vmul.f32 %v398_v52, %v398_v52 }
  0xf9   : > { %v643_v55 = vadd.f32 %v642_v50, %v580_v51 }
  0xfa   : > { %v1803_v57 = vpop.f32.mrb[6].mxu0  ;;  %v1807_v62 = vpop.f32.mrb[6].mxu1 }
  0xfb   : > { %v644_v58 = vadd.f32 %v643_v55, %v581_v53  ;;  %v582_v59 = vmul.f32 %v1803_v57, %v1803_v57  ;;  %v404_v60 = vpop.f32.mrb[7].mxu0  ;;  %v1809_v0 = vpop.f32.mrb[7].mxu1 }
  0xfc   : > { %v583_v61 = vmul.f32 %v404_v60, %v404_v60 }
  0xfd   : > { %v645_v63 = vadd.f32 %v644_v58, %v582_v59 }
  0xfe   : > { %v1811_v1 = vpop.f32.mrb[8].mxu0  ;;  %v1815_v6 = vpop.f32.mrb[8].mxu1 }
  0xff   : > { %v646_v2 = vadd.f32 %v645_v63, %v583_v61  ;;  %v584_v3 = vmul.f32 %v1811_v1, %v1811_v1  ;;  %v410_v4 = vpop.f32.mrb[9].mxu0  ;;  %v1817_v8 = vpop.f32.mrb[9].mxu1 }
 0x100   : > { %v585_v5 = vmul.f32 %v410_v4, %v410_v4 }
 0x101   : > { %v647_v7 = vadd.f32 %v646_v2, %v584_v3 }
 0x102   : > { %v1819_v9 = vpop.f32.mrb[10].mxu0  ;;  %v1823_v14 = vpop.f32.mrb[10].mxu1 }
 0x103   : > { %v648_v10 = vadd.f32 %v647_v7, %v585_v5  ;;  %v586_v11 = vmul.f32 %v1819_v9, %v1819_v9  ;;  %v416_v12 = vpop.f32.mrb[11].mxu0  ;;  %v1825_v16 = vpop.f32.mrb[11].mxu1 }
 0x104   : > { %v587_v13 = vmul.f32 %v416_v12, %v416_v12 }
 0x105   : > { %v649_v15 = vadd.f32 %v648_v10, %v586_v11 }
 0x106   : > { %v1827_v17 = vpop.f32.mrb[12].mxu0  ;;  %v1831_v22 = vpop.f32.mrb[12].mxu1 }
 0x107   : > { %v650_v18 = vadd.f32 %v649_v15, %v587_v13  ;;  %v588_v19 = vmul.f32 %v1827_v17, %v1827_v17  ;;  %v422_v20 = vpop.f32.mrb[13].mxu0  ;;  %v1833_v24 = vpop.f32.mrb[13].mxu1 }
 0x108   : > { %v589_v21 = vmul.f32 %v422_v20, %v422_v20 }
 0x109   : > { %v651_v23 = vadd.f32 %v650_v18, %v588_v19 }
 0x10a   : > { %v1835_v25 = vpop.f32.mrb[14].mxu0  ;;  %v1839_v30 = vpop.f32.mrb[14].mxu1 }
 0x10b   : > { %v652_v26 = vadd.f32 %v651_v23, %v589_v21  ;;  %v590_v27 = vmul.f32 %v1835_v25, %v1835_v25  ;;  %v428_v28 = vpop.f32.mrb[15].mxu0  ;;  %v1841_v32 = vpop.f32.mrb[15].mxu1 }
 0x10c   : > { %v591_v29 = vmul.f32 %v428_v28, %v428_v28  ;;  %2462 = vst [vmem:[#allocation6_spill] sm:$0xff] %v1841_v32 }
 0x10d   : > { %v653_v31 = vadd.f32 %v652_v26, %v590_v27 }
 0x10e   : > { %v1843_v33 = vpop.f32.mrb[16].mxu0  ;;  %v1847_v41 = vpop.f32.mrb[16].mxu1 }
 0x10f   : > { %v654_v34 = vadd.f32 %v653_v31, %v591_v29  ;;  %v592_v36 = vmul.f32 %v1843_v33, %v1843_v33  ;;  %v434_v37 = vpop.f32.mrb[17].mxu0  ;;  %v1849_v44 = vpop.f32.mrb[17].mxu1 }
 0x110   : > { %v593_v38 = vmul.f32 %v434_v37, %v434_v37  ;;  %2463 = vst [vmem:[#allocation7_spill] sm:$0xff] %v1849_v44 }
 0x111   : > { %v655_v43 = vadd.f32 %v654_v34, %v592_v36 }
 0x112   : > { %v1851_v45 = vpop.f32.mrb[18].mxu0  ;;  %v1855_v53 = vpop.f32.mrb[18].mxu1 }
 0x113   : > { %v656_v47 = vadd.f32 %v655_v43, %v593_v38  ;;  %v594_v50 = vmul.f32 %v1851_v45, %v1851_v45  ;;  %v440_v51 = vpop.f32.mrb[19].mxu0  ;;  %v1857_v58 = vpop.f32.mrb[19].mxu1 }
 0x114   : > { %v595_v52 = vmul.f32 %v440_v51, %v440_v51  ;;  %2464 = vst [vmem:[#allocation8_spill] sm:$0xff] %v1857_v58 }
 0x115   : > { %v657_v55 = vadd.f32 %v656_v47, %v594_v50 }
 0x116   : > { %v1859_v59 = vpop.f32.mrb[20].mxu0  ;;  %v1863_v3 = vpop.f32.mrb[20].mxu1 }
 0x117   : > { %v658_v60 = vadd.f32 %v657_v55, %v595_v52  ;;  %v596_v61 = vmul.f32 %v1859_v59, %v1859_v59  ;;  %v446_v63 = vpop.f32.mrb[21].mxu0  ;;  %v1865_v5 = vpop.f32.mrb[21].mxu1 }
 0x118   : > { %v597_v2 = vmul.f32 %v446_v63, %v446_v63  ;;  %2465 = vst [vmem:[#allocation9_spill] sm:$0xff] %v1865_v5 }
 0x119   : > { %v659_v4 = vadd.f32 %v658_v60, %v596_v61 }
 0x11a   : > { %v1867_v7 = vpop.f32.mrb[22].mxu0  ;;  %v1871_v15 = vpop.f32.mrb[22].mxu1 }
 0x11b   : > { %v660_v10 = vadd.f32 %v659_v4, %v597_v2  ;;  %v598_v11 = vmul.f32 %v1867_v7, %v1867_v7  ;;  %v452_v12 = vpop.f32.mrb[23].mxu0  ;;  %v1873_v19 = vpop.f32.mrb[23].mxu1 }
 0x11c   : > { %v599_v13 = vmul.f32 %v452_v12, %v452_v12  ;;  %2466 = vst [vmem:[#allocation10_spill] sm:$0xff] %v1873_v19 }
 0x11d   : > { %v661_v18 = vadd.f32 %v660_v10, %v598_v11 }
 0x11e   : > { %v1875_v20 = vpop.f32.mrb[24].mxu0  ;;  %v1879_v28 = vpop.f32.mrb[24].mxu1 }
 0x11f   : > { %v662_v21 = vadd.f32 %v661_v18, %v599_v13  ;;  %v600_v23 = vmul.f32 %v1875_v20, %v1875_v20  ;;  %v458_v26 = vpop.f32.mrb[25].mxu0  ;;  %v1881_v31 = vpop.f32.mrb[25].mxu1 }
 0x120   : > { %v601_v27 = vmul.f32 %v458_v26, %v458_v26  ;;  %2467 = vst [vmem:[#allocation11_spill] sm:$0xff] %v1881_v31 }
 0x121   : > { %v663_v29 = vadd.f32 %v662_v21, %v600_v23 }
 0x122   : > { %v1883_v34 = vpop.f32.mrb[26].mxu0  ;;  %v1887_v47 = vpop.f32.mrb[26].mxu1 }
 0x123   : > { %v664_v36 = vadd.f32 %v663_v29, %v601_v27  ;;  %v602_v37 = vmul.f32 %v1883_v34, %v1883_v34  ;;  %v464_v38 = vpop.f32.mrb[27].mxu0  ;;  %v1889_v51 = vpop.f32.mrb[27].mxu1  ;;  %v608_v27 = vmul.f32 %v1783_v39, %v1783_v39 }
 0x124   : > { %v603_v43 = vmul.f32 %v464_v38, %v464_v38  ;;  %2468 = vst [vmem:[#allocation12_spill] sm:$0xff] %v1889_v51  ;;  %v609_v38 = vmul.f32 %v1785_v40, %v1785_v40 }
 0x125   : > { %v665_v50 = vadd.f32 %v664_v36, %v602_v37 }
 0x126   : > { %v1891_v52 = vpop.f32.mrb[28].mxu0  ;;  %v1895_v2 = vpop.f32.mrb[28].mxu1 }
 0x127   : > { %v666_v55 = vadd.f32 %v665_v50, %v603_v43  ;;  %v604_v60 = vmul.f32 %v1891_v52, %v1891_v52  ;;  %v470_v61 = vpop.f32.mrb[29].mxu0  ;;  %v1897_v10 = vpop.f32.mrb[29].mxu1  ;;  %v610_v43 = vmul.f32 %v1791_v46, %v1791_v46  ;;  %v615_v46 = vmul.f32 %v1809_v0, %v1809_v0 }
 0x128   : > { %v605_v63 = vmul.f32 %v470_v61, %v470_v61  ;;  %2469 = vst [vmem:[#allocation13_spill] sm:$0xff] %v1897_v10  ;;  %v612_v61 = vmul.f32 %v1799_v54, %v1799_v54  ;;  %v617_v54 = vmul.f32 %v1817_v8, %v1817_v8 }
 0x129   : > { %v667_v4 = vadd.f32 %v666_v55, %v604_v60  ;;  %v611_v60 = vmul.f32 %v1793_v48, %v1793_v48 }
 0x12a   : > { %v1899_v11 = vpop.f32.mrb[30].mxu0  ;;  %v1903_v23 = vpop.f32.mrb[30].mxu1 }
 0x12b   : > { %v668_v12 = vadd.f32 %v667_v4, %v605_v63  ;;  %v606_v13 = vmul.f32 %v1899_v11, %v1899_v11  ;;  %v476_v18 = vpop.f32.mrb[31].mxu0  ;;  %v1907_v29 = vpop.f32.mrb[31].mxu1  ;;  %v613_v4 = vmul.f32 %v1801_v56, %v1801_v56 }
 0x12c   : > { %v607_v21 = vmul.f32 %v476_v18, %v476_v18  ;;  %2470 = vst [vmem:[#allocation14_spill] sm:$0xff] %v1907_v29 }
 0x12d   : > { %v669_v26 = vadd.f32 %v668_v12, %v606_v13  ;;  %v614_v12 = vmul.f32 %v1807_v62, %v1807_v62  ;;  %v619_v62 = vmul.f32 %v1825_v16, %v1825_v16 }
 0x12f   : > { %v670_v36 = vadd.f32 %v669_v26, %v607_v21  ;;  %v616_v21 = vmul.f32 %v1815_v6, %v1815_v6  ;;  %v621_v6 = vmul.f32 %v1833_v24, %v1833_v24 }
 0x131   : > { %v671_v37 = vadd.f32 %v670_v36, %v608_v27  ;;  %v618_v36 = vmul.f32 %v1823_v14, %v1823_v14  ;;  %v623_v14 = vmul.f32 %v1841_v32, %v1841_v32 }
 0x133   : > { %v672_v50 = vadd.f32 %v671_v37, %v609_v38 }
 0x135   : > { %v673_v55 = vadd.f32 %v672_v50, %v610_v43  ;;  %v620_v43 = vmul.f32 %v1831_v22, %v1831_v22  ;;  %v625_v22 = vmul.f32 %v1849_v44, %v1849_v44 }
 0x137   : > { %v674_v63 = vadd.f32 %v673_v55, %v611_v60  ;;  %v622_v60 = vmul.f32 %v1839_v30, %v1839_v30  ;;  %v627_v30 = vmul.f32 %v1857_v58, %v1857_v58 }
 0x139   : > { %v675_v39 = vadd.f32 %v674_v63, %v612_v61 }
 0x13b   : > { %v676_v13 = vadd.f32 %v675_v39, %v613_v4  ;;  %v624_v39 = vmul.f32 %v1847_v41, %v1847_v41  ;;  %v629_v41 = vmul.f32 %v1865_v5, %v1865_v5 }
 0x13d   : > { %v677_v18 = vadd.f32 %v676_v13, %v614_v12  ;;  %v626_v13 = vmul.f32 %v1855_v53, %v1855_v53  ;;  %v631_v53 = vmul.f32 %v1873_v19, %v1873_v19 }
 0x13f   : > { %v678_v26 = vadd.f32 %v677_v18, %v615_v46 }
 0x141   : > { %v679_v27 = vadd.f32 %v678_v26, %v616_v21  ;;  %v628_v21 = vmul.f32 %v1863_v3, %v1863_v3  ;;  %v633_v3 = vmul.f32 %v1881_v31, %v1881_v31 }
 0x143   : > { %v680_v37 = vadd.f32 %v679_v27, %v617_v54  ;;  %v630_v54 = vmul.f32 %v1871_v15, %v1871_v15  ;;  %v635_v15 = vmul.f32 %v1889_v51, %v1889_v51 }
 0x145   : > { %v681_v38 = vadd.f32 %v680_v37, %v618_v36 }
 0x147   : > { %v682_v50 = vadd.f32 %v681_v38, %v619_v62  ;;  %v632_v38 = vmul.f32 %v1879_v28, %v1879_v28  ;;  %v637_v28 = vmul.f32 %v1897_v10, %v1897_v10 }
 0x149   : > { %v683_v55 = vadd.f32 %v682_v50, %v620_v43  ;;  %v634_v50 = vmul.f32 %v1887_v47, %v1887_v47  ;;  %v639_v47 = vmul.f32 %v1907_v29, %v1907_v29 }
 0x14b   : > { %v684_v61 = vadd.f32 %v683_v55, %v621_v6 }
 0x14d   : > { %v685_v63 = vadd.f32 %v684_v61, %v622_v60  ;;  %v636_v60 = vmul.f32 %v1895_v2, %v1895_v2 }
 0x14f   : > { %v686_v4 = vadd.f32 %v685_v63, %v623_v14  ;;  %v638_v14 = vmul.f32 %v1903_v23, %v1903_v23 }
 0x151   : > { %v687_v12 = vadd.f32 %v686_v4, %v624_v39 }
 0x153   : > { %v688_v18 = vadd.f32 %v687_v12, %v625_v22 }
 0x155   : > { %v689_v46 = vadd.f32 %v688_v18, %v626_v13 }
 0x157   : > { %v690_v26 = vadd.f32 %v689_v46, %v627_v30 }
 0x159   : > { %v691_v27 = vadd.f32 %v690_v26, %v628_v21 }
 0x15b   : > { %v692_v36 = vadd.f32 %v691_v27, %v629_v41 }
 0x15d   : > { %v693_v37 = vadd.f32 %v692_v36, %v630_v54 }
 0x15f   : > { %v694_v62 = vadd.f32 %v693_v37, %v631_v53 }
 0x161   : > { %v695_v43 = vadd.f32 %v694_v62, %v632_v38 }
 0x163   : > { %v696_v55 = vadd.f32 %v695_v43, %v633_v3 }
 0x165   : > { %v697_v6 = vadd.f32 %v696_v55, %v634_v50 }
 0x167   : > { %v698_v61 = vadd.f32 %v697_v6, %v635_v15 }
 0x169   : > { %v699_v63 = vadd.f32 %v698_v61, %v636_v60 }
 0x16b   : > { %v700_v39 = vadd.f32 %v699_v63, %v637_v28 }
 0x16d   : > { %v701_v4 = vadd.f32 %v700_v39, %v638_v14 }
 0x16f   : > { %v702_v12 = vadd.f32 %v701_v4, %v639_v47 }
 0x171   : > { %703 = vadd.xlane.f32.xlu0 %v702_v12 }
 0x1fe   : > { %v704_v2 = vpop.xlane.xlu0 %703 }
 0x1ff   : > { %v705_v22 = vrot.slane %v704_v2, 4 }
 0x201   : > { %v706_v13 = vadd.f32 %v705_v22, %v704_v2 }
 0x203   : > { %v707_v18 = vrot.slane %v706_v13, 2 }
 0x205   : > { %v708_v46 = vadd.f32 %v707_v18, %v706_v13 }
 0x207   : > { %v709_v30 = vrot.slane %v708_v46, 1 }
 0x209   : > { %v710_v21 = vadd.f32 %v709_v30, %v708_v46 }
 0x20b   : > { %1499 = vpush %v710_v21 }
 0x239   : > { %718 = sbr.rel (%p1423_p8) target bundleno = 868 (0x364), region = 36 }
 0x23c   : > { %s1500_s29 = spop %1499 }
 0x23d   : > { %s712_s30 = sadd.f32 %s1500_s29, %s1422_s28 }
 0x23f   : > { %714 = sst [smem:[#allocation2 + $0x1]] %s712_s30 }
 0x240   : > { %v719_v23 = vlaneseq  ;;  %v1424_v27 = vadd.f32 -1.0, %v1779_v35  ;;  %v1426_v41 = vadd.f32 -1.0, %v1787_v42  ;;  %v1428_v37 = vadd.f32 -1.0, %v1795_v49  ;;  %s883_s3 = sld [smem:[#allocation2]]  ;;  %s1488_s6 = sld [smem:[#allocation2 + $0x1]] }
 0x241   : > { %v1430_v53 = vadd.f32 -1.0, %v1803_v57  ;;  %v1432_v38 = vadd.f32 -1.0, %v1811_v1  ;;  %v1434_v62 = vadd.f32 -1.0, %v1819_v9  ;;  %v1436_v43 = vadd.f32 -1.0, %v1827_v17 }
 0x242   : > { %v1974_v26 = vshrl.u32 %v719_v23, 7  ;;  %v1981_v36 = vand.u32 127, %v719_v23  ;;  %v1438_v3 = vadd.f32 -1.0, %v1835_v25  ;;  %v1440_v55 = vadd.f32 -1.0, %v1843_v33 }
 0x243   : > { %v1992_v6 = vadd.f32 -1.0, %v1851_v45  ;;  %v1995_v15 = vadd.f32 -1.0, %v1859_v59  ;;  %v1998_v60 = vadd.f32 -1.0, %v1867_v7  ;;  %v2001_v61 = vadd.f32 -1.0, %v1875_v20 }
 0x244   : > { %v1979_v54 = vadd.s32 8, %v1974_v26  ;;  %v722_v50 = vadd.s32 16, %v1974_v26  ;;  %v948_v63 = vmul.f32 %v1424_v27, %v1424_v27  ;;  %v950_v28 = vmul.f32 %v1426_v41, %v1426_v41 }
 0x245   : > { %v723_v14 = vadd.s32 24, %v1974_v26  ;;  %v2005_v39 = vadd.s32 32, %v1974_v26  ;;  %vm755_vm2 = vcmp.eq.s32.totalorder %v1974_v26, %v1981_v36  ;;  %v2012_v47 = vadd.s32 40, %v1974_v26 }
 0x246   : > { %vm757_vm3 = vcmp.eq.s32.totalorder %v1979_v54, %v1981_v36  ;;  %v2015_v4 = vadd.s32 48, %v1974_v26  ;;  %v2018_v12 = vadd.s32 56, %v1974_v26  ;;  %v952_v2 = vmul.f32 %v1428_v37, %v1428_v37 }
 0x247   : > { %v2021_v22 = vadd.s32 64, %v1974_v26  ;;  %v2024_v13 = vadd.s32 72, %v1974_v26  ;;  %v2027_v18 = vadd.s32 80, %v1974_v26  ;;  %vm759_vm4 = vcmp.eq.s32.totalorder %v722_v50, %v1981_v36 }
 0x248   : > { %v2031_v46 = vadd.s32 88, %v1974_v26  ;;  %v954_v30 = vmul.f32 %v1430_v53, %v1430_v53  ;;  %v1012_v21 = vsel %vm755_vm2, %v948_v63, 0.0  ;;  %v1014_v23 = vsel %vm757_vm3, %v950_v28, 0.0 }
 0x249   : > { %v2040_v27 = vadd.s32 96, %v1974_v26  ;;  %v2043_v41 = vadd.s32 104, %v1974_v26  ;;  %v2046_v37 = vadd.s32 112, %v1974_v26  ;;  %vm761_vm5 = vcmp.eq.s32.totalorder %v723_v14, %v1981_v36 }
 0x24a   : > { %v2050_v53 = vadd.s32 120, %v1974_v26  ;;  %v2053_v63 = vadd.s32 128, %v1974_v26  ;;  %v956_v29 = vmul.f32 %v1432_v38, %v1432_v38  ;;  %v1016_v28 = vsel %vm759_vm4, %v952_v2, 0.0 }
 0x24b   : > { %v2058_v10 = vadd.s32 136, %v1974_v26  ;;  %v2061_v51 = vadd.s32 144, %v1974_v26  ;;  %vm763_vm6 = vcmp.eq.s32.totalorder %v2005_v39, %v1981_v36  ;;  %v1077_v31 = vadd.f32 %v1014_v23, %v1012_v21 }
 0x24c   : > { %v2066_v19 = vadd.s32 152, %v1974_v26  ;;  %v2069_v5 = vadd.s32 160, %v1974_v26  ;;  %v958_v38 = vmul.f32 %v1434_v62, %v1434_v62  ;;  %v1018_v2 = vsel %vm761_vm5, %v954_v30, 0.0 }
 0x24d   : > { %v2074_v58 = vadd.s32 168, %v1974_v26  ;;  %v2077_v44 = vadd.s32 176, %v1974_v26  ;;  %vm765_vm7 = vcmp.eq.s32.totalorder %v2012_v47, %v1981_v36  ;;  %v1079_v21 = vadd.f32 %v1077_v31, %v1016_v28 }
 0x24e   : > { %v2082_v23 = vadd.s32 184, %v1974_v26  ;;  %v2085_v32 = vadd.s32 192, %v1974_v26  ;;  %v960_v62 = vmul.f32 %v1436_v43, %v1436_v43  ;;  %v1020_v30 = vsel %vm763_vm6, %v956_v29, 0.0 }
 0x24f   : > { %2471 = vst [vmem:[#allocation15_spill] sm:$0xff] %v2074_v58  ;;  %2472 = vst [vmem:[#allocation16_spill] sm:$0xff] %v2077_v44  ;;  %v2091_v58 = vadd.s32 200, %v1974_v26  ;;  %v2094_v44 = vadd.s32 208, %v1974_v26  ;;  %vm767_vm8 = vcmp.eq.s32.totalorder %v2015_v4, %v1981_v36  ;;  %v1081_v31 = vadd.f32 %v1079_v21, %v1018_v2 }
 0x250   : > { %2473 = vst [vmem:[#allocation17_spill] sm:$0xff] %v2085_v32  ;;  %v2099_v28 = vadd.s32 216, %v1974_v26  ;;  %v819_v43 = vsel %vm755_vm2, %v1779_v35, 0.0  ;;  %v962_v32 = vmul.f32 %v1438_v3, %v1438_v3  ;;  %v1022_v29 = vsel %vm765_vm7, %v958_v38, 0.0 }
 0x251   : > { %2474 = vst [vmem:[#allocation18_spill] sm:$0xff] %v2091_v58  ;;  %2475 = vst [vmem:[#allocation19_spill] sm:$0xff] %v2094_v44  ;;  %v2109_v58 = vadd.s32 224, %v1974_v26  ;;  %v2112_v44 = vadd.s32 232, %v1974_v26  ;;  %vm769_vm9 = vcmp.eq.s32.totalorder %v2018_v12, %v1981_v36  ;;  %v1083_v2 = vadd.f32 %v1081_v31, %v1020_v30 }
 0x252   : > { %v2117_v21 = vadd.s32 240, %v1974_v26  ;;  %v823_v35 = vsel %vm759_vm4, %v1795_v49, 0.0  ;;  %v964_v3 = vmul.f32 %v1440_v55, %v1440_v55  ;;  %v1024_v38 = vsel %vm767_vm8, %v960_v62, 0.0 }
 0x253   : > { %2476 = vst [vmem:[#allocation20_spill] sm:$0xff] %v2109_v58  ;;  %2477 = vst [vmem:[#allocation21_spill] sm:$0xff] %v2112_v44  ;;  %v2126_v58 = vadd.s32 248, %v1974_v26  ;;  %vm771_vm10 = vcmp.eq.s32.totalorder %v2021_v22, %v1981_v36  ;;  %v1085_v44 = vadd.f32 %v1083_v2, %v1022_v29  ;;  %v1152_v30 = vmul.f32 %v819_v43, %v819_v43 }
 0x254   : > { %v825_v31 = vsel %vm761_vm5, %v1803_v57, 0.0  ;;  %v966_v49 = vmul.f32 %v1992_v6, %v1992_v6  ;;  %v1026_v50 = vsel %vm769_vm9, %v962_v32, 0.0  ;;  %v821_v26 = vsel %vm757_vm3, %v1787_v42, 0.0 }
 0x255   : > { %vm773_vm11 = vcmp.eq.s32.totalorder %v2024_v13, %v1981_v36  ;;  %v1087_v55 = vadd.f32 %v1085_v44, %v1024_v38  ;;  %v1156_v62 = vmul.f32 %v823_v35, %v823_v35  ;;  %v1154_v43 = vmul.f32 %v821_v26, %v821_v26 }
 0x256   : > { %v2145_v57 = vadd.s32 128, %v1981_v36  ;;  %v827_v6 = vsel %vm763_vm6, %v1811_v1, 0.0  ;;  %v968_v32 = vmul.f32 %v1995_v15, %v1995_v15  ;;  %v1028_v42 = vsel %vm771_vm10, %v964_v3, 0.0 }
 0x257   : > { %vm775_vm12 = vcmp.eq.s32.totalorder %v2027_v18, %v1981_v36  ;;  %v1089_v44 = vadd.f32 %v1087_v55, %v1026_v50  ;;  %v1158_v54 = vmul.f32 %v825_v31, %v825_v31  ;;  %v1217_v14 = vadd.f32 %v1154_v43, %v1152_v30 }
 0x258   : > { %v829_v29 = vsel %vm765_vm7, %v1819_v9, 0.0  ;;  %v1450_v1 = vadd.f32 -1.0, %v1883_v34  ;;  %v970_v15 = vmul.f32 %v1998_v60, %v1998_v60  ;;  %v1030_v39 = vsel %vm773_vm11, %v966_v49, 0.0 }
 0x259   : > { %vm777_vm13 = vcmp.eq.s32.totalorder %v2031_v46, %v1981_v36  ;;  %v1091_v2 = vadd.f32 %v1089_v44, %v1028_v42  ;;  %v1160_v35 = vmul.f32 %v827_v6, %v827_v6  ;;  %v1219_v3 = vadd.f32 %v1217_v14, %v1156_v62 }
 0x25a   : > { %v831_v9 = vsel %vm767_vm8, %v1827_v17, 0.0  ;;  %v1452_v47 = vadd.f32 -1.0, %v1891_v52  ;;  %v972_v60 = vmul.f32 %v2001_v61, %v2001_v61  ;;  %v1032_v38 = vsel %vm775_vm12, %v968_v32, 0.0 }
 0x25b   : > { %vm779_vm14 = vcmp.eq.s32.totalorder %v2040_v27, %v1981_v36  ;;  %v1093_v30 = vadd.f32 %v1091_v2, %v1030_v39  ;;  %v1162_v31 = vmul.f32 %v829_v29, %v829_v29  ;;  %v1221_v49 = vadd.f32 %v1219_v3, %v1158_v54 }
 0x25c   : > { %v833_v17 = vsel %vm769_vm9, %v1835_v25, 0.0  ;;  %v1454_v4 = vadd.f32 -1.0, %v1899_v11  ;;  %v974_v50 = vmul.f32 %v1450_v1, %v1450_v1  ;;  %v1034_v61 = vsel %vm777_vm13, %v970_v15, 0.0 }
 0x25d   : > { %vm781_vm15 = vcmp.eq.s32.totalorder %v2043_v41, %v1981_v36  ;;  %v1095_v26 = vadd.f32 %v1093_v30, %v1032_v38  ;;  %v1164_v55 = vmul.f32 %v831_v9, %v831_v9  ;;  %v1223_v62 = vadd.f32 %v1221_v49, %v1160_v35 }
 0x25e   : > { %v835_v43 = vsel %vm771_vm10, %v1843_v33, 0.0  ;;  %v1457_v25 = vadd.f32 -1.0, %v1785_v40  ;;  %v976_v12 = vmul.f32 %v1452_v47, %v1452_v47  ;;  %v1036_v6 = vsel %vm779_vm14, %v972_v60, 0.0 }
 0x25f   : > { %vm783_vm0 = vcmp.eq.s32.totalorder %v2046_v37, %v1981_v36  ;;  %v1097_v32 = vadd.f32 %v1095_v26, %v1034_v61  ;;  %v1166_v42 = vmul.f32 %v833_v17, %v833_v17  ;;  %v1225_v44 = vadd.f32 %v1223_v62, %v1162_v31  ;;  %v2478_v37 = vld [vmem:[#allocation6_spill] sm:$0xff] }
 0x260   : > { %v837_v54 = vsel %vm773_vm11, %v1851_v45, 0.0  ;;  %v1459_v33 = vadd.f32 -1.0, %v1793_v48  ;;  %v978_v22 = vmul.f32 %v1454_v4, %v1454_v4  ;;  %v1038_v14 = vsel %vm781_vm15, %v974_v50, 0.0 }
 0x261   : > { %vm785_vm1 = vcmp.eq.s32.totalorder %v2050_v53, %v1981_v36  ;;  %v1099_v29 = vadd.f32 %v1097_v32, %v1036_v6  ;;  %v1168_v1 = vmul.f32 %v835_v43, %v835_v43  ;;  %v1227_v15 = vadd.f32 %v1225_v44, %v1164_v55  ;;  %v2480_v36 = vld [vmem:[#allocation7_spill] sm:$0xff] }
 0x262   : > { %v839_v39 = vsel %vm775_vm12, %v1859_v59, 0.0  ;;  %v1461_v45 = vadd.f32 -1.0, %v1801_v56  ;;  %v981_v13 = vmul.f32 %v1457_v25, %v1457_v25  ;;  %v1040_v2 = vsel %vm783_vm0, %v976_v12, 0.0 }
 0x263   : > { %vm788_vm2 = vcmp.eq.s32.totalorder %v2053_v63, %v2145_v57  ;;  %v1101_v35 = vadd.f32 %v1099_v29, %v1038_v14  ;;  %v1170_v3 = vmul.f32 %v837_v54, %v837_v54  ;;  %v1229_v9 = vadd.f32 %v1227_v15, %v1166_v42  ;;  %v2479_v14 = vld [vmem:[#allocation15_spill] sm:$0xff]  ;;  %v2482_v63 = vld [vmem:[#allocation8_spill] sm:$0xff] }
 0x264   : > { %v841_v47 = vsel %vm777_vm13, %v1867_v7, 0.0  ;;  %v1463_v59 = vadd.f32 -1.0, %v1809_v0  ;;  %v983_v18 = vmul.f32 %v1459_v33, %v1459_v33  ;;  %v1042_v60 = vsel %vm785_vm1, %v978_v22, 0.0 }
 0x265   : > { %vm790_vm3 = vcmp.eq.s32.totalorder %v2058_v10, %v2145_v57  ;;  %v1103_v38 = vadd.f32 %v1101_v35, %v1040_v2  ;;  %v1172_v30 = vmul.f32 %v839_v39, %v839_v39  ;;  %v1231_v31 = vadd.f32 %v1229_v9, %v1168_v1  ;;  %v2483_v10 = vld [vmem:[#allocation9_spill] sm:$0xff] }
 0x266   : > { %v843_v49 = vsel %vm779_vm14, %v1875_v20, 0.0  ;;  %v1465_v7 = vadd.f32 -1.0, %v1817_v8  ;;  %v985_v46 = vmul.f32 %v1461_v45, %v1461_v45  ;;  %v1045_v17 = vsel %vm788_vm2, %v981_v13, 0.0  ;;  %v2481_v13 = vld [vmem:[#allocation16_spill] sm:$0xff] }
 0x267   : > { %vm792_vm4 = vcmp.eq.s32.totalorder %v2061_v51, %v2145_v57  ;;  %v1105_v4 = vadd.f32 %v1103_v38, %v1042_v60  ;;  %v1174_v50 = vmul.f32 %v841_v47, %v841_v47  ;;  %v1233_v61 = vadd.f32 %v1231_v31, %v1170_v3  ;;  %v2485_v51 = vld [vmem:[#allocation10_spill] sm:$0xff] }
 0x268   : > { %v845_v26 = vsel %vm781_vm15, %v1883_v34, 0.0  ;;  %v1467_v20 = vadd.f32 -1.0, %v1825_v16  ;;  %v987_v27 = vmul.f32 %v1463_v59, %v1463_v59  ;;  %v1047_v55 = vsel %vm790_vm3, %v983_v18, 0.0 }
 0x269   : > { %vm794_vm5 = vcmp.eq.s32.totalorder %v2066_v19, %v2145_v57  ;;  %v1108_v62 = vadd.f32 %v1105_v4, %v1045_v17  ;;  %v1176_v43 = vmul.f32 %v843_v49, %v843_v49  ;;  %v1235_v25 = vadd.f32 %v1233_v61, %v1172_v30  ;;  %v2487_v19 = vld [vmem:[#allocation11_spill] sm:$0xff] }
 0x26a   : > { %v847_v12 = vsel %vm783_vm0, %v1891_v52, 0.0  ;;  %v1469_v34 = vadd.f32 -1.0, %v1833_v24  ;;  %v989_v41 = vmul.f32 %v1465_v7, %v1465_v7  ;;  %v1049_v6 = vsel %vm792_vm4, %v985_v46, 0.0  ;;  %v2484_v7 = vld [vmem:[#allocation17_spill] sm:$0xff] }
 0x26b   : > { %vm796_vm6 = vcmp.eq.s32.totalorder %v2069_v5, %v2145_v57  ;;  %v1110_v32 = vadd.f32 %v1108_v62, %v1047_v55  ;;  %v1178_v42 = vmul.f32 %v845_v26, %v845_v26  ;;  %v1237_v44 = vadd.f32 %v1235_v25, %v1174_v50  ;;  %v2489_v5 = vld [vmem:[#allocation12_spill] sm:$0xff] }
 0x26c   : > { %v849_v54 = vsel %vm785_vm1, %v1899_v11, 0.0  ;;  %v1471_v52 = vadd.f32 -1.0, %v2478_v37  ;;  %v991_v33 = vmul.f32 %v1467_v20, %v1467_v20  ;;  %v1051_v22 = vsel %vm794_vm5, %v987_v27, 0.0  ;;  %v2486_v20 = vld [vmem:[#allocation18_spill] sm:$0xff] }
 0x26d   : > { %vm798_vm7 = vcmp.eq.s32.totalorder %v2479_v14, %v2145_v57  ;;  %v1112_v29 = vadd.f32 %v1110_v32, %v1049_v6  ;;  %v1180_v1 = vmul.f32 %v847_v12, %v847_v12  ;;  %v1239_v15 = vadd.f32 %v1237_v44, %v1176_v43  ;;  %v2490_v14 = vld [vmem:[#allocation13_spill] sm:$0xff] }
 0x26e   : > { %v852_v39 = vsel %vm788_vm2, %v1785_v40, 0.0  ;;  %v1473_v11 = vadd.f32 -1.0, %v2480_v36  ;;  %v993_v53 = vmul.f32 %v1469_v34, %v1469_v34  ;;  %v1053_v45 = vsel %vm796_vm6, %v989_v41, 0.0  ;;  %v2488_v34 = vld [vmem:[#allocation19_spill] sm:$0xff] }
 0x26f   : > { %vm800_vm8 = vcmp.eq.s32.totalorder %v2481_v13, %v2145_v57  ;;  %v1114_v2 = vadd.f32 %v1112_v29, %v1051_v22  ;;  %v1182_v35 = vmul.f32 %v849_v54, %v849_v54  ;;  %v1241_v3 = vadd.f32 %v1239_v15, %v1178_v42  ;;  %v2492_v13 = vld [vmem:[#allocation14_spill] sm:$0xff] }
 0x270   : > { %v854_v9 = vsel %vm790_vm3, %v1793_v48, 0.0  ;;  %v1475_v40 = vadd.f32 -1.0, %v2482_v63  ;;  %v995_v47 = vmul.f32 %v1471_v52, %v1471_v52  ;;  %v1055_v59 = vsel %vm798_vm7, %v991_v33, 0.0 }
 0x271   : > { %vm802_vm9 = vcmp.eq.s32.totalorder %v2082_v23, %v2145_v57  ;;  %v1116_v18 = vadd.f32 %v1114_v2, %v1053_v45  ;;  %v1185_v60 = vmul.f32 %v852_v39, %v852_v39  ;;  %v1243_v38 = vadd.f32 %v1241_v3, %v1180_v1  ;;  %v2491_v39 = vld [vmem:[#allocation20_spill] sm:$0xff] }
 0x272   : > { %v856_v30 = vsel %vm792_vm4, %v1801_v56, 0.0  ;;  %v1477_v48 = vadd.f32 -1.0, %v2483_v10  ;;  %v997_v31 = vmul.f32 %v1473_v11, %v1473_v11  ;;  %v1057_v49 = vsel %vm800_vm8, %v993_v53, 0.0 }
 0x273   : > { %vm804_vm10 = vcmp.eq.s32.totalorder %v2484_v7, %v2145_v57  ;;  %v1118_v46 = vadd.f32 %v1116_v18, %v1055_v59  ;;  %v1187_v17 = vmul.f32 %v854_v9, %v854_v9  ;;  %v1245_v4 = vadd.f32 %v1243_v38, %v1182_v35  ;;  %v2493_v9 = vld [vmem:[#allocation21_spill] sm:$0xff] }
 0x274   : > { %v858_v50 = vsel %vm794_vm5, %v1809_v0, 0.0  ;;  %v1479_v56 = vadd.f32 -1.0, %v2485_v51  ;;  %v999_v61 = vmul.f32 %v1475_v40, %v1475_v40  ;;  %v1059_v26 = vsel %vm802_vm9, %v995_v47, 0.0 }
 0x275   : > { %vm806_vm11 = vcmp.eq.s32.totalorder %v2486_v20, %v2145_v57  ;;  %v1120_v27 = vadd.f32 %v1118_v46, %v1057_v49  ;;  %v1189_v55 = vmul.f32 %v856_v30, %v856_v30  ;;  %v1248_v62 = vadd.f32 %v1245_v4, %v1185_v60 }
 0x276   : > { %v860_v43 = vsel %vm796_vm6, %v1817_v8, 0.0  ;;  %v1481_v0 = vadd.f32 -1.0, %v2487_v19  ;;  %v1001_v25 = vmul.f32 %v1477_v48, %v1477_v48  ;;  %v1061_v12 = vsel %vm804_vm10, %v997_v31, 0.0 }
 0x277   : > { %vm808_vm12 = vcmp.eq.s32.totalorder %v2488_v34, %v2145_v57  ;;  %v1122_v41 = vadd.f32 %v1120_v27, %v1059_v26  ;;  %v1191_v6 = vmul.f32 %v858_v50, %v858_v50  ;;  %v1250_v32 = vadd.f32 %v1248_v62, %v1187_v17 }
 0x278   : > { %v862_v42 = vsel %vm798_vm7, %v1825_v16, 0.0  ;;  %v1483_v8 = vadd.f32 -1.0, %v2489_v5  ;;  %v1003_v44 = vmul.f32 %v1479_v56, %v1479_v56  ;;  %v1063_v54 = vsel %vm806_vm11, %v999_v61, 0.0 }
 0x279   : > { %vm810_vm13 = vcmp.eq.s32.totalorder %v2099_v28, %v2145_v57  ;;  %v1124_v52 = vadd.f32 %v1122_v41, %v1061_v12  ;;  %v1193_v33 = vmul.f32 %v860_v43, %v860_v43  ;;  %v1252_v22 = vadd.f32 %v1250_v32, %v1189_v55 }
 0x27a   : > { %v864_v29 = vsel %vm800_vm8, %v1833_v24, 0.0  ;;  %v1485_v16 = vadd.f32 -1.0, %v2490_v14  ;;  %v1005_v1 = vmul.f32 %v1481_v0, %v1481_v0  ;;  %v1065_v15 = vsel %vm808_vm12, %v1001_v25, 0.0 }
 0x27b   : > { %vm812_vm14 = vcmp.eq.s32.totalorder %v2491_v39, %v2145_v57  ;;  %v1126_v11 = vadd.f32 %v1124_v52, %v1063_v54  ;;  %v1195_v53 = vmul.f32 %v862_v42, %v862_v42  ;;  %v1254_v45 = vadd.f32 %v1252_v22, %v1191_v6 }
 0x27c   : > { %v866_v2 = vsel %vm802_vm9, %v2478_v37, 0.0  ;;  %v1487_v24 = vadd.f32 -1.0, %v2492_v13  ;;  %v1007_v35 = vmul.f32 %v1483_v8, %v1483_v8  ;;  %v1067_v3 = vsel %vm810_vm13, %v1003_v44, 0.0 }
 0x27d   : > { %vm814_vm15 = vcmp.eq.s32.totalorder %v2493_v9, %v2145_v57  ;;  %v1128_v40 = vadd.f32 %v1126_v11, %v1065_v15  ;;  %v1197_v47 = vmul.f32 %v864_v29, %v864_v29  ;;  %v1256_v59 = vadd.f32 %v1254_v45, %v1193_v33 }
 0x27e   : > { %v868_v18 = vsel %vm804_vm10, %v2480_v36, 0.0  ;;  %v1009_v23 = vmul.f32 %v1485_v16, %v1485_v16  ;;  %v1069_v37 = vsel %vm812_vm14, %v1005_v1, 0.0  ;;  %vm816_vm0 = vcmp.eq.s32.totalorder %v2117_v21, %v2145_v57 }
 0x27f   : > { %v1130_v60 = vadd.f32 %v1128_v40, %v1067_v3  ;;  %v1199_v38 = vmul.f32 %v866_v2, %v866_v2  ;;  %v1258_v30 = vadd.f32 %v1256_v59, %v1195_v53  ;;  %v870_v48 = vsel %vm806_vm11, %v2482_v63, 0.0 }
 0x280   : > { %v1011_v31 = vmul.f32 %v1487_v24, %v1487_v24  ;;  %v1071_v36 = vsel %vm814_vm15, %v1007_v35, 0.0  ;;  %vm818_vm1 = vcmp.eq.s32.totalorder %v2126_v58, %v2145_v57  ;;  %v1201_v7 = vmul.f32 %v868_v18, %v868_v18 }
 0x281   : > { %v1132_v49 = vadd.f32 %v1130_v60, %v1069_v37  ;;  %v1260_v46 = vadd.f32 %v1258_v30, %v1197_v47  ;;  %v872_v17 = vsel %vm808_vm12, %v2483_v10, 0.0  ;;  %v1073_v63 = vsel %vm816_vm0, %v1009_v23, 0.0 }
 0x282   : > { %v1203_v50 = vmul.f32 %v870_v48, %v870_v48  ;;  %v874_v61 = vsel %vm810_vm13, %v2485_v51, 0.0  ;;  %v1075_v26 = vsel %vm818_vm1, %v1011_v31, 0.0  ;;  %v1205_v27 = vmul.f32 %v872_v17, %v872_v17 }
 0x283   : > { %v1134_v4 = vadd.f32 %v1132_v49, %v1071_v36  ;;  %v1262_v56 = vadd.f32 %v1260_v46, %v1199_v38  ;;  %v876_v10 = vsel %vm812_vm14, %v2487_v19, 0.0  ;;  %v1207_v43 = vmul.f32 %v874_v61, %v874_v61 }
 0x284   : > { %v878_v28 = vsel %vm814_vm15, %v2489_v5, 0.0  ;;  %v1209_v51 = vmul.f32 %v876_v10, %v876_v10  ;;  %v880_v12 = vsel %vm816_vm0, %v2490_v14, 0.0  ;;  %v882_v19 = vsel %vm818_vm1, %v2492_v13, 0.0 }
 0x285   : > { %v1136_v20 = vadd.f32 %v1134_v4, %v1073_v63  ;;  %v1264_v55 = vadd.f32 %v1262_v56, %v1201_v7  ;;  %v1211_v34 = vmul.f32 %v878_v28, %v878_v28  ;;  %v1213_v6 = vmul.f32 %v880_v12, %v880_v12 }
 0x286   : > { %v1215_v42 = vmul.f32 %v882_v19, %v882_v19 }
 0x287   : > { %v1138_v62 = vadd.f32 %v1136_v20, %v1075_v26  ;;  %v1266_v0 = vadd.f32 %v1264_v55, %v1203_v50 }
 0x289   : > { %1139 = vadd.xlane.f32.xlu0 %v1138_v62  ;;  %v1268_v25 = vadd.f32 %v1266_v0, %v1205_v27 }
 0x28b   : > { %v1270_v41 = vadd.f32 %v1268_v25, %v1207_v43 }
 0x28d   : > { %v1272_v32 = vadd.f32 %v1270_v41, %v1209_v51 }
 0x28f   : > { %v1274_v8 = vadd.f32 %v1272_v32, %v1211_v34 }
 0x291   : > { %v1276_v5 = vadd.f32 %v1274_v8, %v1213_v6 }
 0x293   : > { %v1278_v44 = vadd.f32 %v1276_v5, %v1215_v42 }
 0x295   : > { %1279 = vadd.xlane.f32.xlu0 %v1278_v44 }
 0x316   : > { %v1140_v54 = vpop.xlane.xlu0 %1139 }
 0x317   : > { %v1141_v52 = vrot.slane %v1140_v54, 4 }
 0x319   : > { %v1142_v33 = vadd.f32 %v1141_v52, %v1140_v54 }
 0x31b   : > { %v1143_v22 = vrot.slane %v1142_v33, 2 }
 0x31d   : > { %v1144_v21 = vadd.f32 %v1143_v22, %v1142_v33 }
 0x31f   : > { %v1145_v29 = vrot.slane %v1144_v21, 1 }
 0x321   : > { %v1146_v14 = vadd.f32 %v1145_v29, %v1144_v21 }
 0x322   : > { %v1280_v16 = vpop.xlane.xlu0 %1279 }
 0x323   : > { %v1281_v1 = vrot.slane %v1280_v16, 4  ;;  %1501 = vpush %v1146_v14 }
 0x325   : > { %v1282_v15 = vadd.f32 %v1281_v1, %v1280_v16 }
 0x327   : > { %v1283_v58 = vrot.slane %v1282_v15, 2 }
 0x329   : > { %v1284_v57 = vadd.f32 %v1283_v58, %v1282_v15 }
 0x32b   : > { %v1285_v39 = vrot.slane %v1284_v57, 1 }
 0x32d   : > { %v1286_v11 = vadd.f32 %v1285_v39, %v1284_v57 }
 0x32f   : > { %1503 = vpush %v1286_v11 }
 0x354   : > { %s1502_s4 = spop %1501 }
 0x355   : > { %s1148_s5 = sadd.f32 %s1502_s4, %s883_s3 }
 0x357   : > { %1150 = sst [smem:[#allocation2]] %s1148_s5 }
 0x360   : > { %s1504_s7 = spop %1503 }
 0x361   : > { %s1288_s8 = ssub.f32 %s1488_s6, %s1504_s7 }
 0x363   : > { %1289 = sst [smem:[#allocation2 + $0x1]] %s1288_s8 }
 0x364 PF: > { %s1294_s17 = sld [smem:[#allocation2]]  ;;  %s1490_s18 = sshll.u32 %s1606_s10, 7 }
 0x365   : > { %s1491_s19 = sld [smem:[#allocation2 + $0x1]]  ;;  %p1516_p9 = scmp.eq.s32.totalorder %s1602_s9, 1 }
 0x366   : > { %s1309_s22 = sshll.u32 %s2436_s2, 4  ;;  %s1296_s23 = scalar_lea.smem [#allocation3], %s1490_s18  ;;  %s1310_s22 = int_to_ptr.vmem [resolvable:$true] %s1309_s22 }
 0x367   : > { %s1342_s24 = scalar_lea.smem %s1296_s23, 1 [#allocation3]  ;;  %p2407_p10 = scmp.eq.s32.totalorder %s1378_s14, 3 }
 0x368   : > { %s1562_s26 = scalar_lea.vmem %s1310_s22, 32  ;;  %p1569_p0 = scmp.lt.s32.totalorder %s1310_s22, %s1310_s22 }
 0x369   : > { %p1563_p11 = scmp.ne.s32.totalorder %s1310_s22, %s1562_s26  ;;  %p1570_p1 = scmp.lt.s32.totalorder %s1562_s26, %s1562_s26 }
 0x36a   : > { %1509 = sst [smem:[%s1296_s23]] (%p1516_p9), %s1294_s17 }
 0x36b   : > { %1510 = sst [smem:[%s1342_s24]] (%p1516_p9), %s1491_s19  ;;  %p1564_p12 = pnand %p1563_p11, %p2407_p10 }
 0x36c   : > { %p1571_p2 = por %p1570_p1, %p1569_p0 }
 0x36d   : > { %p1565_p13 = pneg %p1564_p12 }
 0x36f   : > { %p1572_p3 = pnand %p1571_p2, %p1565_p13 }
 0x371   : > { %1575 = shalt.err (!%p1572_p3)
}
 0x372   : > { %s1622_s9 = smov [#allocation3]  }
 0x373   : > { %1512 = dma.smem_to_vmem (%p2407_p10), %s1622_s9, 32, %s1310_s22, [#allocation4]  }
 0x374   : > { %1597 = dma.done.wait (%p2407_p10), [#allocation4], 32  }
 0x375   : > { %1599 = vsyncadd (%p2407_p10), [#allocation4], 4294967264 }
 0x376   : > { %1317 = sfence }
 0x377 PF: > { %s13_s13 = sadd.s32 1, %s1618_s13   ;;  %s2495_s9 = smov %s1610_s11 }
 0x378   : > { %p10_p4 = scmp.ge.s32.totalorder %s13_s13, 6   ;;  %s2496_s10 = smov %s1614_s12 }
 0x379   : > { %s2497_s11 = smov %s2500_s15  ;;  %s2498_s12 = smov %s2504_s16 }
 0x37a   :  { %12 = sbr.rel (!%p10_p4) target bundleno = 3 (0x3), region = 76 }
 0x381   :  { %1323 = vsyncpa [#allocation4], 1 }
 0x382   :  { %1325 = vsyncpa [#allocation4 + $0x1], 1 }

</bundles_post_ra>
